<compile_context>
chip_gen: v7x
topology: tpu7x:2x2x1
jax: 0.10.0
libtpu: 0.0.40
codegen_flags: <defaults>
</compile_context>

<pallas_src>
import jax
import jax.numpy as jnp
from jax.experimental import pallas as pl
from jax.experimental.pallas import tpu as pltpu

BN_EPS = 1e-5
LANE = 128


def _round_up(x, m):
    return (x + m - 1) // m * m


def _vmem_limit_bytes():
    # ~75% of physical VMEM: 96 MiB on v5e/v6e (128 MiB), 48 MiB on v7x (64 MiB).
    try:
        cap = pltpu.get_tpu_info().vmem_capacity_bytes
        return int(min(96 * 2**20, max(32 * 2**20, cap * 3 // 4)))
    except Exception:
        return 48 * 2**20          # conservative fallback, safe on every gen


VMEM_LIMIT = _vmem_limit_bytes()


# ----------------------------- Pallas kernels ------------------------------

def _make_conv_kernel(tap_map, ho, wo, cp, np_, with_epi):
    """Implicit-im2col conv matmul for one image per grid step.

    x_ref  : (R, Ws, cp)    padded NHWC image, bf16.  For stride-2 convs the 4
             parity subgrids are stacked along R so every tap in `tap_map`
             (static (row_off, col_off) pairs) is a unit-stride (ho, wo) window.
    w_ref  : (n_taps, cp, np_)  VMEM-resident weights, bf16 (constant block).
    s_ref/z_ref (epilogue only): (1, cp) per-channel BN1 scale / shift, applied
             once to the whole image, ReLU'd, halo forced to exactly 0.
    y_ref  : (ho*wo, np_)   conv output, bf16.
    st_ref : (8, np_)       rows 0/1 = per-channel sum / sum-of-squares of the
             f32 accumulator (feeds the following BatchNorm fold).
    """
    m_img = ho * wo

    def kernel(*refs):
        if with_epi:
            x_ref, w_ref, s_ref, z_ref, y_ref, st_ref = refs
        else:
            x_ref, w_ref, y_ref, st_ref = refs

        if with_epi:
            # BN1 + ReLU applied once per element (not once per tap).  f32 VPU
            # math (portable to v5e); result is cast to bf16 for the MXU.
            xf = x_ref[...].astype(jnp.float32)
            act = jnp.maximum(xf * s_ref[...] + z_ref[...], 0.0)
            hi = jax.lax.broadcasted_iota(
                jnp.int32, (act.shape[0], act.shape[1], 1), 0)
            wi = jax.lax.broadcasted_iota(
                jnp.int32, (act.shape[0], act.shape[1], 1), 1)
            interior = (hi >= 1) & (hi <= ho) & (wi >= 1) & (wi <= wo)
            # border forced to 0 == zero-padding the post-activation h1,
            # exactly as the PyTorch conv2 zero-pads its input.
            src = jnp.where(interior, act, 0.0).astype(jnp.bfloat16)

        acc = None
        for t, (r0, c0) in enumerate(tap_map):       # static unrolled tap loop
            if with_epi:
                a = src[r0:r0 + ho, c0:c0 + wo, :]
            else:
                a = x_ref[pl.ds(r0, ho), pl.ds(c0, wo), :]
            p = jnp.dot(a.reshape(m_img, cp), w_ref[t],
                        preferred_element_type=jnp.float32)
            acc = p if acc is None else acc + p

        y_ref[...] = acc.astype(y_ref.dtype)

        # fused per-channel batch statistics for the following BatchNorm
        rs = jnp.sum(acc, axis=0, keepdims=True)           # (1, np_)
        rq = jnp.sum(acc * acc, axis=0, keepdims=True)     # (1, np_)
        rows = jax.lax.broadcasted_iota(jnp.int32, (8, np_), 0)
        st_ref[...] = (jnp.where(rows == 0, rs, 0.0)
                       + jnp.where(rows == 1, rq, 0.0))

    return kernel


def conv2d_pallas(x_in, w_taps, tap_map, ho, wo, epi=None,
                  out_dtype=jnp.bfloat16):
    """Implicit-im2col conv: x_in (N, R, Ws, cp) bf16, w_taps (T, cp, np_) bf16.

    Returns y (N, ho*wo, np_) and stats (N, 8, np_) (per-image sum / sumsq).
    """
    n, r, ws, cp = x_in.shape
    n_taps, cp2, np_ = w_taps.shape
    assert cp2 == cp and np_ % LANE == 0 and len(tap_map) == n_taps
    m_img = ho * wo
    with_epi = epi is not None
    kernel = _make_conv_kernel(tap_map, ho, wo, cp, np_, with_epi)

    in_specs = [
        # whole padded image per grid step (implicit im2col happens in VMEM)
        pl.BlockSpec((None, r, ws, cp), lambda i: (i, 0, 0, 0)),
        # whole weight tensor, constant index_map -> DMA'd once, VMEM-resident
        pl.BlockSpec((n_taps, cp, np_), lambda i: (0, 0, 0)),
    ]
    args = [x_in, w_taps]
    if with_epi:
        in_specs += [pl.BlockSpec((1, cp), lambda i: (0, 0)),
                     pl.BlockSpec((1, cp), lambda i: (0, 0))]
        args += [epi[0], epi[1]]

    y, st = pl.pallas_call(
        kernel,
        out_shape=(jax.ShapeDtypeStruct((n, m_img, np_), out_dtype),
                   jax.ShapeDtypeStruct((n, 8, np_), jnp.float32)),
        grid=(n,),
        in_specs=in_specs,
        out_specs=(pl.BlockSpec((None, m_img, np_), lambda i: (i, 0, 0)),
                   pl.BlockSpec((None, 8, np_), lambda i: (i, 0, 0))),
        compiler_params=pltpu.CompilerParams(
            dimension_semantics=("parallel",),      # v7x: N>=2 -> both TCs busy
            vmem_limit_bytes=VMEM_LIMIT),
    )(*args)
    return y, st


def _bn_add_relu_kernel(y_ref, r_ref, s2_ref, b2_ref, sr_ref, br_ref, o_ref):
    # out = relu( bn2(y2) + bn_res(yr) ); bf16 loads, f32 math.
    y = y_ref[...].astype(jnp.float32)
    r = r_ref[...].astype(jnp.float32)
    o_ref[...] = jnp.maximum(
        y * s2_ref[...] + b2_ref[...] + r * sr_ref[...] + br_ref[...],
        0.0).astype(o_ref.dtype)


def _pick_rows_tile(rows):
    # large lane-dense tiles; keep >=2 tiles when possible so both v7x
    # TensorCores get work along the "parallel" grid axis.
    for t in (1024, 512, 256, 128, 64, 32, 16, 8):
        if rows % t == 0 and rows // t >= 2:
            return t
    return rows


def pallas_bn_add_relu(y, r, s2, b2, sr, br, out_dtype=jnp.float32):
    rows, np_ = y.shape
    tm = _pick_rows_tile(rows)
    tile = pl.BlockSpec((tm, np_), lambda i: (i, 0))
    row = pl.BlockSpec((1, np_), lambda i: (0, 0))
    return pl.pallas_call(
        _bn_add_relu_kernel,
        out_shape=jax.ShapeDtypeStruct((rows, np_), out_dtype),
        grid=(rows // tm,),
        in_specs=[tile, tile, row, row, row, row],
        out_specs=tile,
        compiler_params=pltpu.CompilerParams(
            dimension_semantics=("parallel",),
            vmem_limit_bytes=VMEM_LIMIT),
    )(y, r, s2, b2, sr, br)


# ------------------------------ JAX glue ------------------------------------

def _fold_bn(stats, m_true, gamma_p, beta_p):
    """Training-mode BN fold from the fused per-image sum / sum-of-squares."""
    total = jnp.sum(stats[:, 0, :], axis=0)
    total_sq = jnp.sum(stats[:, 1, :], axis=0)
    mean = total / m_true
    var = jnp.maximum(total_sq / m_true - mean * mean, 0.0)   # biased variance
    scale = gamma_p / jnp.sqrt(var + BN_EPS)
    shift = beta_p - mean * scale
    return (scale.astype(jnp.float32).reshape(1, -1),
            shift.astype(jnp.float32).reshape(1, -1))


def _space_to_depth_taps(x_pad, ho, wo):
    """Re-layout a zero-padded NHWC image so every tap of a stride-2 3x3 conv
    becomes a unit-stride (ho, wo) window: the 4 spatial parity subgrids are
    stacked along H.  Returns (x_in[N, 4*(ho+1), wo+1, C], tap_map)."""
    hs, ws = ho + 1, wo + 1
    subs = []
    for a in (0, 1):
        for b in (0, 1):
            s = x_pad[:, a::2, b::2, :]
            ph = max(0, hs - s.shape[1])
            pw = max(0, ws - s.shape[2])
            s = jnp.pad(s, ((0, 0), (0, ph), (0, pw), (0, 0)))[:, :hs, :ws, :]
            subs.append(s)
    x_in = jnp.concatenate(subs, axis=1)                 # (N, 4*hs, ws, C)
    tap_map = [((2 * (dh % 2) + (dw % 2)) * hs + dh // 2, dw // 2)
               for dh in range(3) for dw in range(3)]
    return x_in, tap_map


def _conv3x3_weights(w, cin_p, cout_p):
    """(cout, cin, 3, 3) -> (9, cin_p, cout_p) bf16, zero padded."""
    cout, cin = w.shape[0], w.shape[1]
    wt = jnp.transpose(w, (2, 3, 1, 0)).reshape(9, cin, cout)
    return jnp.pad(wt, ((0, 0), (0, cin_p - cin),
                        (0, cout_p - cout))).astype(jnp.bfloat16)


def init_params(key, in_channels, out_channels):
    ks = jax.random.split(key, 8)
    n = lambda k, shape, s=0.1: (s * jax.random.normal(k, shape)).astype(jnp.float32)
    return {
        "conv1_w": n(ks[0], (out_channels, in_channels, 3, 3)),
        "conv2_w": n(ks[1], (out_channels, out_channels, 3, 3)),
        "res_w":   n(ks[2], (out_channels, in_channels, 1, 1)),
        "bn1_gamma": 1.0 + n(ks[3], (out_channels,)),
        "bn1_beta":  n(ks[4], (out_channels,)),
        "bn2_gamma": 1.0 + n(ks[5], (out_channels,)),
        "bn2_beta":  n(ks[6], (out_channels,)),
        "res_gamma": 1.0 + n(ks[7], (out_channels,)),
        "res_beta":  jnp.zeros((out_channels,), jnp.float32),
    }


def cnn_block_forward(x_nchw, params, downsample):
    stride = 2 if downsample else 1
    x = jnp.transpose(x_nchw, (0, 2, 3, 1)).astype(jnp.float32)   # NCHW -> NHWC
    n, h, w, cin = x.shape
    cout = params["conv1_w"].shape[0]
    cin_p = _round_up(cin, LANE)
    np_ = _round_up(cout, LANE)          # lane-dense padded channel dim

    ho = (h + 2 - 3) // stride + 1
    wo = (w + 2 - 3) // stride + 1
    m = n * ho * wo

    # padded BN parameters (gamma -> 1, beta -> 0 on padded channels)
    def pad_g(v): return jnp.concatenate([v, jnp.ones(np_ - cout, v.dtype)])
    def pad_b(v): return jnp.concatenate([v, jnp.zeros(np_ - cout, v.dtype)])
    g1, be1 = pad_g(params["bn1_gamma"]), pad_b(params["bn1_beta"])
    g2, be2 = pad_g(params["bn2_gamma"]), pad_b(params["bn2_beta"])
    gr, ber = pad_g(params["res_gamma"]), pad_b(params["res_beta"])

    # channel-padded, lane-dense bf16 NHWC input
    x_bf = jnp.pad(x, ((0, 0), (0, 0), (0, 0),
                       (0, cin_p - cin))).astype(jnp.bfloat16)

    # --- conv1: 3x3 stride s, pad 1 — implicit im2col + fused BN stats ------
    x_pad = jnp.pad(x_bf, ((0, 0), (1, 1), (1, 1), (0, 0)))
    if stride == 2:
        x1_in, tap1 = _space_to_depth_taps(x_pad, ho, wo)
    else:
        x1_in = x_pad
        tap1 = [(dh, dw) for dh in range(3) for dw in range(3)]
    w1 = _conv3x3_weights(params["conv1_w"], cin_p, np_)
    y1, st1 = conv2d_pallas(x1_in, w1, tap1, ho, wo)
    s1, t1 = _fold_bn(st1, m, g1, be1)

    # --- conv2: 3x3 stride 1, pad 1; BN1+ReLU fused as a once-per-element ---
    # input epilogue (halo forced to 0 in-kernel == zero-padded relu(bn1(y1)))
    y1_pad = jnp.pad(y1.reshape(n, ho, wo, np_),
                     ((0, 0), (1, 1), (1, 1), (0, 0)))
    tap2 = [(dh, dw) for dh in range(3) for dw in range(3)]
    w2 = _conv3x3_weights(params["conv2_w"], np_, np_)
    y2, st2 = conv2d_pallas(y1_pad, w2, tap2, ho, wo, epi=(s1, t1))
    s2, t2 = _fold_bn(st2, m, g2, be2)

    # --- residual path: 1x1 conv stride s (pad 0) + fused BN stats ----------
    xr = x_bf[:, ::stride, ::stride, :]                 # (n, ho, wo, cin_p)
    wr = jnp.pad(params["res_w"][:, :, 0, 0].T,
                 ((0, cin_p - cin), (0, np_ - cout))
                 ).astype(jnp.bfloat16).reshape(1, cin_p, np_)
    yr, st_r = conv2d_pallas(xr, wr, [(0, 0)], ho, wo)
    sr, tr = _fold_bn(st_r, m, gr, ber)

    # --- fused: relu( bn2(y2) + bn_res(yr) ) ---------------------------------
    # NOTE: output stays f32 to match the reference block's return dtype;
    # switch out_dtype to bf16 if the consumer accepts it (halves the write).
    out = pallas_bn_add_relu(y2.reshape(m, np_), yr.reshape(m, np_),
                             s2, t2, sr, tr)
    out_nhwc = out[:, :cout].reshape(n, ho, wo, cout)
    return jnp.transpose(out_nhwc, (0, 3, 1, 2))        # back to NCHW


if __name__ == "__main__":
    in_channels, out_channels, downsample = 4, 8, True
    key = jax.random.PRNGKey(0)
    kx, kp = jax.random.split(key)
    x = jax.random.normal(kx, (2, in_channels, 16, 16), dtype=jnp.float32)
    params = init_params(kp, in_channels, out_channels)

    fwd = jax.jit(cnn_block_forward, static_argnames=("downsample",))
    out = fwd(x, params, downsample=downsample)
    out = jax.block_until_ready(out)
    assert out.shape == (2, out_channels, 8, 8), out.shape
    print("KERNEL_OK")
</pallas_src>

<mosaic_0001>
module attributes {stable_mosaic.version = 11 : i64} {
  func.func @kernel(%arg0: i32, %arg1: memref<1x36x9x128xbf16, #tpu.memory_space<vmem>>, %arg2: memref<9x128x128xbf16, #tpu.memory_space<vmem>>, %arg3: memref<1x64x128xbf16, #tpu.memory_space<vmem>>, %arg4: memref<1x8x128xf32, #tpu.memory_space<vmem>>) attributes {dimension_semantics = [#tpu.dimension_semantics<parallel>], iteration_bounds = array<i64: 2>, scalar_prefetch = 0 : i64, scratch_operands = 0 : i64, tpu.core_type = #tpu.core_type<tc>, window_params = [{transform_indices = @transform_0, window_bounds = array<i64: 1, 36, 9, 128>}, {pipeline_mode = #tpu.pipeline_mode<synchronous>, transform_indices = @transform_1, window_bounds = array<i64: 9, 128, 128>}, {transform_indices = @transform_2, window_bounds = array<i64: 1, 64, 128>}, {transform_indices = @transform_3, window_bounds = array<i64: 1, 8, 128>}]} {
    %c0 = arith.constant 0 : index
    %c0_0 = arith.constant 0 : index
    %c0_1 = arith.constant 0 : index
    %c0_2 = arith.constant 0 : index
    %0 = vector.load %arg1[%c0, %c0_0, %c0_1, %c0_2] : memref<1x36x9x128xbf16, #tpu.memory_space<vmem>>, vector<1x8x8x128xbf16>
    %1 = vector.shape_cast %0 : vector<1x8x8x128xbf16> to vector<8x8x128xbf16>
    %2 = vector.shape_cast %1 : vector<8x8x128xbf16> to vector<64x128xbf16>
    %c0_3 = arith.constant 0 : index
    %c0_4 = arith.constant 0 : index
    %c0_5 = arith.constant 0 : index
    %3 = vector.load %arg2[%c0_3, %c0_4, %c0_5] : memref<9x128x128xbf16, #tpu.memory_space<vmem>>, vector<1x128x128xbf16>
    %4 = vector.shape_cast %3 : vector<1x128x128xbf16> to vector<128x128xbf16>
    %cst = arith.constant dense<0.000000e+00> : vector<64x128xf32>
    %5 = tpu.matmul %2, %4, %cst {dimension_numbers = #tpu.dot_dimension_numbers<[1], [0], [0], [1], [0, 0, 1, 1], [], []>} : vector<64x128xbf16>, vector<128x128xbf16>, vector<64x128xf32> -> vector<64x128xf32>
    %c0_6 = arith.constant 0 : index
    %c9 = arith.constant 9 : index
    %c0_7 = arith.constant 0 : index
    %c0_8 = arith.constant 0 : index
    %6 = vector.load %arg1[%c0_6, %c9, %c0_7, %c0_8] : memref<1x36x9x128xbf16, #tpu.memory_space<vmem>>, vector<1x8x8x128xbf16>
    %7 = vector.shape_cast %6 : vector<1x8x8x128xbf16> to vector<8x8x128xbf16>
    %8 = vector.shape_cast %7 : vector<8x8x128xbf16> to vector<64x128xbf16>
    %c1 = arith.constant 1 : index
    %c0_9 = arith.constant 0 : index
    %c0_10 = arith.constant 0 : index
    %9 = vector.load %arg2[%c1, %c0_9, %c0_10] : memref<9x128x128xbf16, #tpu.memory_space<vmem>>, vector<1x128x128xbf16>
    %10 = vector.shape_cast %9 : vector<1x128x128xbf16> to vector<128x128xbf16>
    %cst_11 = arith.constant dense<0.000000e+00> : vector<64x128xf32>
    %11 = tpu.matmul %8, %10, %cst_11 {dimension_numbers = #tpu.dot_dimension_numbers<[1], [0], [0], [1], [0, 0, 1, 1], [], []>} : vector<64x128xbf16>, vector<128x128xbf16>, vector<64x128xf32> -> vector<64x128xf32>
    %12 = arith.addf %5, %11 : vector<64x128xf32>
    %c0_12 = arith.constant 0 : index
    %c0_13 = arith.constant 0 : index
    %c1_14 = arith.constant 1 : index
    %c0_15 = arith.constant 0 : index
    %13 = vector.load %arg1[%c0_12, %c0_13, %c1_14, %c0_15] : memref<1x36x9x128xbf16, #tpu.memory_space<vmem>>, vector<1x8x8x128xbf16>
    %14 = vector.shape_cast %13 : vector<1x8x8x128xbf16> to vector<8x8x128xbf16>
    %15 = vector.shape_cast %14 : vector<8x8x128xbf16> to vector<64x128xbf16>
    %c2 = arith.constant 2 : index
    %c0_16 = arith.constant 0 : index
    %c0_17 = arith.constant 0 : index
    %16 = vector.load %arg2[%c2, %c0_16, %c0_17] : memref<9x128x128xbf16, #tpu.memory_space<vmem>>, vector<1x128x128xbf16>
    %17 = vector.shape_cast %16 : vector<1x128x128xbf16> to vector<128x128xbf16>
    %cst_18 = arith.constant dense<0.000000e+00> : vector<64x128xf32>
    %18 = tpu.matmul %15, %17, %cst_18 {dimension_numbers = #tpu.dot_dimension_numbers<[1], [0], [0], [1], [0, 0, 1, 1], [], []>} : vector<64x128xbf16>, vector<128x128xbf16>, vector<64x128xf32> -> vector<64x128xf32>
    %19 = arith.addf %12, %18 : vector<64x128xf32>
    %c0_19 = arith.constant 0 : index
    %c18 = arith.constant 18 : index
    %c0_20 = arith.constant 0 : index
    %c0_21 = arith.constant 0 : index
    %20 = vector.load %arg1[%c0_19, %c18, %c0_20, %c0_21] : memref<1x36x9x128xbf16, #tpu.memory_space<vmem>>, vector<1x8x8x128xbf16>
    %21 = vector.shape_cast %20 : vector<1x8x8x128xbf16> to vector<8x8x128xbf16>
    %22 = vector.shape_cast %21 : vector<8x8x128xbf16> to vector<64x128xbf16>
    %c3 = arith.constant 3 : index
    %c0_22 = arith.constant 0 : index
    %c0_23 = arith.constant 0 : index
    %23 = vector.load %arg2[%c3, %c0_22, %c0_23] : memref<9x128x128xbf16, #tpu.memory_space<vmem>>, vector<1x128x128xbf16>
    %24 = vector.shape_cast %23 : vector<1x128x128xbf16> to vector<128x128xbf16>
    %cst_24 = arith.constant dense<0.000000e+00> : vector<64x128xf32>
    %25 = tpu.matmul %22, %24, %cst_24 {dimension_numbers = #tpu.dot_dimension_numbers<[1], [0], [0], [1], [0, 0, 1, 1], [], []>} : vector<64x128xbf16>, vector<128x128xbf16>, vector<64x128xf32> -> vector<64x128xf32>
    %26 = arith.addf %19, %25 : vector<64x128xf32>
    %c0_25 = arith.constant 0 : index
    %c27 = arith.constant 27 : index
    %c0_26 = arith.constant 0 : index
    %c0_27 = arith.constant 0 : index
    %27 = vector.load %arg1[%c0_25, %c27, %c0_26, %c0_27] : memref<1x36x9x128xbf16, #tpu.memory_space<vmem>>, vector<1x8x8x128xbf16>
    %28 = vector.shape_cast %27 : vector<1x8x8x128xbf16> to vector<8x8x128xbf16>
    %29 = vector.shape_cast %28 : vector<8x8x128xbf16> to vector<64x128xbf16>
    %c4 = arith.constant 4 : index
    %c0_28 = arith.constant 0 : index
    %c0_29 = arith.constant 0 : index
    %30 = vector.load %arg2[%c4, %c0_28, %c0_29] : memref<9x128x128xbf16, #tpu.memory_space<vmem>>, vector<1x128x128xbf16>
    %31 = vector.shape_cast %30 : vector<1x128x128xbf16> to vector<128x128xbf16>
    %cst_30 = arith.constant dense<0.000000e+00> : vector<64x128xf32>
    %32 = tpu.matmul %29, %31, %cst_30 {dimension_numbers = #tpu.dot_dimension_numbers<[1], [0], [0], [1], [0, 0, 1, 1], [], []>} : vector<64x128xbf16>, vector<128x128xbf16>, vector<64x128xf32> -> vector<64x128xf32>
    %33 = arith.addf %26, %32 : vector<64x128xf32>
    %c0_31 = arith.constant 0 : index
    %c18_32 = arith.constant 18 : index
    %c1_33 = arith.constant 1 : index
    %c0_34 = arith.constant 0 : index
    %34 = vector.load %arg1[%c0_31, %c18_32, %c1_33, %c0_34] : memref<1x36x9x128xbf16, #tpu.memory_space<vmem>>, vector<1x8x8x128xbf16>
    %35 = vector.shape_cast %34 : vector<1x8x8x128xbf16> to vector<8x8x128xbf16>
    %36 = vector.shape_cast %35 : vector<8x8x128xbf16> to vector<64x128xbf16>
    %c5 = arith.constant 5 : index
    %c0_35 = arith.constant 0 : index
    %c0_36 = arith.constant 0 : index
    %37 = vector.load %arg2[%c5, %c0_35, %c0_36] : memref<9x128x128xbf16, #tpu.memory_space<vmem>>, vector<1x128x128xbf16>
    %38 = vector.shape_cast %37 : vector<1x128x128xbf16> to vector<128x128xbf16>
    %cst_37 = arith.constant dense<0.000000e+00> : vector<64x128xf32>
    %39 = tpu.matmul %36, %38, %cst_37 {dimension_numbers = #tpu.dot_dimension_numbers<[1], [0], [0], [1], [0, 0, 1, 1], [], []>} : vector<64x128xbf16>, vector<128x128xbf16>, vector<64x128xf32> -> vector<64x128xf32>
    %40 = arith.addf %33, %39 : vector<64x128xf32>
    %c0_38 = arith.constant 0 : index
    %c1_39 = arith.constant 1 : index
    %c0_40 = arith.constant 0 : index
    %c0_41 = arith.constant 0 : index
    %41 = vector.load %arg1[%c0_38, %c1_39, %c0_40, %c0_41] : memref<1x36x9x128xbf16, #tpu.memory_space<vmem>>, vector<1x8x8x128xbf16>
    %42 = vector.shape_cast %41 : vector<1x8x8x128xbf16> to vector<8x8x128xbf16>
    %43 = vector.shape_cast %42 : vector<8x8x128xbf16> to vector<64x128xbf16>
    %c6 = arith.constant 6 : index
    %c0_42 = arith.constant 0 : index
    %c0_43 = arith.constant 0 : index
    %44 = vector.load %arg2[%c6, %c0_42, %c0_43] : memref<9x128x128xbf16, #tpu.memory_space<vmem>>, vector<1x128x128xbf16>
    %45 = vector.shape_cast %44 : vector<1x128x128xbf16> to vector<128x128xbf16>
    %cst_44 = arith.constant dense<0.000000e+00> : vector<64x128xf32>
    %46 = tpu.matmul %43, %45, %cst_44 {dimension_numbers = #tpu.dot_dimension_numbers<[1], [0], [0], [1], [0, 0, 1, 1], [], []>} : vector<64x128xbf16>, vector<128x128xbf16>, vector<64x128xf32> -> vector<64x128xf32>
    %47 = arith.addf %40, %46 : vector<64x128xf32>
    %c0_45 = arith.constant 0 : index
    %c10 = arith.constant 10 : index
    %c0_46 = arith.constant 0 : index
    %c0_47 = arith.constant 0 : index
    %48 = vector.load %arg1[%c0_45, %c10, %c0_46, %c0_47] : memref<1x36x9x128xbf16, #tpu.memory_space<vmem>>, vector<1x8x8x128xbf16>
    %49 = vector.shape_cast %48 : vector<1x8x8x128xbf16> to vector<8x8x128xbf16>
    %50 = vector.shape_cast %49 : vector<8x8x128xbf16> to vector<64x128xbf16>
    %c7 = arith.constant 7 : index
    %c0_48 = arith.constant 0 : index
    %c0_49 = arith.constant 0 : index
    %51 = vector.load %arg2[%c7, %c0_48, %c0_49] : memref<9x128x128xbf16, #tpu.memory_space<vmem>>, vector<1x128x128xbf16>
    %52 = vector.shape_cast %51 : vector<1x128x128xbf16> to vector<128x128xbf16>
    %cst_50 = arith.constant dense<0.000000e+00> : vector<64x128xf32>
    %53 = tpu.matmul %50, %52, %cst_50 {dimension_numbers = #tpu.dot_dimension_numbers<[1], [0], [0], [1], [0, 0, 1, 1], [], []>} : vector<64x128xbf16>, vector<128x128xbf16>, vector<64x128xf32> -> vector<64x128xf32>
    %54 = arith.addf %47, %53 : vector<64x128xf32>
    %c0_51 = arith.constant 0 : index
    %c1_52 = arith.constant 1 : index
    %c1_53 = arith.constant 1 : index
    %c0_54 = arith.constant 0 : index
    %55 = vector.load %arg1[%c0_51, %c1_52, %c1_53, %c0_54] : memref<1x36x9x128xbf16, #tpu.memory_space<vmem>>, vector<1x8x8x128xbf16>
    %56 = vector.shape_cast %55 : vector<1x8x8x128xbf16> to vector<8x8x128xbf16>
    %57 = vector.shape_cast %56 : vector<8x8x128xbf16> to vector<64x128xbf16>
    %c8 = arith.constant 8 : index
    %c0_55 = arith.constant 0 : index
    %c0_56 = arith.constant 0 : index
    %58 = vector.load %arg2[%c8, %c0_55, %c0_56] : memref<9x128x128xbf16, #tpu.memory_space<vmem>>, vector<1x128x128xbf16>
    %59 = vector.shape_cast %58 : vector<1x128x128xbf16> to vector<128x128xbf16>
    %cst_57 = arith.constant dense<0.000000e+00> : vector<64x128xf32>
    %60 = tpu.matmul %57, %59, %cst_57 {dimension_numbers = #tpu.dot_dimension_numbers<[1], [0], [0], [1], [0, 0, 1, 1], [], []>} : vector<64x128xbf16>, vector<128x128xbf16>, vector<64x128xf32> -> vector<64x128xf32>
    %61 = arith.addf %54, %60 : vector<64x128xf32>
    %62 = arith.truncf %61 : vector<64x128xf32> to vector<64x128xbf16>
    %c0_58 = arith.constant 0 : index
    %c0_59 = arith.constant 0 : index
    %c0_60 = arith.constant 0 : index
    %63 = vector.load %arg3[%c0_58, %c0_59, %c0_60] : memref<1x64x128xbf16, #tpu.memory_space<vmem>>, vector<1x64x128xbf16>
    %64 = vector.shape_cast %63 : vector<1x64x128xbf16> to vector<64x128xbf16>
    %65 = vector.shape_cast %62 : vector<64x128xbf16> to vector<1x64x128xbf16>
    tpu.vector_store %arg3[%c0_58, %c0_59, %c0_60], %65 {strides = array<i32>} : memref<1x64x128xbf16, #tpu.memory_space<vmem>>, vector<1x64x128xbf16>,
    %cst_61 = arith.constant dense<0.000000e+00> : vector<128xf32>
    %66 = vector.multi_reduction <add>, %61, %cst_61 [0] : vector<64x128xf32> to vector<128xf32>
    %67 = vector.shape_cast %66 : vector<128xf32> to vector<1x128xf32>
    %68 = arith.mulf %61, %61 : vector<64x128xf32>
    %cst_62 = arith.constant dense<0.000000e+00> : vector<128xf32>
    %69 = vector.multi_reduction <add>, %68, %cst_62 [0] : vector<64x128xf32> to vector<128xf32>
    %70 = vector.shape_cast %69 : vector<128xf32> to vector<1x128xf32>
    %71 = tpu.iota {dimensions = array<i32: 0>} : vector<8x128xi32>
    %c0_i32 = arith.constant 0 : i32
    %72 = vector.broadcast %c0_i32 : i32 to vector<8x128xi32>
    %73 = arith.cmpi eq, %71, %72 : vector<8x128xi32>
    %cst_63 = arith.constant 0.000000e+00 : f32
    %74 = vector.shape_cast %67 : vector<1x128xf32> to vector<1x128xf32>
    %75 = vector.broadcast %74 : vector<1x128xf32> to vector<8x128xf32>
    %76 = vector.broadcast %cst_63 : f32 to vector<8x128xf32>
    %77 = arith.select %73, %75, %76 : vector<8x128xi1>, vector<8x128xf32>
    %c1_i32 = arith.constant 1 : i32
    %78 = vector.broadcast %c1_i32 : i32 to vector<8x128xi32>
    %79 = arith.cmpi eq, %71, %78 : vector<8x128xi32>
    %cst_64 = arith.constant 0.000000e+00 : f32
    %80 = vector.shape_cast %70 : vector<1x128xf32> to vector<1x128xf32>
    %81 = vector.broadcast %80 : vector<1x128xf32> to vector<8x128xf32>
    %82 = vector.broadcast %cst_64 : f32 to vector<8x128xf32>
    %83 = arith.select %79, %81, %82 : vector<8x128xi1>, vector<8x128xf32>
    %84 = arith.addf %77, %83 : vector<8x128xf32>
    %c0_65 = arith.constant 0 : index
    %c0_66 = arith.constant 0 : index
    %c0_67 = arith.constant 0 : index
    %85 = vector.load %arg4[%c0_65, %c0_66, %c0_67] : memref<1x8x128xf32, #tpu.memory_space<vmem>>, vector<1x8x128xf32>
    %86 = vector.shape_cast %85 : vector<1x8x128xf32> to vector<8x128xf32>
    %87 = vector.shape_cast %84 : vector<8x128xf32> to vector<1x8x128xf32>
    tpu.vector_store %arg4[%c0_65, %c0_66, %c0_67], %87 {strides = array<i32>} : memref<1x8x128xf32, #tpu.memory_space<vmem>>, vector<1x8x128xf32>,
    return
  }
  func.func @transform_0(%arg0: i32) -> (i32, i32, i32, i32) {
    %c0_i32 = arith.constant 0 : i32
    %c0_i32_0 = arith.constant 0 : i32
    %c0_i32_1 = arith.constant 0 : i32
    %c0_i32_2 = arith.constant 0 : i32
    return %arg0, %c0_i32, %c0_i32_0, %c0_i32_1 : i32, i32, i32, i32
  }
  func.func @transform_1(%arg0: i32) -> (i32, i32, i32) {
    %c0_i32 = arith.constant 0 : i32
    %c0_i32_0 = arith.constant 0 : i32
    %c0_i32_1 = arith.constant 0 : i32
    %c0_i32_2 = arith.constant 0 : i32
    return %c0_i32, %c0_i32_0, %c0_i32_1 : i32, i32, i32
  }
  func.func @transform_2(%arg0: i32) -> (i32, i32, i32) {
    %c0_i32 = arith.constant 0 : i32
    %c0_i32_0 = arith.constant 0 : i32
    %c0_i32_1 = arith.constant 0 : i32
    return %arg0, %c0_i32, %c0_i32_0 : i32, i32, i32
  }
  func.func @transform_3(%arg0: i32) -> (i32, i32, i32) {
    %c0_i32 = arith.constant 0 : i32
    %c0_i32_0 = arith.constant 0 : i32
    %c0_i32_1 = arith.constant 0 : i32
    return %arg0, %c0_i32, %c0_i32_0 : i32, i32, i32
  }
}

module attributes {stable_mosaic.version = 11 : i64} {
  func.func @kernel(%arg0: i32, %arg1: memref<1x10x10x128xbf16, #tpu.memory_space<vmem>>, %arg2: memref<9x128x128xbf16, #tpu.memory_space<vmem>>, %arg3: memref<1x128xf32, #tpu.memory_space<vmem>>, %arg4: memref<1x128xf32, #tpu.memory_space<vmem>>, %arg5: memref<1x64x128xbf16, #tpu.memory_space<vmem>>, %arg6: memref<1x8x128xf32, #tpu.memory_space<vmem>>) attributes {dimension_semantics = [#tpu.dimension_semantics<parallel>], iteration_bounds = array<i64: 2>, scalar_prefetch = 0 : i64, scratch_operands = 0 : i64, tpu.core_type = #tpu.core_type<tc>, window_params = [{transform_indices = @transform_0, window_bounds = array<i64: 1, 10, 10, 128>}, {pipeline_mode = #tpu.pipeline_mode<synchronous>, transform_indices = @transform_1, window_bounds = array<i64: 9, 128, 128>}, {pipeline_mode = #tpu.pipeline_mode<synchronous>, transform_indices = @transform_2, window_bounds = array<i64: 1, 128>}, {pipeline_mode = #tpu.pipeline_mode<synchronous>, transform_indices = @transform_3, window_bounds = array<i64: 1, 128>}, {transform_indices = @transform_4, window_bounds = array<i64: 1, 64, 128>}, {transform_indices = @transform_5, window_bounds = array<i64: 1, 8, 128>}]} {
    %c0 = arith.constant 0 : index
    %c0_0 = arith.constant 0 : index
    %c0_1 = arith.constant 0 : index
    %c0_2 = arith.constant 0 : index
    %0 = vector.load %arg1[%c0, %c0_0, %c0_1, %c0_2] : memref<1x10x10x128xbf16, #tpu.memory_space<vmem>>, vector<1x10x10x128xbf16>
    %1 = vector.shape_cast %0 : vector<1x10x10x128xbf16> to vector<10x10x128xbf16>
    %2 = arith.extf %1 : vector<10x10x128xbf16> to vector<10x10x128xf32>
    %c0_3 = arith.constant 0 : index
    %c0_4 = arith.constant 0 : index
    %3 = vector.load %arg3[%c0_3, %c0_4] : memref<1x128xf32, #tpu.memory_space<vmem>>, vector<1x128xf32>
    %4 = vector.shape_cast %3 : vector<1x128xf32> to vector<1x1x128xf32>
    %5 = vector.broadcast %4 : vector<1x1x128xf32> to vector<10x10x128xf32>
    %6 = arith.mulf %2, %5 : vector<10x10x128xf32>
    %c0_5 = arith.constant 0 : index
    %c0_6 = arith.constant 0 : index
    %7 = vector.load %arg4[%c0_5, %c0_6] : memref<1x128xf32, #tpu.memory_space<vmem>>, vector<1x128xf32>
    %8 = vector.shape_cast %7 : vector<1x128xf32> to vector<1x1x128xf32>
    %9 = vector.broadcast %8 : vector<1x1x128xf32> to vector<10x10x128xf32>
    %10 = arith.addf %6, %9 : vector<10x10x128xf32>
    %cst = arith.constant 0.000000e+00 : f32
    %11 = vector.broadcast %cst : f32 to vector<10x10x128xf32>
    %12 = arith.maximumf %10, %11 : vector<10x10x128xf32>
    %13 = tpu.iota {dimensions = array<i32: 0>} : vector<10x10x1xi32>
    %14 = tpu.iota {dimensions = array<i32: 1>} : vector<10x10x1xi32>
    %c1_i32 = arith.constant 1 : i32
    %15 = vector.broadcast %c1_i32 : i32 to vector<10x10x1xi32>
    %16 = arith.cmpi sge, %13, %15 : vector<10x10x1xi32>
    %c8_i32 = arith.constant 8 : i32
    %17 = vector.broadcast %c8_i32 : i32 to vector<10x10x1xi32>
    %18 = arith.cmpi sle, %13, %17 : vector<10x10x1xi32>
    %19 = arith.andi %16, %18 : vector<10x10x1xi1>
    %c1_i32_7 = arith.constant 1 : i32
    %20 = vector.broadcast %c1_i32_7 : i32 to vector<10x10x1xi32>
    %21 = arith.cmpi sge, %14, %20 : vector<10x10x1xi32>
    %22 = arith.andi %19, %21 : vector<10x10x1xi1>
    %c8_i32_8 = arith.constant 8 : i32
    %23 = vector.broadcast %c8_i32_8 : i32 to vector<10x10x1xi32>
    %24 = arith.cmpi sle, %14, %23 : vector<10x10x1xi32>
    %25 = arith.andi %22, %24 : vector<10x10x1xi1>
    %cst_9 = arith.constant 0.000000e+00 : f32
    %26 = vector.shape_cast %25 : vector<10x10x1xi1> to vector<10x10x1xi1>
    %27 = vector.broadcast %26 : vector<10x10x1xi1> to vector<10x10x128xi1>
    %28 = vector.broadcast %cst_9 : f32 to vector<10x10x128xf32>
    %29 = arith.select %27, %12, %28 : vector<10x10x128xi1>, vector<10x10x128xf32>
    %30 = arith.truncf %29 : vector<10x10x128xf32> to vector<10x10x128xbf16>
    %31 = vector.extract_strided_slice %30 {offsets = [0, 0, 0], sizes = [8, 8, 128], strides = [1, 1, 1]} : vector<10x10x128xbf16> to vector<8x8x128xbf16>
    %32 = vector.shape_cast %31 : vector<8x8x128xbf16> to vector<64x128xbf16>
    %c0_10 = arith.constant 0 : index
    %c0_11 = arith.constant 0 : index
    %c0_12 = arith.constant 0 : index
    %33 = vector.load %arg2[%c0_10, %c0_11, %c0_12] : memref<9x128x128xbf16, #tpu.memory_space<vmem>>, vector<1x128x128xbf16>
    %34 = vector.shape_cast %33 : vector<1x128x128xbf16> to vector<128x128xbf16>
    %cst_13 = arith.constant dense<0.000000e+00> : vector<64x128xf32>
    %35 = tpu.matmul %32, %34, %cst_13 {dimension_numbers = #tpu.dot_dimension_numbers<[1], [0], [0], [1], [0, 0, 1, 1], [], []>} : vector<64x128xbf16>, vector<128x128xbf16>, vector<64x128xf32> -> vector<64x128xf32>
    %36 = vector.extract_strided_slice %30 {offsets = [0, 1, 0], sizes = [8, 8, 128], strides = [1, 1, 1]} : vector<10x10x128xbf16> to vector<8x8x128xbf16>
    %37 = vector.shape_cast %36 : vector<8x8x128xbf16> to vector<64x128xbf16>
    %c1 = arith.constant 1 : index
    %c0_14 = arith.constant 0 : index
    %c0_15 = arith.constant 0 : index
    %38 = vector.load %arg2[%c1, %c0_14, %c0_15] : memref<9x128x128xbf16, #tpu.memory_space<vmem>>, vector<1x128x128xbf16>
    %39 = vector.shape_cast %38 : vector<1x128x128xbf16> to vector<128x128xbf16>
    %cst_16 = arith.constant dense<0.000000e+00> : vector<64x128xf32>
    %40 = tpu.matmul %37, %39, %cst_16 {dimension_numbers = #tpu.dot_dimension_numbers<[1], [0], [0], [1], [0, 0, 1, 1], [], []>} : vector<64x128xbf16>, vector<128x128xbf16>, vector<64x128xf32> -> vector<64x128xf32>
    %41 = arith.addf %35, %40 : vector<64x128xf32>
    %42 = vector.extract_strided_slice %30 {offsets = [0, 2, 0], sizes = [8, 8, 128], strides = [1, 1, 1]} : vector<10x10x128xbf16> to vector<8x8x128xbf16>
    %43 = vector.shape_cast %42 : vector<8x8x128xbf16> to vector<64x128xbf16>
    %c2 = arith.constant 2 : index
    %c0_17 = arith.constant 0 : index
    %c0_18 = arith.constant 0 : index
    %44 = vector.load %arg2[%c2, %c0_17, %c0_18] : memref<9x128x128xbf16, #tpu.memory_space<vmem>>, vector<1x128x128xbf16>
    %45 = vector.shape_cast %44 : vector<1x128x128xbf16> to vector<128x128xbf16>
    %cst_19 = arith.constant dense<0.000000e+00> : vector<64x128xf32>
    %46 = tpu.matmul %43, %45, %cst_19 {dimension_numbers = #tpu.dot_dimension_numbers<[1], [0], [0], [1], [0, 0, 1, 1], [], []>} : vector<64x128xbf16>, vector<128x128xbf16>, vector<64x128xf32> -> vector<64x128xf32>
    %47 = arith.addf %41, %46 : vector<64x128xf32>
    %48 = vector.extract_strided_slice %30 {offsets = [1, 0, 0], sizes = [8, 8, 128], strides = [1, 1, 1]} : vector<10x10x128xbf16> to vector<8x8x128xbf16>
    %49 = vector.shape_cast %48 : vector<8x8x128xbf16> to vector<64x128xbf16>
    %c3 = arith.constant 3 : index
    %c0_20 = arith.constant 0 : index
    %c0_21 = arith.constant 0 : index
    %50 = vector.load %arg2[%c3, %c0_20, %c0_21] : memref<9x128x128xbf16, #tpu.memory_space<vmem>>, vector<1x128x128xbf16>
    %51 = vector.shape_cast %50 : vector<1x128x128xbf16> to vector<128x128xbf16>
    %cst_22 = arith.constant dense<0.000000e+00> : vector<64x128xf32>
    %52 = tpu.matmul %49, %51, %cst_22 {dimension_numbers = #tpu.dot_dimension_numbers<[1], [0], [0], [1], [0, 0, 1, 1], [], []>} : vector<64x128xbf16>, vector<128x128xbf16>, vector<64x128xf32> -> vector<64x128xf32>
    %53 = arith.addf %47, %52 : vector<64x128xf32>
    %54 = vector.extract_strided_slice %30 {offsets = [1, 1, 0], sizes = [8, 8, 128], strides = [1, 1, 1]} : vector<10x10x128xbf16> to vector<8x8x128xbf16>
    %55 = vector.shape_cast %54 : vector<8x8x128xbf16> to vector<64x128xbf16>
    %c4 = arith.constant 4 : index
    %c0_23 = arith.constant 0 : index
    %c0_24 = arith.constant 0 : index
    %56 = vector.load %arg2[%c4, %c0_23, %c0_24] : memref<9x128x128xbf16, #tpu.memory_space<vmem>>, vector<1x128x128xbf16>
    %57 = vector.shape_cast %56 : vector<1x128x128xbf16> to vector<128x128xbf16>
    %cst_25 = arith.constant dense<0.000000e+00> : vector<64x128xf32>
    %58 = tpu.matmul %55, %57, %cst_25 {dimension_numbers = #tpu.dot_dimension_numbers<[1], [0], [0], [1], [0, 0, 1, 1], [], []>} : vector<64x128xbf16>, vector<128x128xbf16>, vector<64x128xf32> -> vector<64x128xf32>
    %59 = arith.addf %53, %58 : vector<64x128xf32>
    %60 = vector.extract_strided_slice %30 {offsets = [1, 2, 0], sizes = [8, 8, 128], strides = [1, 1, 1]} : vector<10x10x128xbf16> to vector<8x8x128xbf16>
    %61 = vector.shape_cast %60 : vector<8x8x128xbf16> to vector<64x128xbf16>
    %c5 = arith.constant 5 : index
    %c0_26 = arith.constant 0 : index
    %c0_27 = arith.constant 0 : index
    %62 = vector.load %arg2[%c5, %c0_26, %c0_27] : memref<9x128x128xbf16, #tpu.memory_space<vmem>>, vector<1x128x128xbf16>
    %63 = vector.shape_cast %62 : vector<1x128x128xbf16> to vector<128x128xbf16>
    %cst_28 = arith.constant dense<0.000000e+00> : vector<64x128xf32>
    %64 = tpu.matmul %61, %63, %cst_28 {dimension_numbers = #tpu.dot_dimension_numbers<[1], [0], [0], [1], [0, 0, 1, 1], [], []>} : vector<64x128xbf16>, vector<128x128xbf16>, vector<64x128xf32> -> vector<64x128xf32>
    %65 = arith.addf %59, %64 : vector<64x128xf32>
    %66 = vector.extract_strided_slice %30 {offsets = [2, 0, 0], sizes = [8, 8, 128], strides = [1, 1, 1]} : vector<10x10x128xbf16> to vector<8x8x128xbf16>
    %67 = vector.shape_cast %66 : vector<8x8x128xbf16> to vector<64x128xbf16>
    %c6 = arith.constant 6 : index
    %c0_29 = arith.constant 0 : index
    %c0_30 = arith.constant 0 : index
    %68 = vector.load %arg2[%c6, %c0_29, %c0_30] : memref<9x128x128xbf16, #tpu.memory_space<vmem>>, vector<1x128x128xbf16>
    %69 = vector.shape_cast %68 : vector<1x128x128xbf16> to vector<128x128xbf16>
    %cst_31 = arith.constant dense<0.000000e+00> : vector<64x128xf32>
    %70 = tpu.matmul %67, %69, %cst_31 {dimension_numbers = #tpu.dot_dimension_numbers<[1], [0], [0], [1], [0, 0, 1, 1], [], []>} : vector<64x128xbf16>, vector<128x128xbf16>, vector<64x128xf32> -> vector<64x128xf32>
    %71 = arith.addf %65, %70 : vector<64x128xf32>
    %72 = vector.extract_strided_slice %30 {offsets = [2, 1, 0], sizes = [8, 8, 128], strides = [1, 1, 1]} : vector<10x10x128xbf16> to vector<8x8x128xbf16>
    %73 = vector.shape_cast %72 : vector<8x8x128xbf16> to vector<64x128xbf16>
    %c7 = arith.constant 7 : index
    %c0_32 = arith.constant 0 : index
    %c0_33 = arith.constant 0 : index
    %74 = vector.load %arg2[%c7, %c0_32, %c0_33] : memref<9x128x128xbf16, #tpu.memory_space<vmem>>, vector<1x128x128xbf16>
    %75 = vector.shape_cast %74 : vector<1x128x128xbf16> to vector<128x128xbf16>
    %cst_34 = arith.constant dense<0.000000e+00> : vector<64x128xf32>
    %76 = tpu.matmul %73, %75, %cst_34 {dimension_numbers = #tpu.dot_dimension_numbers<[1], [0], [0], [1], [0, 0, 1, 1], [], []>} : vector<64x128xbf16>, vector<128x128xbf16>, vector<64x128xf32> -> vector<64x128xf32>
    %77 = arith.addf %71, %76 : vector<64x128xf32>
    %78 = vector.extract_strided_slice %30 {offsets = [2, 2, 0], sizes = [8, 8, 128], strides = [1, 1, 1]} : vector<10x10x128xbf16> to vector<8x8x128xbf16>
    %79 = vector.shape_cast %78 : vector<8x8x128xbf16> to vector<64x128xbf16>
    %c8 = arith.constant 8 : index
    %c0_35 = arith.constant 0 : index
    %c0_36 = arith.constant 0 : index
    %80 = vector.load %arg2[%c8, %c0_35, %c0_36] : memref<9x128x128xbf16, #tpu.memory_space<vmem>>, vector<1x128x128xbf16>
    %81 = vector.shape_cast %80 : vector<1x128x128xbf16> to vector<128x128xbf16>
    %cst_37 = arith.constant dense<0.000000e+00> : vector<64x128xf32>
    %82 = tpu.matmul %79, %81, %cst_37 {dimension_numbers = #tpu.dot_dimension_numbers<[1], [0], [0], [1], [0, 0, 1, 1], [], []>} : vector<64x128xbf16>, vector<128x128xbf16>, vector<64x128xf32> -> vector<64x128xf32>
    %83 = arith.addf %77, %82 : vector<64x128xf32>
    %84 = arith.truncf %83 : vector<64x128xf32> to vector<64x128xbf16>
    %c0_38 = arith.constant 0 : index
    %c0_39 = arith.constant 0 : index
    %c0_40 = arith.constant 0 : index
    %85 = vector.load %arg5[%c0_38, %c0_39, %c0_40] : memref<1x64x128xbf16, #tpu.memory_space<vmem>>, vector<1x64x128xbf16>
    %86 = vector.shape_cast %85 : vector<1x64x128xbf16> to vector<64x128xbf16>
    %87 = vector.shape_cast %84 : vector<64x128xbf16> to vector<1x64x128xbf16>
    tpu.vector_store %arg5[%c0_38, %c0_39, %c0_40], %87 {strides = array<i32>} : memref<1x64x128xbf16, #tpu.memory_space<vmem>>, vector<1x64x128xbf16>,
    %cst_41 = arith.constant dense<0.000000e+00> : vector<128xf32>
    %88 = vector.multi_reduction <add>, %83, %cst_41 [0] : vector<64x128xf32> to vector<128xf32>
    %89 = vector.shape_cast %88 : vector<128xf32> to vector<1x128xf32>
    %90 = arith.mulf %83, %83 : vector<64x128xf32>
    %cst_42 = arith.constant dense<0.000000e+00> : vector<128xf32>
    %91 = vector.multi_reduction <add>, %90, %cst_42 [0] : vector<64x128xf32> to vector<128xf32>
    %92 = vector.shape_cast %91 : vector<128xf32> to vector<1x128xf32>
    %93 = tpu.iota {dimensions = array<i32: 0>} : vector<8x128xi32>
    %c0_i32 = arith.constant 0 : i32
    %94 = vector.broadcast %c0_i32 : i32 to vector<8x128xi32>
    %95 = arith.cmpi eq, %93, %94 : vector<8x128xi32>
    %cst_43 = arith.constant 0.000000e+00 : f32
    %96 = vector.shape_cast %89 : vector<1x128xf32> to vector<1x128xf32>
    %97 = vector.broadcast %96 : vector<1x128xf32> to vector<8x128xf32>
    %98 = vector.broadcast %cst_43 : f32 to vector<8x128xf32>
    %99 = arith.select %95, %97, %98 : vector<8x128xi1>, vector<8x128xf32>
    %c1_i32_44 = arith.constant 1 : i32
    %100 = vector.broadcast %c1_i32_44 : i32 to vector<8x128xi32>
    %101 = arith.cmpi eq, %93, %100 : vector<8x128xi32>
    %cst_45 = arith.constant 0.000000e+00 : f32
    %102 = vector.shape_cast %92 : vector<1x128xf32> to vector<1x128xf32>
    %103 = vector.broadcast %102 : vector<1x128xf32> to vector<8x128xf32>
    %104 = vector.broadcast %cst_45 : f32 to vector<8x128xf32>
    %105 = arith.select %101, %103, %104 : vector<8x128xi1>, vector<8x128xf32>
    %106 = arith.addf %99, %105 : vector<8x128xf32>
    %c0_46 = arith.constant 0 : index
    %c0_47 = arith.constant 0 : index
    %c0_48 = arith.constant 0 : index
    %107 = vector.load %arg6[%c0_46, %c0_47, %c0_48] : memref<1x8x128xf32, #tpu.memory_space<vmem>>, vector<1x8x128xf32>
    %108 = vector.shape_cast %107 : vector<1x8x128xf32> to vector<8x128xf32>
    %109 = vector.shape_cast %106 : vector<8x128xf32> to vector<1x8x128xf32>
    tpu.vector_store %arg6[%c0_46, %c0_47, %c0_48], %109 {strides = array<i32>} : memref<1x8x128xf32, #tpu.memory_space<vmem>>, vector<1x8x128xf32>,
    return
  }
  func.func @transform_0(%arg0: i32) -> (i32, i32, i32, i32) {
    %c0_i32 = arith.constant 0 : i32
    %c0_i32_0 = arith.constant 0 : i32
    %c0_i32_1 = arith.constant 0 : i32
    %c0_i32_2 = arith.constant 0 : i32
    return %arg0, %c0_i32, %c0_i32_0, %c0_i32_1 : i32, i32, i32, i32
  }
  func.func @transform_1(%arg0: i32) -> (i32, i32, i32) {
    %c0_i32 = arith.constant 0 : i32
    %c0_i32_0 = arith.constant 0 : i32
    %c0_i32_1 = arith.constant 0 : i32
    %c0_i32_2 = arith.constant 0 : i32
    return %c0_i32, %c0_i32_0, %c0_i32_1 : i32, i32, i32
  }
  func.func @transform_2(%arg0: i32) -> (i32, i32) {
    %c0_i32 = arith.constant 0 : i32
    %c0_i32_0 = arith.constant 0 : i32
    %c0_i32_1 = arith.constant 0 : i32
    return %c0_i32, %c0_i32_0 : i32, i32
  }
  func.func @transform_3(%arg0: i32) -> (i32, i32) {
    %c0_i32 = arith.constant 0 : i32
    %c0_i32_0 = arith.constant 0 : i32
    %c0_i32_1 = arith.constant 0 : i32
    return %c0_i32, %c0_i32_0 : i32, i32
  }
  func.func @transform_4(%arg0: i32) -> (i32, i32, i32) {
    %c0_i32 = arith.constant 0 : i32
    %c0_i32_0 = arith.constant 0 : i32
    %c0_i32_1 = arith.constant 0 : i32
    return %arg0, %c0_i32, %c0_i32_0 : i32, i32, i32
  }
  func.func @transform_5(%arg0: i32) -> (i32, i32, i32) {
    %c0_i32 = arith.constant 0 : i32
    %c0_i32_0 = arith.constant 0 : i32
    %c0_i32_1 = arith.constant 0 : i32
    return %arg0, %c0_i32, %c0_i32_0 : i32, i32, i32
  }
}

module attributes {stable_mosaic.version = 11 : i64} {
  func.func @_bn_add_relu_kernel(%arg0: i32, %arg1: memref<64x128xbf16, #tpu.memory_space<vmem>>, %arg2: memref<64x128xbf16, #tpu.memory_space<vmem>>, %arg3: memref<1x128xf32, #tpu.memory_space<vmem>>, %arg4: memref<1x128xf32, #tpu.memory_space<vmem>>, %arg5: memref<1x128xf32, #tpu.memory_space<vmem>>, %arg6: memref<1x128xf32, #tpu.memory_space<vmem>>, %arg7: memref<64x128xf32, #tpu.memory_space<vmem>>) attributes {dimension_semantics = [#tpu.dimension_semantics<parallel>], iteration_bounds = array<i64: 2>, scalar_prefetch = 0 : i64, scratch_operands = 0 : i64, tpu.core_type = #tpu.core_type<tc>, window_params = [{transform_indices = @transform_0, window_bounds = array<i64: 64, 128>}, {transform_indices = @transform_1, window_bounds = array<i64: 64, 128>}, {pipeline_mode = #tpu.pipeline_mode<synchronous>, transform_indices = @transform_2, window_bounds = array<i64: 1, 128>}, {pipeline_mode = #tpu.pipeline_mode<synchronous>, transform_indices = @transform_3, window_bounds = array<i64: 1, 128>}, {pipeline_mode = #tpu.pipeline_mode<synchronous>, transform_indices = @transform_4, window_bounds = array<i64: 1, 128>}, {pipeline_mode = #tpu.pipeline_mode<synchronous>, transform_indices = @transform_5, window_bounds = array<i64: 1, 128>}, {transform_indices = @transform_6, window_bounds = array<i64: 64, 128>}]} {
    %c0 = arith.constant 0 : index
    %c0_0 = arith.constant 0 : index
    %0 = vector.load %arg1[%c0, %c0_0] : memref<64x128xbf16, #tpu.memory_space<vmem>>, vector<64x128xbf16>
    %1 = arith.extf %0 : vector<64x128xbf16> to vector<64x128xf32>
    %c0_1 = arith.constant 0 : index
    %c0_2 = arith.constant 0 : index
    %2 = vector.load %arg2[%c0_1, %c0_2] : memref<64x128xbf16, #tpu.memory_space<vmem>>, vector<64x128xbf16>
    %3 = arith.extf %2 : vector<64x128xbf16> to vector<64x128xf32>
    %c0_3 = arith.constant 0 : index
    %c0_4 = arith.constant 0 : index
    %4 = vector.load %arg3[%c0_3, %c0_4] : memref<1x128xf32, #tpu.memory_space<vmem>>, vector<1x128xf32>
    %5 = vector.broadcast %4 : vector<1x128xf32> to vector<64x128xf32>
    %6 = arith.mulf %1, %5 : vector<64x128xf32>
    %c0_5 = arith.constant 0 : index
    %c0_6 = arith.constant 0 : index
    %7 = vector.load %arg4[%c0_5, %c0_6] : memref<1x128xf32, #tpu.memory_space<vmem>>, vector<1x128xf32>
    %8 = vector.broadcast %7 : vector<1x128xf32> to vector<64x128xf32>
    %9 = arith.addf %6, %8 : vector<64x128xf32>
    %c0_7 = arith.constant 0 : index
    %c0_8 = arith.constant 0 : index
    %10 = vector.load %arg5[%c0_7, %c0_8] : memref<1x128xf32, #tpu.memory_space<vmem>>, vector<1x128xf32>
    %11 = vector.broadcast %10 : vector<1x128xf32> to vector<64x128xf32>
    %12 = arith.mulf %3, %11 : vector<64x128xf32>
    %13 = arith.addf %9, %12 : vector<64x128xf32>
    %c0_9 = arith.constant 0 : index
    %c0_10 = arith.constant 0 : index
    %14 = vector.load %arg6[%c0_9, %c0_10] : memref<1x128xf32, #tpu.memory_space<vmem>>, vector<1x128xf32>
    %15 = vector.broadcast %14 : vector<1x128xf32> to vector<64x128xf32>
    %16 = arith.addf %13, %15 : vector<64x128xf32>
    %cst = arith.constant 0.000000e+00 : f32
    %17 = vector.broadcast %cst : f32 to vector<64x128xf32>
    %18 = arith.maximumf %16, %17 : vector<64x128xf32>
    %c0_11 = arith.constant 0 : index
    %c0_12 = arith.constant 0 : index
    %19 = vector.load %arg7[%c0_11, %c0_12] : memref<64x128xf32, #tpu.memory_space<vmem>>, vector<64x128xf32>
    tpu.vector_store %arg7[%c0_11, %c0_12], %18 {strides = array<i32>} : memref<64x128xf32, #tpu.memory_space<vmem>>, vector<64x128xf32>,
    return
  }
  func.func @transform_0(%arg0: i32) -> (i32, i32) {
    %c0_i32 = arith.constant 0 : i32
    %c0_i32_0 = arith.constant 0 : i32
    return %arg0, %c0_i32 : i32, i32
  }
  func.func @transform_1(%arg0: i32) -> (i32, i32) {
    %c0_i32 = arith.constant 0 : i32
    %c0_i32_0 = arith.constant 0 : i32
    return %arg0, %c0_i32 : i32, i32
  }
  func.func @transform_2(%arg0: i32) -> (i32, i32) {
    %c0_i32 = arith.constant 0 : i32
    %c0_i32_0 = arith.constant 0 : i32
    %c0_i32_1 = arith.constant 0 : i32
    return %c0_i32, %c0_i32_0 : i32, i32
  }
  func.func @transform_3(%arg0: i32) -> (i32, i32) {
    %c0_i32 = arith.constant 0 : i32
    %c0_i32_0 = arith.constant 0 : i32
    %c0_i32_1 = arith.constant 0 : i32
    return %c0_i32, %c0_i32_0 : i32, i32
  }
  func.func @transform_4(%arg0: i32) -> (i32, i32) {
    %c0_i32 = arith.constant 0 : i32
    %c0_i32_0 = arith.constant 0 : i32
    %c0_i32_1 = arith.constant 0 : i32
    return %c0_i32, %c0_i32_0 : i32, i32
  }
  func.func @transform_5(%arg0: i32) -> (i32, i32) {
    %c0_i32 = arith.constant 0 : i32
    %c0_i32_0 = arith.constant 0 : i32
    %c0_i32_1 = arith.constant 0 : i32
    return %c0_i32, %c0_i32_0 : i32, i32
  }
  func.func @transform_6(%arg0: i32) -> (i32, i32) {
    %c0_i32 = arith.constant 0 : i32
    %c0_i32_0 = arith.constant 0 : i32
    return %arg0, %c0_i32 : i32, i32
  }
}

module attributes {stable_mosaic.version = 11 : i64} {
  func.func @kernel(%arg0: i32, %arg1: memref<1x8x8x128xbf16, #tpu.memory_space<vmem>>, %arg2: memref<1x128x128xbf16, #tpu.memory_space<vmem>>, %arg3: memref<1x64x128xbf16, #tpu.memory_space<vmem>>, %arg4: memref<1x8x128xf32, #tpu.memory_space<vmem>>) attributes {dimension_semantics = [#tpu.dimension_semantics<parallel>], iteration_bounds = array<i64: 2>, scalar_prefetch = 0 : i64, scratch_operands = 0 : i64, tpu.core_type = #tpu.core_type<tc>, window_params = [{transform_indices = @transform_0, window_bounds = array<i64: 1, 8, 8, 128>}, {pipeline_mode = #tpu.pipeline_mode<synchronous>, transform_indices = @transform_1, window_bounds = array<i64: 1, 128, 128>}, {transform_indices = @transform_2, window_bounds = array<i64: 1, 64, 128>}, {transform_indices = @transform_3, window_bounds = array<i64: 1, 8, 128>}]} {
    %c0 = arith.constant 0 : index
    %c0_0 = arith.constant 0 : index
    %c0_1 = arith.constant 0 : index
    %c0_2 = arith.constant 0 : index
    %0 = vector.load %arg1[%c0, %c0_0, %c0_1, %c0_2] : memref<1x8x8x128xbf16, #tpu.memory_space<vmem>>, vector<1x8x8x128xbf16>
    %1 = vector.shape_cast %0 : vector<1x8x8x128xbf16> to vector<8x8x128xbf16>
    %2 = vector.shape_cast %1 : vector<8x8x128xbf16> to vector<64x128xbf16>
    %c0_3 = arith.constant 0 : index
    %c0_4 = arith.constant 0 : index
    %c0_5 = arith.constant 0 : index
    %3 = vector.load %arg2[%c0_3, %c0_4, %c0_5] : memref<1x128x128xbf16, #tpu.memory_space<vmem>>, vector<1x128x128xbf16>
    %4 = vector.shape_cast %3 : vector<1x128x128xbf16> to vector<128x128xbf16>
    %cst = arith.constant dense<0.000000e+00> : vector<64x128xf32>
    %5 = tpu.matmul %2, %4, %cst {dimension_numbers = #tpu.dot_dimension_numbers<[1], [0], [0], [1], [0, 0, 1, 1], [], []>} : vector<64x128xbf16>, vector<128x128xbf16>, vector<64x128xf32> -> vector<64x128xf32>
    %6 = arith.truncf %5 : vector<64x128xf32> to vector<64x128xbf16>
    %c0_6 = arith.constant 0 : index
    %c0_7 = arith.constant 0 : index
    %c0_8 = arith.constant 0 : index
    %7 = vector.load %arg3[%c0_6, %c0_7, %c0_8] : memref<1x64x128xbf16, #tpu.memory_space<vmem>>, vector<1x64x128xbf16>
    %8 = vector.shape_cast %7 : vector<1x64x128xbf16> to vector<64x128xbf16>
    %9 = vector.shape_cast %6 : vector<64x128xbf16> to vector<1x64x128xbf16>
    tpu.vector_store %arg3[%c0_6, %c0_7, %c0_8], %9 {strides = array<i32>} : memref<1x64x128xbf16, #tpu.memory_space<vmem>>, vector<1x64x128xbf16>,
    %cst_9 = arith.constant dense<0.000000e+00> : vector<128xf32>
    %10 = vector.multi_reduction <add>, %5, %cst_9 [0] : vector<64x128xf32> to vector<128xf32>
    %11 = vector.shape_cast %10 : vector<128xf32> to vector<1x128xf32>
    %12 = arith.mulf %5, %5 : vector<64x128xf32>
    %cst_10 = arith.constant dense<0.000000e+00> : vector<128xf32>
    %13 = vector.multi_reduction <add>, %12, %cst_10 [0] : vector<64x128xf32> to vector<128xf32>
    %14 = vector.shape_cast %13 : vector<128xf32> to vector<1x128xf32>
    %15 = tpu.iota {dimensions = array<i32: 0>} : vector<8x128xi32>
    %c0_i32 = arith.constant 0 : i32
    %16 = vector.broadcast %c0_i32 : i32 to vector<8x128xi32>
    %17 = arith.cmpi eq, %15, %16 : vector<8x128xi32>
    %cst_11 = arith.constant 0.000000e+00 : f32
    %18 = vector.shape_cast %11 : vector<1x128xf32> to vector<1x128xf32>
    %19 = vector.broadcast %18 : vector<1x128xf32> to vector<8x128xf32>
    %20 = vector.broadcast %cst_11 : f32 to vector<8x128xf32>
    %21 = arith.select %17, %19, %20 : vector<8x128xi1>, vector<8x128xf32>
    %c1_i32 = arith.constant 1 : i32
    %22 = vector.broadcast %c1_i32 : i32 to vector<8x128xi32>
    %23 = arith.cmpi eq, %15, %22 : vector<8x128xi32>
    %cst_12 = arith.constant 0.000000e+00 : f32
    %24 = vector.shape_cast %14 : vector<1x128xf32> to vector<1x128xf32>
    %25 = vector.broadcast %24 : vector<1x128xf32> to vector<8x128xf32>
    %26 = vector.broadcast %cst_12 : f32 to vector<8x128xf32>
    %27 = arith.select %23, %25, %26 : vector<8x128xi1>, vector<8x128xf32>
    %28 = arith.addf %21, %27 : vector<8x128xf32>
    %c0_13 = arith.constant 0 : index
    %c0_14 = arith.constant 0 : index
    %c0_15 = arith.constant 0 : index
    %29 = vector.load %arg4[%c0_13, %c0_14, %c0_15] : memref<1x8x128xf32, #tpu.memory_space<vmem>>, vector<1x8x128xf32>
    %30 = vector.shape_cast %29 : vector<1x8x128xf32> to vector<8x128xf32>
    %31 = vector.shape_cast %28 : vector<8x128xf32> to vector<1x8x128xf32>
    tpu.vector_store %arg4[%c0_13, %c0_14, %c0_15], %31 {strides = array<i32>} : memref<1x8x128xf32, #tpu.memory_space<vmem>>, vector<1x8x128xf32>,
    return
  }
  func.func @transform_0(%arg0: i32) -> (i32, i32, i32, i32) {
    %c0_i32 = arith.constant 0 : i32
    %c0_i32_0 = arith.constant 0 : i32
    %c0_i32_1 = arith.constant 0 : i32
    %c0_i32_2 = arith.constant 0 : i32
    return %arg0, %c0_i32, %c0_i32_0, %c0_i32_1 : i32, i32, i32, i32
  }
  func.func @transform_1(%arg0: i32) -> (i32, i32, i32) {
    %c0_i32 = arith.constant 0 : i32
    %c0_i32_0 = arith.constant 0 : i32
    %c0_i32_1 = arith.constant 0 : i32
    %c0_i32_2 = arith.constant 0 : i32
    return %c0_i32, %c0_i32_0, %c0_i32_1 : i32, i32, i32
  }
  func.func @transform_2(%arg0: i32) -> (i32, i32, i32) {
    %c0_i32 = arith.constant 0 : i32
    %c0_i32_0 = arith.constant 0 : i32
    %c0_i32_1 = arith.constant 0 : i32
    return %arg0, %c0_i32, %c0_i32_0 : i32, i32, i32
  }
  func.func @transform_3(%arg0: i32) -> (i32, i32, i32) {
    %c0_i32 = arith.constant 0 : i32
    %c0_i32_0 = arith.constant 0 : i32
    %c0_i32_1 = arith.constant 0 : i32
    return %arg0, %c0_i32, %c0_i32_0 : i32, i32, i32
  }
}

</mosaic_0001>

<bundles_post_ra>
// kernel: cnn_block_forward.7
= control target key start
LH: loop header
LB: loop body
LE: loop exit
PB: predicated region body
PF: predicated region fallthrough
CT: control target
= control target key end

     0   :  { %s567_s21 = smov 0   ;;  %s655_s0 = inlined_call_operand.vmem [shape: bf16[128,128], index: 0, kind: input, shape index: {}]   ;;  %s656_s1 = inlined_call_operand.vmem [shape: bf16[128,128], index: 1, kind: input, shape index: {}]   ;;  %s657_s2 = inlined_call_operand.vmem [shape: f32[1,128], index: 2, kind: input, shape index: {}]   ;;  %s658_s3 = inlined_call_operand.vmem [shape: f32[1,128], index: 3, kind: input, shape index: {}]   ;;  %s659_s4 = inlined_call_operand.vmem [shape: f32[1,128], index: 4, kind: input, shape index: {}]   ;;  %s660_s5 = inlined_call_operand.vmem [shape: f32[1,128], index: 5, kind: input, shape index: {}]   ;;  %s661_s6 = inlined_call_operand.vmem [shape: f32[128,128], index: 6, kind: output, shape index: {}]  }
   0x1 LB: > { %s461_s22 = sadd.s32 4294967295, %s530_s21   ;;  %p465_p0 = scmp.ge.s32.totalorder %s530_s21, 1  ;;  %s530_s21 = sphi %s567_s21, %s16_s21  }
   0x2   : > { %p224_p1 = scmp.lt.s32.totalorder %s530_s21, 3 }
   0x4   : > { %p225_p2 = pnand %p465_p0, %p224_p1 }
   0x5   : > { %s466_s23 = sshll.u32 (!%p225_p2), %s461_s22, 3  ;;  %v591_v0 = vld [vmem:[%s657_s2] ss:$0 sm:$0xff] (!%p225_p2) }
   0x6   : > { %228 = sbr.rel (%p225_p2) target bundleno = 42 (0x2a), region = 44  ;;  %p260_p3 = scmp.lt.s32.totalorder (!%p225_p2), %s466_s23, 15  ;;  %v596_v1 = vld [vmem:[%s659_s4] ss:$0 sm:$0xff] (!%p225_p2) }
   0x7   : > { %v605_v10 = vld [vmem:[%s658_s3] ss:$0 sm:$0xff] (!%p225_p2) }
   0x8   : > { %v475_v29 = vld [vmem:[%s660_s5] ss:$0 sm:$0xff] (!%p225_p2) }
   0xd   : > { %s663_s23 = smov (!%p260_p3, %s466_s23), 15 }
   0xe   : > { %s467_s24 = sshll.u32 %s663_s23, 2  ;;  %s471_s15 = sshll.u32 %s663_s23, 3 }
   0xf   : > { %s581_s27 = scalar_lea.vmem %s655_s0, %s467_s24  ;;  %s586_s30 = scalar_lea.vmem %s656_s1, %s467_s24 }
  0x10   : > { %v479_v2 = vld [vmem:[%s581_s27] sm:$0xff]   ;;  %v510_v4 = vld [vmem:[%s581_s27 + $0x8] sm:$0xff]   ;;  %v511_v15 = vld [vmem:[%s581_s27 + $0x10] sm:$0xff]   ;;  %s635_s18 = scalar_lea.vmem %s661_s6, %s471_s15 }
  0x11   : > { %v495_v3 = vld [vmem:[%s586_s30] sm:$0xff]   ;;  %v480_v5 = vunpack.c.l.bf16 %v479_v2  ;;  %v481_v7 = vunpack.c.h.bf16 %v479_v2  ;;  %v513_v9 = vld [vmem:[%s586_s30 + $0x8] sm:$0xff]   ;;  %v484_v11 = vunpack.c.l.bf16 %v510_v4  ;;  %v485_v13 = vunpack.c.h.bf16 %v510_v4  ;;  %v514_v16 = vld [vmem:[%s586_s30 + $0x10] sm:$0xff]  }
  0x12   : > { %v496_v6 = vunpack.c.l.bf16 %v495_v3  ;;  %v497_v8 = vunpack.c.h.bf16 %v495_v3  ;;  %v500_v12 = vunpack.c.l.bf16 %v513_v9  ;;  %v501_v14 = vunpack.c.h.bf16 %v513_v9  ;;  %v512_v34 = vld [vmem:[%s581_s27 + $0x18] sm:$0xff]  }
  0x13   : > { %v316_v17 = vmul.f32 %v480_v5, %v591_v0  ;;  %v317_v19 = vmul.f32 %v481_v7, %v591_v0  ;;  %v318_v21 = vmul.f32 %v484_v11, %v591_v0  ;;  %v319_v23 = vmul.f32 %v485_v13, %v591_v0  ;;  %v515_v39 = vld [vmem:[%s586_s30 + $0x18] sm:$0xff]  }
  0x14   : > { %v346_v18 = vmul.f32 %v496_v6, %v596_v1  ;;  %v347_v20 = vmul.f32 %v497_v8, %v596_v1  ;;  %v348_v22 = vmul.f32 %v500_v12, %v596_v1  ;;  %v349_v24 = vmul.f32 %v501_v14, %v596_v1 }
  0x15   : > { %v331_v25 = vadd.f32 %v605_v10, %v316_v17  ;;  %v332_v26 = vadd.f32 %v605_v10, %v317_v19  ;;  %v488_v27 = vunpack.c.l.bf16 %v511_v15  ;;  %v504_v28 = vunpack.c.l.bf16 %v514_v16 }
  0x16   : > { %v333_v30 = vadd.f32 %v605_v10, %v318_v21  ;;  %v334_v31 = vadd.f32 %v605_v10, %v319_v23  ;;  %v489_v32 = vunpack.c.h.bf16 %v511_v15  ;;  %v505_v33 = vunpack.c.h.bf16 %v514_v16 }
  0x17   : > { %v354_v35 = vadd.f32 %v346_v18, %v331_v25  ;;  %v355_v36 = vadd.f32 %v347_v20, %v332_v26  ;;  %v320_v37 = vmul.f32 %v488_v27, %v591_v0  ;;  %v350_v38 = vmul.f32 %v504_v28, %v596_v1 }
  0x18   : > { %v356_v40 = vadd.f32 %v348_v22, %v333_v30  ;;  %v357_v41 = vadd.f32 %v349_v24, %v334_v31  ;;  %v321_v42 = vmul.f32 %v489_v32, %v591_v0  ;;  %v351_v43 = vmul.f32 %v505_v33, %v596_v1 }
  0x19   : > { %v369_v44 = vadd.f32 %v475_v29, %v354_v35  ;;  %v370_v45 = vadd.f32 %v475_v29, %v355_v36  ;;  %v335_v46 = vadd.f32 %v605_v10, %v320_v37  ;;  %v492_v47 = vunpack.c.l.bf16 %v512_v34 }
  0x1a   : > { %v371_v48 = vadd.f32 %v475_v29, %v356_v40  ;;  %v372_v49 = vadd.f32 %v475_v29, %v357_v41  ;;  %v336_v50 = vadd.f32 %v605_v10, %v321_v42  ;;  %v508_v51 = vunpack.c.l.bf16 %v515_v39 }
  0x1b   : > { %v377_v52 = vmax.f32 %v369_v44, 0.0  ;;  %v378_v53 = vmax.f32 %v370_v45, 0.0  ;;  %v358_v54 = vadd.f32 %v350_v38, %v335_v46  ;;  %v322_v55 = vmul.f32 %v492_v47, %v591_v0 }
  0x1c   : > { %v379_v56 = vmax.f32 %v371_v48, 0.0  ;;  %v380_v57 = vmax.f32 %v372_v49, 0.0  ;;  %v359_v58 = vadd.f32 %v351_v43, %v336_v50  ;;  %v352_v59 = vmul.f32 %v508_v51, %v596_v1 }
  0x1d   : > { %385 = vst [vmem:[%s635_s18] sm:$0xff] %v377_v52  ;;  %386 = vst [vmem:[%s635_s18 + $0x8] sm:$0xff] %v378_v53  ;;  %v373_v60 = vadd.f32 %v475_v29, %v358_v54  ;;  %v337_v61 = vadd.f32 %v605_v10, %v322_v55  ;;  %v493_v62 = vunpack.c.h.bf16 %v512_v34  ;;  %v509_v63 = vunpack.c.h.bf16 %v515_v39 }
  0x1e   : > { %387 = vst [vmem:[%s635_s18 + $0x10] sm:$0xff] %v379_v56  ;;  %388 = vst [vmem:[%s635_s18 + $0x18] sm:$0xff] %v380_v57  ;;  %v374_v2 = vadd.f32 %v475_v29, %v359_v58 }
  0x1f   : > { %v381_v3 = vmax.f32 %v373_v60, 0.0  ;;  %v360_v4 = vadd.f32 %v352_v59, %v337_v61  ;;  %v323_v5 = vmul.f32 %v493_v62, %v591_v0  ;;  %v353_v6 = vmul.f32 %v509_v63, %v596_v1 }
  0x20   : > { %v382_v7 = vmax.f32 %v374_v2, 0.0 }
  0x21   : > { %389 = vst [vmem:[%s635_s18 + $0x20] sm:$0xff] %v381_v3  ;;  %v375_v8 = vadd.f32 %v475_v29, %v360_v4  ;;  %v338_v9 = vadd.f32 %v605_v10, %v323_v5 }
  0x22   : > { %390 = vst [vmem:[%s635_s18 + $0x28] sm:$0xff] %v382_v7 }
  0x23   : > { %v383_v11 = vmax.f32 %v375_v8, 0.0  ;;  %v361_v12 = vadd.f32 %v353_v6, %v338_v9 }
  0x25   : > { %391 = vst [vmem:[%s635_s18 + $0x30] sm:$0xff] %v383_v11  ;;  %v376_v13 = vadd.f32 %v475_v29, %v361_v12 }
  0x27   : > { %v384_v14 = vmax.f32 %v376_v13, 0.0 }
  0x29   : > { %392 = vst [vmem:[%s635_s18 + $0x38] sm:$0xff] %v384_v14 }
  0x2a PF: > { %s16_s21 = sadd.s32 1, %s530_s21  }
  0x2b   : > { %p13_p4 = scmp.ge.s32.totalorder %s16_s21, 4  }
  0x2d   :  { %15 = sbr.rel (!%p13_p4) target bundleno = 1 (0x1), region = 77 }

// kernel: cnn_block_forward.6
= control target key start
LH: loop header
LB: loop body
LE: loop exit
PB: predicated region body
PF: predicated region fallthrough
CT: control target
= control target key end

     0   :  { %s677_s12 = smov 0   ;;  %s735_s0 = inlined_call_operand.vmem [shape: bf16[2,8,8,128], index: 0, kind: input, shape index: {}]   ;;  %s736_s1 = inlined_call_operand.vmem [shape: bf16[1,128,128], index: 1, kind: input, shape index: {}]   ;;  %s737_s2 = inlined_call_operand.vmem [shape: bf16[2,64,128], index: 2, kind: output, shape index: {0}]   ;;  %s738_s3 = inlined_call_operand.vmem [shape: f32[2,8,128], index: 3, kind: output, shape index: {1}]  }
   0x1 LB: > { %s512_s13 = sadd.s32 4294967295, %s655_s12   ;;  %p516_p0 = scmp.ge.s32.totalorder %s655_s12, 1  ;;  %s655_s12 = sphi %s677_s12, %s14_s12  }
   0x2   : > { %p140_p1 = scmp.lt.s32.totalorder %s655_s12, 3 }
   0x4   : > { %p141_p2 = pnand %p516_p0, %p140_p1 }
   0x5   : > { %v637_v0 = vld [vmem:[%s736_s1] sm:$0xff] (!%p141_p2)   ;;  %p168_p3 = scmp.lt.s32.totalorder (!%p141_p2), %s512_s13, 1  ;;  %v638_v1 = vld [vmem:[%s736_s1 + $0x8] sm:$0xff] (!%p141_p2)   ;;  %v639_v2 = vld [vmem:[%s736_s1 + $0x10] sm:$0xff] (!%p141_p2)   ;;  %v418_v49 = vlaneseq (!%p141_p2) }
   0x6   : > { %144 = sbr.rel (%p141_p2) target bundleno = 285 (0x11d), region = 28  ;;  %589 = vmatprep.subr.bf16.mxu0 (!%p141_p2), %v637_v0  ;;  %613 = vmatprep.subr.bf16.mxu1 (!%p141_p2), %v637_v0  ;;  %v640_v3 = vld [vmem:[%s736_s1 + $0x18] sm:$0xff] (!%p141_p2)   ;;  %v641_v6 = vld [vmem:[%s736_s1 + $0x20] sm:$0xff] (!%p141_p2)   ;;  %v642_v7 = vld [vmem:[%s736_s1 + $0x28] sm:$0xff] (!%p141_p2)  }
   0x7   : > { %590 = vmatpush3.bf16.msra.mxu0 (!%p141_p2), %v637_v0  ;;  %621 = vmatpush3.bf16.msra.mxu1 (!%p141_p2), %v637_v0  ;;  %v643_v8 = vld [vmem:[%s736_s1 + $0x30] sm:$0xff] (!%p141_p2)   ;;  %v644_v9 = vld [vmem:[%s736_s1 + $0x38] sm:$0xff] (!%p141_p2)   ;;  %v419_v54 = vshrl.u32 (!%p141_p2), %v418_v49, 7 }
   0x8   : > { %591 = vmatprep.subr.bf16.mxu0 (!%p141_p2), %v638_v1  ;;  %614 = vmatprep.subr.bf16.mxu1 (!%p141_p2), %v638_v1 }
   0x9   : > { %vm420_vm0 = vcmp.eq.s32.totalorder (!%p141_p2), %v419_v54, 0  ;;  %vm422_vm1 = vcmp.eq.s32.totalorder (!%p141_p2), %v419_v54, 1 }
   0xb   : > { %592 = vmatpush3.bf16.msra.mxu0 (!%p141_p2), %v638_v1  ;;  %622 = vmatpush3.bf16.msra.mxu1 (!%p141_p2), %v638_v1 }
   0xc   : > { %593 = vmatprep.subr.bf16.mxu0 (!%p141_p2), %v639_v2  ;;  %615 = vmatprep.subr.bf16.mxu1 (!%p141_p2), %v639_v2 }
   0xd   : > { %s740_s13 = smov (!%p168_p3, %s512_s13), 1 }
   0xe   : > { %s544_s20 = sshll.u32 %s740_s13, 5  ;;  %s521_s10 = sshll.u32 %s740_s13, 3 }
   0xf   : > { %s702_s23 = scalar_lea.vmem %s735_s0, %s544_s20  ;;  %594 = vmatpush3.bf16.msra.mxu0 %v639_v2  ;;  %623 = vmatpush3.bf16.msra.mxu1 %v639_v2  ;;  %s177_s9 = scalar_lea.vmem %s737_s2, %s544_s20 }
  0x10   : > { %v645_v4 = vld [vmem:[%s702_s23] sm:$0xff]   ;;  %v647_v5 = vld [vmem:[%s702_s23 + $0x10] sm:$0xff]   ;;  %595 = vmatprep.subr.bf16.mxu0 %v640_v3  ;;  %616 = vmatprep.subr.bf16.mxu1 %v640_v3  ;;  %v646_v10 = vld [vmem:[%s702_s23 + $0x8] sm:$0xff]   ;;  %s181_s15 = scalar_lea.vmem %s738_s3, %s521_s10 }
  0x11   : > { %605 = vmatprep.mubr.bf16.mxu0 %v645_v4  ;;  %609 = vmatprep.mubr.bf16.mxu1 %v647_v5  ;;  %v648_v11 = vld [vmem:[%s702_s23 + $0x18] sm:$0xff]  }
  0x13   : > { %596 = vmatpush3.bf16.msra.mxu0 %v640_v3  ;;  %624 = vmatpush3.bf16.msra.mxu1 %v640_v3 }
  0x14   : > { %597 = vmatprep.subr.bf16.mxu0 %v641_v6  ;;  %617 = vmatprep.subr.bf16.mxu1 %v641_v6 }
  0x17   : > { %598 = vmatpush3.bf16.msra.mxu0 %v641_v6  ;;  %625 = vmatpush3.bf16.msra.mxu1 %v641_v6 }
  0x18   : > { %599 = vmatprep.subr.bf16.mxu0 %v642_v7  ;;  %618 = vmatprep.subr.bf16.mxu1 %v642_v7 }
  0x1b   : > { %600 = vmatpush3.bf16.msra.mxu0 %v642_v7  ;;  %626 = vmatpush3.bf16.msra.mxu1 %v642_v7 }
  0x1c   : > { %601 = vmatprep.subr.bf16.mxu0 %v643_v8  ;;  %619 = vmatprep.subr.bf16.mxu1 %v643_v8 }
  0x1f   : > { %602 = vmatpush3.bf16.msra.mxu0 %v643_v8  ;;  %627 = vmatpush3.bf16.msra.mxu1 %v643_v8 }
  0x20   : > { %603 = vmatprep.subr.bf16.mxu0 %v644_v9  ;;  %620 = vmatprep.subr.bf16.mxu1 %v644_v9 }
  0x23   : > { %604 = vmatpush3.bf16.msra.mxu0 %v644_v9  ;;  %628 = vmatpush3.bf16.msra.mxu1 %v644_v9 }
  0x26   : > { %606 = vmatmul.mubr.bf16.vlgmr.msra.gmra.mrb[0].mxu0 %v646_v10  ;;  %610 = vmatmul.mubr.bf16.vlgmr.msra.gmra.mrb[0].mxu1 %v648_v11 }
  0xf9   : > { %v607_v12 = vpop.f32.mrb[0].mxu0  ;;  %v611_v13 = vpop.f32.mrb[0].mxu1 }
  0xfa   : > { %v313_v14 = vpop.f32.mrb[1].mxu0  ;;  %v329_v15 = vpop.f32.mrb[1].mxu1  ;;  %v399_v27 = vmul.f32 %v607_v12, %v607_v12  ;;  %v403_v39 = vmul.f32 %v611_v13, %v611_v13 }
  0xfb   : > { %v608_v16 = vpop.f32.mrb[2].mxu0  ;;  %v612_v17 = vpop.f32.mrb[2].mxu1  ;;  %v397_v18 = vmul.f32 %v313_v14, %v313_v14  ;;  %v401_v33 = vmul.f32 %v329_v15, %v329_v15 }
  0xfc   : > { %v562_v19 = vpack.c.bf16 %v608_v16, %v607_v12  ;;  %v316_v20 = vpop.f32.mrb[3].mxu0  ;;  %v572_v21 = vpack.c.bf16 %v612_v17, %v611_v13  ;;  %v332_v22 = vpop.f32.mrb[3].mxu1  ;;  %v400_v30 = vmul.f32 %v608_v16, %v608_v16  ;;  %v404_v42 = vmul.f32 %v612_v17, %v612_v17 }
  0xfd   : > { %v557_v23 = vpack.c.bf16 %v316_v20, %v313_v14  ;;  %v384_v24 = vadd.f32 %v316_v20, %v313_v14  ;;  %v398_v25 = vmul.f32 %v316_v20, %v316_v20  ;;  %v567_v26 = vpack.c.bf16 %v332_v22, %v329_v15 }
  0xfe   : > { %574 = vst [vmem:[%s177_s9 + $0x8] sm:$0xff] %v562_v19   ;;  %576 = vst [vmem:[%s177_s9 + $0x18] sm:$0xff] %v572_v21   ;;  %v402_v38 = vmul.f32 %v332_v22, %v332_v22 }
  0xff   : > { %558 = vst [vmem:[%s177_s9] sm:$0xff] %v557_v23   ;;  %v385_v28 = vadd.f32 %v607_v12, %v384_v24  ;;  %v405_v29 = vadd.f32 %v398_v25, %v397_v18  ;;  %575 = vst [vmem:[%s177_s9 + $0x10] sm:$0xff] %v567_v26  }
 0x101   : > { %v406_v31 = vadd.f32 %v405_v29, %v399_v27  ;;  %v386_v32 = vadd.f32 %v608_v16, %v385_v28 }
 0x103   : > { %v387_v34 = vadd.f32 %v386_v32, %v329_v15  ;;  %v407_v35 = vadd.f32 %v406_v31, %v400_v30 }
 0x105   : > { %v408_v36 = vadd.f32 %v407_v35, %v401_v33  ;;  %v388_v37 = vadd.f32 %v387_v34, %v332_v22 }
 0x107   : > { %v389_v40 = vadd.f32 %v611_v13, %v388_v37  ;;  %v409_v41 = vadd.f32 %v408_v36, %v402_v38 }
 0x109   : > { %v390_v43 = vadd.f32 %v612_v17, %v389_v40  ;;  %v410_v44 = vadd.f32 %v409_v41, %v403_v39 }
 0x10b   : > { %v391_v45 = vrot.slane %v390_v43, 4  ;;  %v411_v46 = vadd.f32 %v410_v44, %v404_v42 }
 0x10d   : > { %v392_v47 = vadd.f32 %v391_v45, %v390_v43  ;;  %v412_v48 = vrot.slane %v411_v46, 4 }
 0x10f   : > { %v393_v50 = vrot.slane %v392_v47, 2  ;;  %v413_v51 = vadd.f32 %v412_v48, %v411_v46 }
 0x111   : > { %v394_v52 = vadd.f32 %v393_v50, %v392_v47  ;;  %v414_v53 = vrot.slane %v413_v51, 2 }
 0x113   : > { %v395_v55 = vrot.slane %v394_v52, 1  ;;  %v415_v56 = vadd.f32 %v414_v53, %v413_v51 }
 0x115   : > { %v396_v57 = vadd.f32 %v395_v55, %v394_v52  ;;  %v416_v58 = vrot.slane %v415_v56, 1 }
 0x117   : > { %v417_v59 = vadd.f32 %v416_v58, %v415_v56  ;;  %v421_v60 = vsel %vm420_vm0, %v396_v57, 0.0 }
 0x119   : > { %v423_v61 = vsel %vm422_vm1, %v417_v59, 0.0 }
 0x11a   : > { %v424_v62 = vadd.f32 %v423_v61, %v421_v60 }
 0x11c   : > { %425 = vst [vmem:[%s181_s15] sm:$0xff] %v424_v62 }
 0x11d PF: > { %s14_s12 = sadd.s32 1, %s655_s12  }
 0x11e   : > { %p11_p4 = scmp.ge.s32.totalorder %s14_s12, 4  }
 0x120   :  { %13 = sbr.rel (!%p11_p4) target bundleno = 1 (0x1), region = 70 }

// kernel: cnn_block_forward.5
= control target key start
LH: loop header
LB: loop body
LE: loop exit
PB: predicated region body
PF: predicated region fallthrough
CT: control target
= control target key end

     0   :  { %s2993_s18 = smov 0   ;;  %s3659_s0 = inlined_call_operand.vmem [shape: bf16[2,10,10,128], index: 0, kind: input, shape index: {}]   ;;  %s3660_s1 = inlined_call_operand.vmem [shape: bf16[9,128,128], index: 1, kind: input, shape index: {}]   ;;  %s3661_s2 = inlined_call_operand.vmem [shape: f32[1,128], index: 2, kind: input, shape index: {}]   ;;  %s3662_s3 = inlined_call_operand.vmem [shape: f32[1,128], index: 3, kind: input, shape index: {}]   ;;  %s3663_s4 = inlined_call_operand.vmem [shape: bf16[2,64,128], index: 4, kind: output, shape index: {0}]   ;;  %s3664_s5 = inlined_call_operand.vmem [shape: f32[2,8,128], index: 5, kind: output, shape index: {1}]  }
   0x1 LB: > { %s2105_s19 = sadd.s32 4294967295, %s2960_s18   ;;  %p2109_p0 = scmp.ge.s32.totalorder %s2960_s18, 1  ;;  %s2960_s18 = sphi %s2993_s18, %s16_s18  }
   0x2   : > { %p190_p1 = scmp.lt.s32.totalorder %s2960_s18, 3 }
   0x4   : > { %p191_p2 = pnand %p2109_p0, %p190_p1 }
   0x5   : > { %v2882_v0 = vld [vmem:[%s3660_s1 + $0x40] sm:$0xff] (!%p191_p2)   ;;  %p222_p3 = scmp.lt.s32.totalorder (!%p191_p2), %s2105_s19, 1  ;;  %v2884_v2 = vld [vmem:[%s3660_s1 + $0x48] sm:$0xff] (!%p191_p2)   ;;  %v351_v4 = vlaneseq (!%p191_p2)  ;;  %v2886_v5 = vld [vmem:[%s3660_s1 + $0x50] sm:$0xff] (!%p191_p2)   ;;  %v2962_v6 = vmov (!%p191_p2), 0.0|0.0   ;;  %vm842_vm5 = vcmask (!%p191_p2), 1042432  }
   0x6   : > { %194 = sbr.rel (%p191_p2) target bundleno = 436 (0x1b4), region = 36  ;;  %v2883_v1 = vld [vmem:[%s3660_s1 + $0x100] sm:$0xff] (!%p191_p2)   ;;  %2576 = vmatprep.subr.bf16.mxu1 (!%p191_p2), %v2882_v0  ;;  %v2885_v3 = vld [vmem:[%s3660_s1 + $0x108] sm:$0xff] (!%p191_p2)   ;;  %v3020_v7 = vcombine.low (!%p191_p2), %v2962_v6, %v2962_v6  ;;  %v2887_v8 = vld [vmem:[%s3660_s1 + $0x110] sm:$0xff] (!%p191_p2)   ;;  %v3033_v11 = vcombine.high (!%p191_p2), %v2962_v6, %v2962_v6  ;;  %vm460_vm2 = vsmask.f32 (!%p191_p2), 3328 }
   0x7   : > { %2672 = vmatprep.subr.bf16.mxu0 (!%p191_p2), %v2883_v1  ;;  %2577 = vmatpush3.bf16.msra.mxu1 (!%p191_p2), %v2882_v0  ;;  %v3026_v9 = vshrl.u32 (!%p191_p2), %v351_v4, 7  ;;  %v2888_v10 = vld [vmem:[%s3660_s1 + $0x58] sm:$0xff] (!%p191_p2)   ;;  %v2890_v18 = vld [vmem:[%s3660_s1 + $0x60] sm:$0xff] (!%p191_p2)   ;;  %v2892_v22 = vld [vmem:[%s3660_s1 + $0x68] sm:$0xff] (!%p191_p2)   ;;  %vm461_vm3 = vsmask.f32 (!%p191_p2), 7440 }
   0x8   : > { %2673 = vmatpush3.bf16.msra.mxu0 (!%p191_p2), %v2883_v1  ;;  %2578 = vmatprep.subr.bf16.mxu1 (!%p191_p2), %v2884_v2  ;;  %v464_v12 = vshrl.u32 (!%p191_p2), %v3020_v7, 16  ;;  %v2889_v13 = vld [vmem:[%s3660_s1 + $0x118] sm:$0xff] (!%p191_p2)   ;;  %v467_v14 = vshll.u32 (!%p191_p2), %v3020_v7, 16  ;;  %v473_v19 = vshll.u32 (!%p191_p2), %v3033_v11, 16  ;;  %v2891_v20 = vld [vmem:[%s3660_s1 + $0x120] sm:$0xff] (!%p191_p2)   ;;  %v2893_v23 = vld [vmem:[%s3660_s1 + $0x128] sm:$0xff] (!%p191_p2)  }
   0x9   : > { %2674 = vmatprep.subr.bf16.mxu0 (!%p191_p2), %v2885_v3  ;;  %v3041_v15 = vadd.s32 (!%p191_p2), 8, %v3026_v9  ;;  %vm354_vm0 = vcmp.ge.s32.totalorder (!%p191_p2), %v3026_v9, 1  ;;  %v3069_v33 = vld [vmem:[%s3661_s2] ss:$0 sm:$0xff] (!%p191_p2)  ;;  %v2894_v35 = vld [vmem:[%s3660_s1 + $0x70] sm:$0xff] (!%p191_p2)   ;;  %vm3083_vm4 = vmor (!%p191_p2), %vm460_vm2, %vm461_vm3  ;;  %vm843_vm6 = vcmask (!%p191_p2), 1046532  }
   0xa   : > { %v466_v16 = vrot.slane (!%p191_p2), %v464_v12, 4  ;;  %v469_v17 = vrot.slane (!%p191_p2), %v467_v14, 5  ;;  %v475_v25 = vrot.slane (!%p191_p2), %v473_v19, 5  ;;  %v3074_v34 = vld [vmem:[%s3662_s3] ss:$0 sm:$0xff] (!%p191_p2)  ;;  %v2895_v47 = vld [vmem:[%s3660_s1 + $0x130] sm:$0xff] (!%p191_p2)   ;;  %vm3355_vm7 = vmor (!%p191_p2), %vm842_vm5, %vm843_vm6 }
   0xb   : > { %2579 = vmatpush3.bf16.msra.mxu1 (!%p191_p2), %v2884_v2  ;;  %vm361_vm1 = vcmp.le.s32.totalorder (!%p191_p2), %v3041_v15, 8  ;;  %v2896_v57 = vld [vmem:[%s3660_s1 + $0x78] sm:$0xff] (!%p191_p2)   ;;  %vm3436_vm8 = vmpackc.low (!%p191_p2), %vm354_vm0, %vm354_vm0  ;;  %vm2013_vm9 = vcmp.eq.s32.totalorder (!%p191_p2), %v3026_v9, 0  ;;  %vm2015_vm10 = vcmp.eq.s32.totalorder (!%p191_p2), %v3026_v9, 1 }
   0xc   : > { %2675 = vmatpush3.bf16.msra.mxu0 (!%p191_p2), %v2885_v3  ;;  %2580 = vmatprep.subr.bf16.mxu1 (!%p191_p2), %v2886_v5  ;;  %v470_v21 = vor.u32 (!%p191_p2), %v469_v17, %v466_v16  ;;  %v2897_v58 = vld [vmem:[%s3660_s1 + $0x138] sm:$0xff] (!%p191_p2)  }
   0xd   : > { %s3672_s19 = smov (!%p222_p3, %s2105_s19), 1  ;;  %2676 = vmatprep.subr.bf16.mxu0 %v2887_v8 }
   0xe   : > { %s2872_s7 = smul.u32 80, %s3672_s19  ;;  %v471_v24 = vrot.slane %v470_v21, 4  ;;  %s2383_s9 = sshll.u32 %s3672_s19, 5 }
   0xf   : > { %2581 = vmatpush3.bf16.msra.mxu1 %v2886_v5  ;;  %s231_s12 = scalar_lea.vmem %s3663_s4, %s2383_s9  ;;  %s2113_s13 = sshll.u32 %s3672_s19, 3 }
  0x10   : > { %2677 = vmatpush3.bf16.msra.mxu0 %v2887_v8  ;;  %2582 = vmatprep.subr.bf16.mxu1 %v2888_v10  ;;  %s3053_s20 = scalar_lea.vmem %s3659_s0, %s2872_s7  ;;  %v3090_v42 = vsel %vm3083_vm4, %v471_v24, %v475_v25  ;;  %v3170_v24 = vld [vmem:[%s3660_s1] sm:$0xff]   ;;  %s235_s16 = scalar_lea.vmem %s3664_s5, %s2113_s13 }
  0x11   : > { %2678 = vmatprep.subr.bf16.mxu0 %v2889_v13  ;;  %v239_v26 = vld [vmem:[%s3053_s20 + $0x8] ss:$56 sps:$4 sm:$0xff]   ;;  %v240_v27 = vld [vmem:[%s3053_s20 + $0xc] sm:$0x1]  ;;  %v254_v28 = vld [vmem:[%s3053_s20 + $0x44] sm:$0x1] }
  0x12   : > { %v259_v29 = vunpack.c.l.bf16 %v239_v26  ;;  %v260_v30 = vunpack.c.l.bf16 %v240_v27  ;;  %v273_v31 = vunpack.c.h.bf16 %v239_v26  ;;  %v274_v32 = vunpack.c.l.bf16 %v254_v28  ;;  %v241_v41 = vld [vmem:[%s3053_s20 + $0x10] ss:$8 sps:$4 sm:$0xff]   ;;  %v242_v43 = vld [vmem:[%s3053_s20 + $0x14] sm:$0x1]  ;;  %v244_v44 = vld [vmem:[%s3053_s20 + $0x1c] sm:$0x1] }
  0x13   : > { %2583 = vmatpush3.bf16.msra.mxu1 %v2888_v10  ;;  %v261_v45 = vunpack.c.l.bf16 %v241_v41  ;;  %v263_v46 = vunpack.c.h.bf16 %v241_v41  ;;  %v3106_v52 = vld [vmem:[%s3053_s20 + $0x20] ss:$8 sps:$4 sm:$0xff]   ;;  %v262_v53 = vunpack.c.l.bf16 %v242_v43  ;;  %v264_v54 = vunpack.c.l.bf16 %v244_v44 }
  0x14   : > { %2679 = vmatpush3.bf16.msra.mxu0 %v2889_v13  ;;  %2584 = vmatprep.subr.bf16.mxu1 %v2890_v18  ;;  %v286_v36 = vmul.f32 %v3069_v33, %v259_v29  ;;  %v287_v37 = vmul.f32 %v3069_v33, %v260_v30  ;;  %v300_v38 = vmul.f32 %v3069_v33, %v273_v31  ;;  %v265_v2 = vunpack.c.l.bf16 %v3106_v52  ;;  %v3175_v25 = vld [vmem:[%s3660_s1 + $0x140] sm:$0xff]  }
  0x15   : > { %2680 = vmatprep.subr.bf16.mxu0 %v2891_v20  ;;  %v301_v39 = vmul.f32 %v3069_v33, %v274_v32  ;;  %v288_v55 = vmul.f32 %v3069_v33, %v261_v45  ;;  %v290_v56 = vmul.f32 %v3069_v33, %v263_v46  ;;  %v289_v63 = vmul.f32 %v3069_v33, %v262_v53 }
  0x16   : > { %v3098_v48 = vadd.f32 %v3074_v34, %v286_v36  ;;  %v314_v49 = vadd.f32 %v3074_v34, %v287_v37  ;;  %v3102_v50 = vadd.f32 %v3074_v34, %v300_v38  ;;  %v291_v0 = vmul.f32 %v3069_v33, %v264_v54 }
  0x17   : > { %2585 = vmatpush3.bf16.msra.mxu1 %v2890_v18  ;;  %v328_v51 = vadd.f32 %v3074_v34, %v301_v39  ;;  %v315_v1 = vadd.f32 %v3074_v34, %v288_v55  ;;  %v316_v16 = vadd.f32 %v3074_v34, %v289_v63  ;;  %v317_v17 = vadd.f32 %v3074_v34, %v290_v56 }
  0x18   : > { %2681 = vmatpush3.bf16.msra.mxu0 %v2891_v20  ;;  %2586 = vmatprep.subr.bf16.mxu1 %v2892_v22  ;;  %v333_v59 = vmax.f32 %v3098_v48, 0.0  ;;  %v334_v60 = vmax.f32 %v314_v49, 0.0  ;;  %v347_v61 = vmax.f32 %v3102_v50, 0.0  ;;  %v318_v18 = vadd.f32 %v3074_v34, %v291_v0  ;;  %v2913_v50 = vld [vmem:[%s3660_s1 + $0x178] sm:$0xff]  }
  0x19   : > { %2682 = vmatprep.subr.bf16.mxu0 %v2893_v23  ;;  %v348_v62 = vmax.f32 %v328_v51, 0.0  ;;  %v3161_v19 = vmax.f32 %v315_v1, 0.0  ;;  %v336_v28 = vmax.f32 %v316_v16, 0.0  ;;  %v3179_v29 = vmax.f32 %v317_v17, 0.0 }
  0x1a   : > { %v3126_v3 = vsel %vm354_vm0, %v333_v59, 0.0  ;;  %v3130_v4 = vsel %vm361_vm1, %v334_v60, 0.0  ;;  %v3136_v5 = vsel %vm354_vm0, %v347_v61, 0.0  ;;  %v338_v38 = vmax.f32 %v318_v18, 0.0 }
  0x1b   : > { %2587 = vmatpush3.bf16.msra.mxu1 %v2892_v22  ;;  %v3140_v8 = vsel %vm361_vm1, %v348_v62, 0.0  ;;  %v3144_v10 = vpack.c.bf16 %v3126_v3, %v3126_v3  ;;  %v3148_v12 = vpack.c.bf16 %v3130_v4, %v3130_v4  ;;  %v3152_v13 = vpack.c.bf16 %v3136_v5, %v3136_v5 }
  0x1c   : > { %2683 = vmatpush3.bf16.msra.mxu0 %v2893_v23  ;;  %2588 = vmatprep.subr.bf16.mxu1 %v2894_v35  ;;  %v3156_v14 = vpack.c.bf16 %v3140_v8, %v3140_v8  ;;  %v378_v39 = vsel %vm354_vm0, %v3161_v19, 0.0  ;;  %v379_v43 = vsel %vm361_vm1, %v336_v28, 0.0  ;;  %v380_v44 = vsel %vm354_vm0, %v3179_v29, 0.0 }
  0x1d   : > { %2684 = vmatprep.subr.bf16.mxu0 %v2895_v47  ;;  %v478_v20 = vshrl.u32 %v3144_v10, 16  ;;  %v481_v21 = vshll.u32 %v3144_v10, 16  ;;  %v487_v22 = vshll.u32 %v3148_v12, 16  ;;  %v1183_v23 = vshrl.u32 %v3152_v13, 16 }
  0x1e   : > { %v1186_v26 = vshll.u32 %v3152_v13, 16  ;;  %v1192_v27 = vshll.u32 %v3156_v14, 16  ;;  %v3190_v45 = vpack.c.bf16 %v378_v39, %v378_v39  ;;  %v3194_v49 = vpack.c.bf16 %v379_v43, %v379_v43 }
  0x1f   : > { %2589 = vmatpush3.bf16.msra.mxu1 %v2894_v35  ;;  %v480_v30 = vrot.slane %v478_v20, 4  ;;  %v483_v31 = vrot.slane %v481_v21, 5  ;;  %v489_v32 = vrot.slane %v487_v22, 5  ;;  %v1185_v35 = vrot.slane %v1183_v23, 4  ;;  %v248_v23 = vld [vmem:[%s3053_s20 + $0x2c] sm:$0x1] }
  0x20   : > { %2685 = vmatpush3.bf16.msra.mxu0 %v2895_v47  ;;  %2590 = vmatprep.subr.bf16.mxu1 %v2896_v57  ;;  %v1188_v36 = vrot.slane %v1186_v26, 5  ;;  %v1194_v37 = vrot.slane %v1192_v27, 5  ;;  %v381_v47 = vsel %vm361_vm1, %v338_v38, 0.0  ;;  %v3196_v51 = vpack.c.bf16 %v380_v44, %v380_v44  ;;  %v250_v38 = vld [vmem:[%s3053_s20 + $0x34] sm:$0x1] }
  0x21   : > { %2686 = vmatprep.subr.bf16.mxu0 %v2897_v58  ;;  %v484_v41 = vor.u32 %v483_v31, %v480_v30  ;;  %v3199_v54 = vpack.c.bf16 %v381_v47, %v381_v47  ;;  %v492_v55 = vshrl.u32 %v3190_v45, 16  ;;  %v495_v56 = vshll.u32 %v3190_v45, 16 }
  0x22   : > { %v1189_v46 = vor.u32 %v1188_v36, %v1185_v35  ;;  %v501_v60 = vshll.u32 %v3194_v49, 16  ;;  %v506_v62 = vshrl.u32 %v3196_v51, 16  ;;  %v509_v63 = vshll.u32 %v3196_v51, 16 }
  0x23   : > { %2591 = vmatpush3.bf16.msra.mxu1 %v2896_v57  ;;  %v485_v53 = vrot.slane %v484_v41, 4  ;;  %v246_v57 = vld [vmem:[%s3053_s20 + $0x24] sm:$0x1]  ;;  %v494_v1 = vrot.slane %v492_v55, 4  ;;  %v497_v16 = vrot.slane %v495_v56, 5  ;;  %v515_v17 = vshll.u32 %v3199_v54, 16 }
  0x24   : > { %2687 = vmatpush3.bf16.msra.mxu0 %v2897_v58  ;;  %2600 = vmatprep.subr.bf16.mxu1 %v3170_v24  ;;  %v1190_v58 = vrot.slane %v1189_v46, 4  ;;  %v503_v21 = vrot.slane %v501_v60, 5  ;;  %v508_v22 = vrot.slane %v506_v62, 4  ;;  %v511_v28 = vrot.slane %v509_v63, 5 }
  0x25   : > { %2696 = vmatprep.subr.bf16.mxu0 %v3175_v25  ;;  %v490_v0 = vsel %vm3083_vm4, %v485_v53, %v489_v32  ;;  %v498_v27 = vor.u32 %v497_v16, %v494_v1  ;;  %v517_v30 = vrot.slane %v515_v17, 5  ;;  %v266_v31 = vunpack.c.l.bf16 %v246_v57 }
  0x26   : > { %v2148_v18 = vcombine.low %v3090_v42, %v490_v0  ;;  %v3213_v20 = vsel %vm3083_vm4, %v1190_v58, %v1194_v37  ;;  %v292_v32 = vmul.f32 %v3069_v33, %v265_v2  ;;  %v267_v35 = vunpack.c.h.bf16 %v3106_v52  ;;  %v3223_v37 = vld [vmem:[%s3053_s20 + $0x30] ss:$8 sps:$4 sm:$0xff]  }
  0x27   : > { %v2338_v26 = vcombine.low %v3213_v20, %v3090_v42  ;;  %v268_v36 = vunpack.c.l.bf16 %v248_v23  ;;  %v499_v39 = vrot.slane %v498_v27, 4  ;;  %v512_v41 = vor.u32 %v511_v28, %v508_v22  ;;  %v2900_v27 = vld [vmem:[%s3660_s1 + $0x8] sm:$0xff]  }
  0x28   : > { %2592 = vmatprep.mubr.bf16.mxu1 %v2148_v18  ;;  %v269_v43 = vunpack.c.l.bf16 %v3223_v37  ;;  %v270_v44 = vunpack.c.l.bf16 %v250_v38  ;;  %v293_v46 = vmul.f32 %v3069_v33, %v266_v31  ;;  %v319_v47 = vadd.f32 %v3074_v34, %v292_v32 }
  0x29   : > { %v294_v53 = vmul.f32 %v3069_v33, %v267_v35  ;;  %v295_v2 = vmul.f32 %v3069_v33, %v268_v36  ;;  %v504_v52 = vsel %vm3083_vm4, %v499_v39, %v503_v21  ;;  %v513_v55 = vrot.slane %v512_v41, 4  ;;  %v252_v21 = vld [vmem:[%s3053_s20 + $0x3c] sm:$0x1] }
  0x2a   : > { %v296_v56 = vmul.f32 %v3069_v33, %v269_v43  ;;  %v297_v57 = vmul.f32 %v3069_v33, %v270_v44  ;;  %v2254_v58 = vcombine.low %v490_v0, %v504_v52  ;;  %v320_v60 = vadd.f32 %v3074_v34, %v293_v46 }
  0x2b   : > { %v3236_v62 = vmax.f32 %v319_v47, 0.0  ;;  %v321_v63 = vadd.f32 %v3074_v34, %v294_v53  ;;  %v3241_v1 = vsel %vm3083_vm4, %v513_v55, %v517_v30  ;;  %v322_v16 = vadd.f32 %v3074_v34, %v295_v2  ;;  %v2902_v47 = vld [vmem:[%s3660_s1 + $0x10] sm:$0xff]  }
  0x2c   : > { %v323_v17 = vadd.f32 %v3074_v34, %v296_v56  ;;  %v324_v18 = vadd.f32 %v3074_v34, %v297_v57  ;;  %v3248_v22 = vcombine.low %v504_v52, %v3241_v1  ;;  %2688 = vmatprep.mubr.bf16.mxu0 %v2254_v58  ;;  %v340_v0 = vmax.f32 %v320_v60, 0.0 }
  0x2d   : > { %v382_v23 = vsel %vm354_vm0, %v3236_v62, 0.0  ;;  %v3256_v28 = vmax.f32 %v321_v63, 0.0  ;;  %v342_v31 = vmax.f32 %v322_v16, 0.0  ;;  %v271_v39 = vunpack.c.h.bf16 %v3223_v37 }
  0x2e   : > { %v3258_v30 = vpack.c.bf16 %v382_v23, %v382_v23  ;;  %v3260_v32 = vmax.f32 %v323_v17, 0.0  ;;  %v344_v35 = vmax.f32 %v324_v18, 0.0  ;;  %2593 = vmatmul.mubr.bf16.vlgmr.msra.gmra.mrb[0].mxu1 %v3248_v22  ;;  %v383_v36 = vsel %vm361_vm1, %v340_v0, 0.0 }
  0x2f   : > { %v384_v38 = vsel %vm354_vm0, %v3256_v28, 0.0  ;;  %v272_v41 = vunpack.c.l.bf16 %v252_v21  ;;  %2601 = vmatpush3.bf16.msra.mxu1 %v3170_v24  ;;  %v3270_v43 = vpack.c.bf16 %v383_v36, %v383_v36  ;;  %v385_v53 = vsel %vm361_vm1, %v342_v31, 0.0  ;;  %v2904_v31 = vld [vmem:[%s3660_s1 + $0x18] sm:$0xff]  }
  0x30   : > { %v520_v44 = vshrl.u32 %v3258_v30, 16  ;;  %v523_v46 = vshll.u32 %v3258_v30, 16  ;;  %2602 = vmatprep.subr.bf16.mxu1 %v2900_v27  ;;  %v3279_v2 = vpack.c.bf16 %v384_v38, %v384_v38  ;;  %v3281_v37 = vpack.c.bf16 %v385_v53, %v385_v53 }
  0x31   : > { %v386_v24 = vsel %vm354_vm0, %v3260_v32, 0.0  ;;  %v387_v52 = vsel %vm361_vm1, %v344_v35, 0.0  ;;  %v529_v57 = vshll.u32 %v3270_v43, 16 }
  0x32   : > { %v522_v55 = vrot.slane %v520_v44, 4  ;;  %v525_v56 = vrot.slane %v523_v46, 5  ;;  %v3289_v58 = vpack.c.bf16 %v386_v24, %v386_v24  ;;  %v534_v60 = vshrl.u32 %v3279_v2, 16 }
  0x33   : > { %v537_v63 = vshll.u32 %v3279_v2, 16  ;;  %v543_v16 = vshll.u32 %v3281_v37, 16  ;;  %v3294_v17 = vpack.c.bf16 %v387_v52, %v387_v52  ;;  %v531_v21 = vrot.slane %v529_v57, 5  ;;  %2603 = vmatpush3.bf16.msra.mxu1 %v2900_v27  ;;  %v2901_v57 = vld [vmem:[%s3660_s1 + $0x148] sm:$0xff]  }
  0x34   : > { %v526_v18 = vor.u32 %v525_v56, %v522_v55  ;;  %v548_v0 = vshrl.u32 %v3289_v58, 16  ;;  %v551_v23 = vshll.u32 %v3289_v58, 16  ;;  %2604 = vmatprep.subr.bf16.mxu1 %v2902_v47  ;;  %v536_v35 = vrot.slane %v534_v60, 4 }
  0x35   : > { %v539_v36 = vrot.slane %v537_v63, 5  ;;  %v557_v38 = vshll.u32 %v3294_v17, 16  ;;  %v298_v24 = vmul.f32 %v3069_v33, %v271_v39  ;;  %v545_v27 = vrot.slane %v543_v16, 5  ;;  %v2906_v39 = vld [vmem:[%s3660_s1 + $0x20] sm:$0xff]  }
  0x36   : > { %v527_v44 = vrot.slane %v526_v18, 4  ;;  %v550_v46 = vrot.slane %v548_v0, 4  ;;  %v553_v53 = vrot.slane %v551_v23, 5  ;;  %v299_v55 = vmul.f32 %v3069_v33, %v272_v41 }
  0x37   : > { %v540_v52 = vor.u32 %v539_v36, %v536_v35  ;;  %2605 = vmatpush3.bf16.msra.mxu1 %v2902_v47  ;;  %v559_v63 = vrot.slane %v557_v38, 5  ;;  %v325_v18 = vadd.f32 %v3074_v34, %v298_v24  ;;  %v2905_v24 = vld [vmem:[%s3660_s1 + $0x158] sm:$0xff]  }
  0x38   : > { %v532_v56 = vsel %vm3083_vm4, %v527_v44, %v531_v21  ;;  %v554_v60 = vor.u32 %v553_v53, %v550_v46  ;;  %2606 = vmatprep.subr.bf16.mxu1 %v2904_v31  ;;  %v326_v41 = vadd.f32 %v3074_v34, %v299_v55  ;;  %v2173_v53 = vrot.slane %v3144_v10, 9 }
  0x39   : > { %v2255_v0 = vcombine.low %v3241_v1, %v532_v56  ;;  %v541_v33 = vrot.slane %v540_v52, 4  ;;  %v3315_v21 = vmax.f32 %v325_v18, 0.0  ;;  %v2903_v1 = vld [vmem:[%s3660_s1 + $0x150] sm:$0xff]   ;;  %v851_v55 = vrot.slane %v3148_v12, 5 }
  0x3a   : > { %v555_v16 = vrot.slane %v554_v60, 4  ;;  %v346_v23 = vmax.f32 %v326_v41, 0.0  ;;  %v2910_v52 = vld [vmem:[%s3660_s1 + $0x30] sm:$0xff]   ;;  %v855_v60 = vrot.slane %v3194_v49, 5  ;;  %v2907_v49 = vld [vmem:[%s3660_s1 + $0x160] sm:$0xff]  }
  0x3b   : > { %2689 = vmatmul.mubr.bf16.vlgmr.msra.gmra.mrb[0].mxu0 %v2255_v0  ;;  %v546_v47 = vsel %vm3083_vm4, %v541_v33, %v545_v27  ;;  %2607 = vmatpush3.bf16.msra.mxu1 %v2904_v31  ;;  %v388_v36 = vsel %vm354_vm0, %v3315_v21, 0.0  ;;  %v3416_v48 = vpack.c.bf16 %v347_v61, %v3315_v21  ;;  %v2175_v61 = vrot.slane %v3196_v51, 9  ;;  %v2921_v0 = vld [vmem:[%s3660_s1 + $0x198] sm:$0xff]  }
  0x3c   : > { %2697 = vmatpush3.bf16.msra.mxu0 %v3175_v25  ;;  %v3323_v35 = vcombine.low %v532_v56, %v546_v47  ;;  %v560_v34 = vsel %vm3083_vm4, %v555_v16, %v559_v63  ;;  %2608 = vmatprep.subr.bf16.mxu1 %v2906_v39  ;;  %v2908_v25 = vld [vmem:[%s3660_s1 + $0x28] sm:$0xff]   ;;  %v389_v44 = vsel %vm361_vm1, %v346_v23, 0.0  ;;  %v3335_v31 = vpack.c.bf16 %v388_v36, %v388_v36 }
  0x3d   : > { %2698 = vmatprep.subr.bf16.mxu0 %v2901_v57  ;;  %v2256_v38 = vcombine.low %v546_v47, %v560_v34  ;;  %v3338_v46 = vpack.c.bf16 %v389_v44, %v389_v44  ;;  %v2174_v56 = vrot.slane %v3190_v45, 9  ;;  %v395_v45 = vpack.c.bf16 %v3130_v4, %v3126_v3 }
  0x3e   : > { %2596 = vmatprep.mubr.bf16.mxu1 %v3323_v35  ;;  %v562_v15 = vshrl.u32 %v3335_v31, 16  ;;  %v565_v27 = vshll.u32 %v3335_v31, 16  ;;  %v2266_v4 = vrot.slane %v3152_v13, 9  ;;  %v1345_v16 = vrot.slane %v3156_v14, 5 }
  0x3f   : > { %2692 = vmatprep.mubr.bf16.mxu0 %v2256_v38  ;;  %2609 = vmatpush3.bf16.msra.mxu1 %v2906_v39  ;;  %v571_v10 = vshll.u32 %v3338_v46, 16  ;;  %v3369_v39 = vsel %vm3355_vm7, %v2173_v53, %v851_v55  ;;  %v3373_v41 = vsel %vm3355_vm7, %v2174_v56, %v855_v60  ;;  %v2172_v47 = vrot.slane %v3020_v7, 9  ;;  %v2909_v38 = vld [vmem:[%s3660_s1 + $0x168] sm:$0xff]  }
  0x40   : > { %2699 = vmatpush3.bf16.msra.mxu0 %v2901_v57  ;;  %2610 = vmatprep.subr.bf16.mxu1 %v2908_v25  ;;  %v564_v63 = vrot.slane %v562_v15, 4  ;;  %v567_v18 = vrot.slane %v565_v27, 5  ;;  %v2912_v57 = vld [vmem:[%s3660_s1 + $0x38] sm:$0xff]   ;;  %v847_v23 = vrot.slane %v3033_v11, 5  ;;  %v2160_v36 = vcombine.low %v2962_v6, %v395_v45  ;;  %v2914_v11 = vld [vmem:[%s3660_s1 + $0x80] sm:$0xff]   ;;  %v2916_v15 = vld [vmem:[%s3660_s1 + $0x88] sm:$0xff]  }
  0x41   : > { %2700 = vmatprep.subr.bf16.mxu0 %v2903_v1  ;;  %v573_v12 = vrot.slane %v571_v10, 5  ;;  %v3395_v40 = vsel %vm3355_vm7, %v2266_v4, %v1345_v16  ;;  %v2418_v53 = vpack.c.bf16 %v3236_v62, %v3179_v29  ;;  %v859_v27 = vrot.slane %v3199_v54, 5  ;;  %v2919_v4 = vld [vmem:[%s3660_s1 + $0x190] sm:$0xff]   ;;  %v2924_v16 = vld [vmem:[%s3660_s1 + $0xa8] sm:$0xff]  }
  0x42   : > { %v568_v33 = vor.u32 %v567_v18, %v564_v63  ;;  %v3399_v14 = vsel %vm3355_vm7, %v2172_v47, %v847_v23  ;;  %v2176_v56 = vrot.slane %v3258_v30, 9  ;;  %v863_v10 = vrot.slane %v3270_v43, 5  ;;  %v2926_v47 = vld [vmem:[%s3660_s1 + $0xb0] sm:$0xff]   ;;  %v2923_v23 = vld [vmem:[%s3660_s1 + $0x1a0] sm:$0xff]  }
  0x43   : > { %2611 = vmatpush3.bf16.msra.mxu1 %v2908_v25  ;;  %v2283_v25 = vcombine.low %v3369_v39, %v3373_v41  ;;  %v2364_v44 = vcombine.low %v3395_v40, %v3399_v14  ;;  %v2177_v51 = vrot.slane %v3279_v2, 9  ;;  %v867_v54 = vrot.slane %v3281_v37, 5  ;;  %v2918_v2 = vld [vmem:[%s3660_s1 + $0x90] sm:$0xff]   ;;  %v2915_v37 = vld [vmem:[%s3660_s1 + $0x180] sm:$0xff]  }
  0x44   : > { %2701 = vmatpush3.bf16.msra.mxu0 %v2903_v1  ;;  %2612 = vmatprep.subr.bf16.mxu1 %v2910_v52  ;;  %v569_v3 = vrot.slane %v568_v33, 4  ;;  %v2178_v60 = vrot.slane %v3289_v58, 9  ;;  %v871_v63 = vrot.slane %v3294_v17, 5  ;;  %v860_v30 = vsel %vm3355_vm7, %v2175_v61, %v859_v27  ;;  %v2936_v61 = vld [vmem:[%s3660_s1 + $0xd8] sm:$0xff]   ;;  %v2933_v27 = vld [vmem:[%s3660_s1 + $0x1c8] sm:$0xff]  }
  0x45   : > { %2702 = vmatprep.subr.bf16.mxu0 %v2905_v24  ;;  %v864_v43 = vsel %vm3355_vm7, %v2176_v56, %v863_v10  ;;  %v868_v58 = vsel %vm3355_vm7, %v2177_v51, %v867_v54  ;;  %v3474_v18 = vpack.c.bf16 %v3315_v21, %v3260_v32  ;;  %v2179_v45 = vrot.slane %v3335_v31, 9  ;;  %v2922_v31 = vld [vmem:[%s3660_s1 + $0xa0] sm:$0xff]   ;;  %v2935_v51 = vld [vmem:[%s3660_s1 + $0x1d0] sm:$0xff]   ;;  %v2944_v54 = vld [vmem:[%s3660_s1 + $0xf8] sm:$0xff]  }
  0x46   : > { %v574_v1 = vsel %vm3083_vm4, %v569_v3, %v573_v12  ;;  %v3470_v17 = vsel %vm3355_vm7, %v2178_v60, %v871_v63  ;;  %v2284_v33 = vcombine.low %v860_v30, %v864_v43  ;;  %v2920_v12 = vld [vmem:[%s3660_s1 + $0x98] sm:$0xff]   ;;  %v2196_v3 = vcombine.low %v3399_v14, %v3369_v39  ;;  %v2938_v10 = vld [vmem:[%s3660_s1 + $0xe0] sm:$0xff]   ;;  %v2941_v60 = vld [vmem:[%s3660_s1 + $0x1e8] sm:$0xff]  }
  0x47   : > { %v3387_v13 = vcombine.low %v560_v34, %v574_v1  ;;  %2613 = vmatpush3.bf16.msra.mxu1 %v2910_v52  ;;  %v2257_v7 = vcombine.low %v574_v1, %v3213_v20  ;;  %v3404_v34 = vpack.c.bf16 %v3161_v19, %v333_v59  ;;  %v2911_v59 = vld [vmem:[%s3660_s1 + $0x170] sm:$0xff]   ;;  %v3423_v52 = vpack.c.bf16 %v3179_v29, %v3161_v19  ;;  %v2928_v1 = vld [vmem:[%s3660_s1 + $0xb8] sm:$0xff]   ;;  %v2946_v63 = vld [vmem:[%s3660_s1 + $0x200] sm:$0xff]  }
  0x48   : > { %2703 = vmatpush3.bf16.msra.mxu0 %v2905_v24  ;;  %2614 = vmatprep.subr.bf16.mxu1 %v2912_v57  ;;  %v2421_v24 = vpack.c.bf16 %v3260_v32, %v3256_v28  ;;  %v3442_v19 = vpack.c.bf16 %v3256_v28, %v3236_v62  ;;  %v2285_v21 = vcombine.low %v868_v58, %v3470_v17  ;;  %v2949_v29 = vld [vmem:[%s3660_s1 + $0x218] sm:$0xff]   ;;  %v2950_v62 = vld [vmem:[%s3660_s1 + $0x220] sm:$0xff]   ;;  %v2951_v28 = vld [vmem:[%s3660_s1 + $0x228] sm:$0xff]  }
  0x49   : > { %2704 = vmatprep.subr.bf16.mxu0 %v2907_v49  ;;  %2597 = vmatmul.mubr.bf16.gmra.mrb[4].mxu1 %v3387_v13  ;;  %v402_v56 = vpack.c.bf16 %v3140_v8, %v3136_v5  ;;  %v2940_v8 = vld [vmem:[%s3660_s1 + $0xe8] sm:$0xff]   ;;  %v2952_v32 = vld [vmem:[%s3660_s1 + $0x230] sm:$0xff]  }
  0x4a   : > { %2693 = vmatmul.mubr.bf16.gmra.mrb[4].mxu0 %v2257_v7  ;;  %2616 = vmatprep.mubr.bf16.mxu1 %v2160_v36  ;;  %v2925_v36 = vld [vmem:[%s3660_s1 + $0x1a8] sm:$0xff]   ;;  %v3527_v7 = vcombine.low %v3373_v41, %v860_v30  ;;  %v2934_v41 = vld [vmem:[%s3660_s1 + $0xd0] sm:$0xff]  }
  0x4b   : > { %2712 = vmatprep.mubr.bf16.mxu0 %v2283_v25  ;;  %2615 = vmatpush3.bf16.msra.mxu1 %v2912_v57  ;;  %v2917_v57 = vld [vmem:[%s3660_s1 + $0x188] sm:$0xff]   ;;  %v2930_v25 = vld [vmem:[%s3660_s1 + $0xc0] sm:$0xff]   ;;  %v2311_v5 = vcombine.low %v402_v56, %v2962_v6 }
  0x4c   : > { %2705 = vmatpush3.bf16.msra.mxu0 %v2907_v49  ;;  %2624 = vmatprep.subr.bf16.mxu1 %v2914_v11  ;;  %v875_v49 = vrot.slane %v3338_v46, 5  ;;  %v2939_v6 = vld [vmem:[%s3660_s1 + $0x1e0] sm:$0xff]   ;;  %v2947_v30 = vld [vmem:[%s3660_s1 + $0x208] sm:$0xff]  }
  0x4d   : > { %2706 = vmatprep.subr.bf16.mxu0 %v2909_v38 }
  0x4e   : > { %v876_v46 = vsel %vm3355_vm7, %v2179_v45, %v875_v49 }
  0x4f   : > { %v2286_v39 = vcombine.low %v876_v46, %v3395_v40 }
  0x50   : > { %2707 = vmatpush3.bf16.msra.mxu0 %v2909_v38  ;;  %v2927_v38 = vld [vmem:[%s3660_s1 + $0x1b0] sm:$0xff]  }
  0x51   : > { %2708 = vmatprep.subr.bf16.mxu0 %v2911_v59  ;;  %2617 = vmatmul.mubr.msk.bf16.vlgmr.msra.gmra.mrb[0].mxu1 %vm3436_vm8, %v3423_v52 }
  0x52   : > { %2625 = vmatpush3.bf16.msra.mxu1 %v2914_v11  ;;  %2620 = vmatprep.mubr.msk.bf16.mxu1 %vm3436_vm8, %v3442_v19  ;;  %v3529_v11 = vcombine.low %v864_v43, %v868_v58  ;;  %v2945_v43 = vld [vmem:[%s3660_s1 + $0x1f8] sm:$0xff]  }
  0x53   : > { %2626 = vmatprep.subr.bf16.mxu1 %v2916_v15 }
  0x54   : > { %2709 = vmatpush3.bf16.msra.mxu0 %v2911_v59  ;;  %v2932_v59 = vld [vmem:[%s3660_s1 + $0xc8] sm:$0xff]  }
  0x55   : > { %2710 = vmatprep.subr.bf16.mxu0 %v2913_v50 }
  0x56   : > { %2627 = vmatpush3.bf16.msra.mxu1 %v2916_v15  ;;  %v2931_v15 = vld [vmem:[%s3660_s1 + $0x1c0] sm:$0xff]  }
  0x57   : > { %2628 = vmatprep.subr.bf16.mxu1 %v2918_v2 }
  0x58   : > { %2711 = vmatpush3.bf16.msra.mxu0 %v2913_v50  ;;  %v3546_v50 = vcombine.low %v3470_v17, %v876_v46 }
  0x59   : > { %2720 = vmatprep.subr.bf16.mxu0 %v2915_v37  ;;  %2621 = vmatmul.mubr.msk.bf16.gmra.mrb[4].mxu1 %vm3436_vm8, %v3474_v18 }
  0x5a   : > { %2629 = vmatpush3.bf16.msra.mxu1 %v2918_v2  ;;  %2640 = vmatprep.mubr.bf16.mxu1 %v2196_v3  ;;  %v2948_v2 = vld [vmem:[%s3660_s1 + $0x210] sm:$0xff]  }
  0x5b   : > { %2713 = vmatmul.mubr.bf16.vlgmr.msra.gmra.mrb[0].mxu0 %v2284_v33  ;;  %2630 = vmatprep.subr.bf16.mxu1 %v2920_v12 }
  0x5c   : > { %2721 = vmatpush3.bf16.msra.mxu0 %v2915_v37  ;;  %2716 = vmatprep.mubr.bf16.mxu0 %v2285_v21 }
  0x5d   : > { %2722 = vmatprep.subr.bf16.mxu0 %v2917_v57 }
  0x5e   : > { %2631 = vmatpush3.bf16.msra.mxu1 %v2920_v12 }
  0x5f   : > { %2632 = vmatprep.subr.bf16.mxu1 %v2922_v31 }
  0x60   : > { %2723 = vmatpush3.bf16.msra.mxu0 %v2917_v57 }
  0x61   : > { %2724 = vmatprep.subr.bf16.mxu0 %v2919_v4 }
  0x62   : > { %2633 = vmatpush3.bf16.msra.mxu1 %v2922_v31 }
  0x63   : > { %2717 = vmatmul.mubr.bf16.gmra.mrb[4].mxu0 %v2286_v39  ;;  %2634 = vmatprep.subr.bf16.mxu1 %v2924_v16 }
  0x64   : > { %2725 = vmatpush3.bf16.msra.mxu0 %v2919_v4  ;;  %2736 = vmatprep.mubr.msk.bf16.mxu0 %vm3436_vm8, %v3423_v52  ;;  %v2929_v52 = vld [vmem:[%s3660_s1 + $0x1b8] sm:$0xff]  }
  0x65   : > { %2726 = vmatprep.subr.bf16.mxu0 %v2921_v0 }
  0x66   : > { %2635 = vmatpush3.bf16.msra.mxu1 %v2924_v16 }
  0x67   : > { %2636 = vmatprep.subr.bf16.mxu1 %v2926_v47 }
  0x68   : > { %2727 = vmatpush3.bf16.msra.mxu0 %v2921_v0 }
  0x69   : > { %2728 = vmatprep.subr.bf16.mxu0 %v2923_v23 }
  0x6a   : > { %2637 = vmatpush3.bf16.msra.mxu1 %v2926_v47 }
  0x6b   : > { %2638 = vmatprep.subr.bf16.mxu1 %v2928_v1 }
  0x6c   : > { %2729 = vmatpush3.bf16.msra.mxu0 %v2923_v23 }
  0x6d   : > { %2730 = vmatprep.subr.bf16.mxu0 %v2925_v36 }
  0x6e   : > { %2639 = vmatpush3.bf16.msra.mxu1 %v2928_v1 }
  0x6f   : > { %2648 = vmatprep.subr.bf16.mxu1 %v2930_v25 }
  0x70   : > { %2731 = vmatpush3.bf16.msra.mxu0 %v2925_v36 }
  0x71   : > { %2732 = vmatprep.subr.bf16.mxu0 %v2927_v38  ;;  %2641 = vmatmul.mubr.bf16.vlgmr.msra.gmra.mrb[0].mxu1 %v3527_v7 }
  0x72   : > { %2649 = vmatpush3.bf16.msra.mxu1 %v2930_v25  ;;  %2644 = vmatprep.mubr.bf16.mxu1 %v3529_v11 }
  0x73   : > { %2650 = vmatprep.subr.bf16.mxu1 %v2932_v59 }
  0x74   : > { %2733 = vmatpush3.bf16.msra.mxu0 %v2927_v38 }
  0x75   : > { %2734 = vmatprep.subr.bf16.mxu0 %v2929_v52 }
  0x76   : > { %2651 = vmatpush3.bf16.msra.mxu1 %v2932_v59 }
  0x77   : > { %2652 = vmatprep.subr.bf16.mxu1 %v2934_v41 }
  0x78   : > { %2735 = vmatpush3.bf16.msra.mxu0 %v2929_v52 }
  0x79   : > { %2744 = vmatprep.subr.bf16.mxu0 %v2931_v15  ;;  %2645 = vmatmul.mubr.bf16.gmra.mrb[4].mxu1 %v3546_v50 }
  0x7a   : > { %2653 = vmatpush3.bf16.msra.mxu1 %v2934_v41  ;;  %2664 = vmatprep.mubr.msk.bf16.mxu1 %vm3436_vm8, %v3404_v34  ;;  %v2942_v34 = vld [vmem:[%s3660_s1 + $0xf0] sm:$0xff]  }
  0x7b   : > { %2737 = vmatmul.mubr.msk.bf16.vlgmr.msra.gmra.mrb[0].mxu0 %vm3436_vm8, %v3442_v19  ;;  %2654 = vmatprep.subr.bf16.mxu1 %v2936_v61  ;;  %v2937_v19 = vld [vmem:[%s3660_s1 + $0x1d8] sm:$0xff]  }
  0x7c   : > { %2745 = vmatpush3.bf16.msra.mxu0 %v2931_v15  ;;  %2740 = vmatprep.mubr.msk.bf16.mxu0 %vm3436_vm8, %v3474_v18 }
  0x7d   : > { %2746 = vmatprep.subr.bf16.mxu0 %v2933_v27 }
  0x7e   : > { %2655 = vmatpush3.bf16.msra.mxu1 %v2936_v61 }
  0x7f   : > { %2656 = vmatprep.subr.bf16.mxu1 %v2938_v10 }
  0x80   : > { %2747 = vmatpush3.bf16.msra.mxu0 %v2933_v27 }
  0x81   : > { %2748 = vmatprep.subr.bf16.mxu0 %v2935_v51 }
  0x82   : > { %2657 = vmatpush3.bf16.msra.mxu1 %v2938_v10 }
  0x83   : > { %2741 = vmatmul.mubr.bf16.gmra.mrb[4].mxu0 %v2311_v5  ;;  %2658 = vmatprep.subr.bf16.mxu1 %v2940_v8 }
  0x84   : > { %2749 = vmatpush3.bf16.msra.mxu0 %v2935_v51  ;;  %2760 = vmatprep.mubr.bf16.mxu0 %v3248_v22  ;;  %v2943_v22 = vld [vmem:[%s3660_s1 + $0x1f0] sm:$0xff]  }
  0x85   : > { %2750 = vmatprep.subr.bf16.mxu0 %v2937_v19 }
  0x86   : > { %2659 = vmatpush3.bf16.msra.mxu1 %v2940_v8 }
  0x87   : > { %2660 = vmatprep.subr.bf16.mxu1 %v2942_v34 }
  0x88   : > { %2751 = vmatpush3.bf16.msra.mxu0 %v2937_v19 }
  0x89   : > { %2752 = vmatprep.subr.bf16.mxu0 %v2939_v6 }
  0x8a   : > { %2661 = vmatpush3.bf16.msra.mxu1 %v2942_v34 }
  0x8b   : > { %2662 = vmatprep.subr.bf16.mxu1 %v2944_v54 }
  0x8c   : > { %2753 = vmatpush3.bf16.msra.mxu0 %v2939_v6 }
  0x8d   : > { %2754 = vmatprep.subr.bf16.mxu0 %v2941_v60 }
  0x8e   : > { %2663 = vmatpush3.bf16.msra.mxu1 %v2944_v54 }
  0x8f   : > { %2792 = vmatprep.subr.bf16.mxu1 %v2946_v63 }
  0x90   : > { %2755 = vmatpush3.bf16.msra.mxu0 %v2941_v60 }
  0x91   : > { %2756 = vmatprep.subr.bf16.mxu0 %v2943_v22  ;;  %2665 = vmatmul.mubr.msk.bf16.vlgmr.msra.gmra.mrb[0].mxu1 %vm3436_vm8, %v2418_v53 }
  0x92   : > { %2800 = vmatpush3.bf16.msra.mxu1 %v2946_v63  ;;  %2668 = vmatprep.mubr.msk.bf16.mxu1 %vm3436_vm8, %v2421_v24 }
  0x93   : > { %2793 = vmatprep.subr.bf16.mxu1 %v2947_v30 }
  0x94   : > { %2757 = vmatpush3.bf16.msra.mxu0 %v2943_v22 }
  0x95   : > { %2758 = vmatprep.subr.bf16.mxu0 %v2945_v43 }
  0x96   : > { %2801 = vmatpush3.bf16.msra.mxu1 %v2947_v30 }
  0x97   : > { %2794 = vmatprep.subr.bf16.mxu1 %v2948_v2 }
  0x98   : > { %2759 = vmatpush3.bf16.msra.mxu0 %v2945_v43 }
  0x99   : > { %2768 = vmatprep.subr.bf16.mxu0 %v2946_v63  ;;  %2669 = vmatmul.mubr.msk.bf16.gmra.mrb[4].mxu1 %vm3436_vm8, %v3416_v48 }
  0x9a   : > { %2802 = vmatpush3.bf16.msra.mxu1 %v2948_v2  ;;  %2788 = vmatprep.mubr.bf16.mxu1 %v3546_v50 }
  0x9b   : > { %2761 = vmatmul.mubr.bf16.vlgmr.msra.gmra.mrb[0].mxu0 %v3323_v35  ;;  %2795 = vmatprep.subr.bf16.mxu1 %v2949_v29  ;;  %v2953_v35 = vld [vmem:[%s3660_s1 + $0x238] sm:$0xff]  }
  0x9c   : > { %2769 = vmatpush3.bf16.msra.mxu0 %v2946_v63  ;;  %2764 = vmatprep.mubr.bf16.mxu0 %v3387_v13 }
  0x9d   : > { %2770 = vmatprep.subr.bf16.mxu0 %v2947_v30 }
  0x9e   : > { %2803 = vmatpush3.bf16.msra.mxu1 %v2949_v29 }
  0x9f   : > { %2796 = vmatprep.subr.bf16.mxu1 %v2950_v62 }
  0xa0   : > { %2771 = vmatpush3.bf16.msra.mxu0 %v2947_v30 }
  0xa1   : > { %2772 = vmatprep.subr.bf16.mxu0 %v2948_v2 }
  0xa2   : > { %2804 = vmatpush3.bf16.msra.mxu1 %v2950_v62 }
  0xa3   : > { %2765 = vmatmul.mubr.bf16.gmra.mrb[4].mxu0 %v2338_v26  ;;  %2797 = vmatprep.subr.bf16.mxu1 %v2951_v28 }
  0xa4   : > { %2773 = vmatpush3.bf16.msra.mxu0 %v2948_v2  ;;  %2784 = vmatprep.mubr.bf16.mxu0 %v3527_v7 }
  0xa5   : > { %2774 = vmatprep.subr.bf16.mxu0 %v2949_v29 }
  0xa6   : > { %2805 = vmatpush3.bf16.msra.mxu1 %v2951_v28 }
  0xa7   : > { %2798 = vmatprep.subr.bf16.mxu1 %v2952_v32 }
  0xa8   : > { %2775 = vmatpush3.bf16.msra.mxu0 %v2949_v29 }
  0xa9   : > { %2776 = vmatprep.subr.bf16.mxu0 %v2950_v62 }
  0xaa   : > { %2806 = vmatpush3.bf16.msra.mxu1 %v2952_v32 }
  0xab   : > { %2799 = vmatprep.subr.bf16.mxu1 %v2953_v35 }
  0xac   : > { %2777 = vmatpush3.bf16.msra.mxu0 %v2950_v62 }
  0xad   : > { %2778 = vmatprep.subr.bf16.mxu0 %v2951_v28 }
  0xae   : > { %2807 = vmatpush3.bf16.msra.mxu1 %v2953_v35 }
  0xb0   : > { %2779 = vmatpush3.bf16.msra.mxu0 %v2951_v28 }
  0xb1   : > { %2780 = vmatprep.subr.bf16.mxu0 %v2952_v32  ;;  %2789 = vmatmul.mubr.bf16.vlgmr.msra.gmra.mrb[8].mxu1 %v2364_v44 }
  0xb4   : > { %2781 = vmatpush3.bf16.msra.mxu0 %v2952_v32 }
  0xb5   : > { %2782 = vmatprep.subr.bf16.mxu0 %v2953_v35 }
  0xb8   : > { %2783 = vmatpush3.bf16.msra.mxu0 %v2953_v35 }
  0xbb   : > { %2785 = vmatmul.mubr.bf16.vlgmr.msra.gmra.mrb[0].mxu0 %v3529_v11 }
 0x164   : > { %v2666_v42 = vpop.f32.mrb[0].mxu1 }
 0x165   : > { %v1140_v20 = vpop.f32.mrb[1].mxu1 }
 0x166   : > { %v2667_v26 = vpop.f32.mrb[2].mxu1 }
 0x167   : > { %v1143_v13 = vpop.f32.mrb[3].mxu1 }
 0x16c   : > { %v2670_v53 = vpop.f32.mrb[4].mxu1 }
 0x16d   : > { %v1156_v24 = vpop.f32.mrb[5].mxu1 }
 0x16e   : > { %v2671_v48 = vpop.f32.mrb[6].mxu1 }
 0x16f   : > { %v1159_v55 = vpop.f32.mrb[7].mxu1 }
 0x176   : > { %v2766_v37 = vpop.f32.mrb[4].mxu0 }
 0x177   : > { %v2812_v58 = vadd.f32 %v2766_v37, %v2670_v53  ;;  %v1771_v17 = vpop.f32.mrb[5].mxu0 }
 0x178   : > { %v2814_v18 = vadd.f32 %v1771_v17, %v1156_v24  ;;  %v2767_v40 = vpop.f32.mrb[6].mxu0 }
 0x179   : > { %v2816_v14 = vadd.f32 %v2767_v40, %v2671_v48  ;;  %v1774_v44 = vpop.f32.mrb[7].mxu0 }
 0x17a   : > { %v2818_v33 = vadd.f32 %v1774_v44, %v1159_v55 }
 0x184   : > { %v2790_v12 = vpop.f32.mrb[8].mxu1 }
 0x185   : > { %v2813_v45 = vadd.f32 %v2812_v58, %v2790_v12  ;;  %v1916_v49 = vpop.f32.mrb[9].mxu1 }
 0x186   : > { %v2815_v57 = vadd.f32 %v2814_v18, %v1916_v49  ;;  %v2791_v21 = vpop.f32.mrb[10].mxu1 }
 0x187   : > { %v2817_v3 = vadd.f32 %v2816_v14, %v2791_v21  ;;  %v1919_v31 = vpop.f32.mrb[11].mxu1  ;;  %v1998_v54 = vmul.f32 %v2813_v45, %v2813_v45 }
 0x188   : > { %v2819_v46 = vadd.f32 %v2818_v33, %v1919_v31  ;;  %v1996_v51 = vmul.f32 %v2815_v57, %v2815_v57 }
 0x189   : > { %v2463_v4 = vpack.c.bf16 %v2817_v3, %v2813_v45  ;;  %v1999_v22 = vmul.f32 %v2817_v3, %v2817_v3 }
 0x18a   : > { %v2458_v39 = vpack.c.bf16 %v2819_v46, %v2815_v57  ;;  %v1997_v34 = vmul.f32 %v2819_v46, %v2819_v46 }
 0x18b   : > { %2467 = vst [vmem:[%s231_s12 + $0x18] sm:$0xff] %v2463_v4  }
 0x18c   : > { %2466 = vst [vmem:[%s231_s12 + $0x10] sm:$0xff] %v2458_v39  }
 0x18e   : > { %v2786_v16 = vpop.f32.mrb[0].mxu0 }
 0x18f   : > { %v2808_v0 = vadd.f32 %v2786_v16, %v2666_v42  ;;  %v1900_v47 = vpop.f32.mrb[1].mxu0 }
 0x190   : > { %v2809_v23 = vadd.f32 %v1900_v47, %v1140_v20  ;;  %v2787_v1 = vpop.f32.mrb[2].mxu0 }
 0x191   : > { %v2810_v36 = vadd.f32 %v2787_v1, %v2667_v26  ;;  %v1903_v25 = vpop.f32.mrb[3].mxu0  ;;  %v1994_v15 = vmul.f32 %v2808_v0, %v2808_v0 }
 0x192   : > { %v2811_v38 = vadd.f32 %v1903_v25, %v1143_v13  ;;  %v1992_v11 = vmul.f32 %v2809_v23, %v2809_v23 }
 0x193   : > { %v2453_v7 = vpack.c.bf16 %v2810_v36, %v2808_v0  ;;  %v1995_v27 = vmul.f32 %v2810_v36, %v2810_v36 }
 0x194   : > { %v2448_v59 = vpack.c.bf16 %v2811_v38, %v2809_v23  ;;  %v1979_v52 = vadd.f32 %v2811_v38, %v2809_v23  ;;  %v1993_v41 = vmul.f32 %v2811_v38, %v2811_v38 }
 0x195   : > { %2465 = vst [vmem:[%s231_s12 + $0x8] sm:$0xff] %v2453_v7  }
 0x196   : > { %2449 = vst [vmem:[%s231_s12] sm:$0xff] %v2448_v59   ;;  %v1980_v50 = vadd.f32 %v2808_v0, %v1979_v52  ;;  %v2000_v61 = vadd.f32 %v1993_v41, %v1992_v11 }
 0x198   : > { %v2001_v56 = vadd.f32 %v2000_v61, %v1994_v15  ;;  %v1981_v10 = vadd.f32 %v2810_v36, %v1980_v50 }
 0x19a   : > { %v1982_v5 = vadd.f32 %v2815_v57, %v1981_v10  ;;  %v2002_v8 = vadd.f32 %v2001_v56, %v1995_v27 }
 0x19c   : > { %v1983_v19 = vadd.f32 %v2819_v46, %v1982_v5  ;;  %v2003_v6 = vadd.f32 %v2002_v8, %v1996_v51 }
 0x19e   : > { %v1984_v60 = vadd.f32 %v2813_v45, %v1983_v19  ;;  %v2004_v63 = vadd.f32 %v2003_v6, %v1997_v34 }
 0x1a0   : > { %v1985_v30 = vadd.f32 %v2817_v3, %v1984_v60  ;;  %v2005_v43 = vadd.f32 %v2004_v63, %v1998_v54 }
 0x1a2   : > { %v1986_v2 = vrot.slane %v1985_v30, 4  ;;  %v2006_v29 = vadd.f32 %v2005_v43, %v1999_v22 }
 0x1a4   : > { %v1987_v62 = vadd.f32 %v1986_v2, %v1985_v30  ;;  %v2007_v28 = vrot.slane %v2006_v29, 4 }
 0x1a6   : > { %v1988_v32 = vrot.slane %v1987_v62, 2  ;;  %v2008_v35 = vadd.f32 %v2007_v28, %v2006_v29 }
 0x1a8   : > { %v1989_v42 = vadd.f32 %v1988_v32, %v1987_v62  ;;  %v2009_v20 = vrot.slane %v2008_v35, 2 }
 0x1aa   : > { %v1990_v26 = vrot.slane %v1989_v42, 1  ;;  %v2010_v13 = vadd.f32 %v2009_v20, %v2008_v35 }
 0x1ac   : > { %v1991_v53 = vadd.f32 %v1990_v26, %v1989_v42  ;;  %v2011_v24 = vrot.slane %v2010_v13, 1 }
 0x1ae   : > { %v2012_v48 = vadd.f32 %v2011_v24, %v2010_v13  ;;  %v2014_v55 = vsel %vm2013_vm9, %v1991_v53, 0.0 }
 0x1b0   : > { %v2016_v37 = vsel %vm2015_vm10, %v2012_v48, 0.0 }
 0x1b1   : > { %v2017_v58 = vadd.f32 %v2016_v37, %v2014_v55 }
 0x1b3   : > { %2018 = vst [vmem:[%s235_s16] sm:$0xff] %v2017_v58 }
 0x1b4 PF: > { %s16_s18 = sadd.s32 1, %s2960_s18  }
 0x1b5   : > { %p13_p4 = scmp.ge.s32.totalorder %s16_s18, 4  }
 0x1b7   :  { %15 = sbr.rel (!%p13_p4) target bundleno = 1 (0x1), region = 86 }

// kernel: cnn_block_forward.4
= control target key start
LH: loop header
LB: loop body
LE: loop exit
PB: predicated region body
PF: predicated region fallthrough
CT: control target
= control target key end

     0   :  { %s3104_s12 = smov 0   ;;  %s3473_s0 = inlined_call_operand.vmem [shape: bf16[2,36,9,128], index: 0, kind: input, shape index: {}]   ;;  %s3474_s1 = inlined_call_operand.vmem [shape: bf16[9,128,128], index: 1, kind: input, shape index: {}]   ;;  %s3475_s2 = inlined_call_operand.vmem [shape: bf16[2,64,128], index: 2, kind: output, shape index: {0}]   ;;  %s3476_s3 = inlined_call_operand.vmem [shape: f32[2,8,128], index: 3, kind: output, shape index: {1}]  }
   0x1 LB: > { %s2208_s13 = sadd.s32 4294967295, %s3082_s12   ;;  %p2212_p0 = scmp.ge.s32.totalorder %s3082_s12, 1  ;;  %s3082_s12 = sphi %s3104_s12, %s14_s12  }
   0x2   : > { %p140_p1 = scmp.lt.s32.totalorder %s3082_s12, 3 }
   0x4   : > { %p141_p2 = pnand %p2212_p0, %p140_p1 }
   0x5   : > { %v2980_v0 = vld [vmem:[%s3474_s1 + $0x40] sm:$0xff] (!%p141_p2)   ;;  %p168_p3 = scmp.lt.s32.totalorder (!%p141_p2), %s2208_s13, 1  ;;  %v2982_v2 = vld [vmem:[%s3474_s1 + $0x48] sm:$0xff] (!%p141_p2)   ;;  %v2984_v4 = vld [vmem:[%s3474_s1 + $0x50] sm:$0xff] (!%p141_p2)   ;;  %vm523_vm0 = vsmask.f32 (!%p141_p2), 3328 }
   0x6   : > { %144 = sbr.rel (%p141_p2) target bundleno = 416 (0x1a0), region = 28  ;;  %v2981_v1 = vld [vmem:[%s3474_s1 + $0x100] sm:$0xff] (!%p141_p2)   ;;  %2675 = vmatprep.subr.bf16.mxu1 (!%p141_p2), %v2980_v0  ;;  %v2983_v3 = vld [vmem:[%s3474_s1 + $0x108] sm:$0xff] (!%p141_p2)   ;;  %v2985_v5 = vld [vmem:[%s3474_s1 + $0x110] sm:$0xff] (!%p141_p2)   ;;  %vm524_vm1 = vsmask.f32 (!%p141_p2), 7440 }
   0x7   : > { %2771 = vmatprep.subr.bf16.mxu0 (!%p141_p2), %v2981_v1  ;;  %2676 = vmatpush3.bf16.msra.mxu1 (!%p141_p2), %v2980_v0  ;;  %v2986_v6 = vld [vmem:[%s3474_s1 + $0x58] sm:$0xff] (!%p141_p2)   ;;  %v2988_v8 = vld [vmem:[%s3474_s1 + $0x60] sm:$0xff] (!%p141_p2)   ;;  %v2990_v10 = vld [vmem:[%s3474_s1 + $0x68] sm:$0xff] (!%p141_p2)  }
   0x8   : > { %2772 = vmatpush3.bf16.msra.mxu0 (!%p141_p2), %v2981_v1  ;;  %2677 = vmatprep.subr.bf16.mxu1 (!%p141_p2), %v2982_v2  ;;  %v2987_v7 = vld [vmem:[%s3474_s1 + $0x118] sm:$0xff] (!%p141_p2)   ;;  %v2989_v9 = vld [vmem:[%s3474_s1 + $0x120] sm:$0xff] (!%p141_p2)   ;;  %v2991_v12 = vld [vmem:[%s3474_s1 + $0x128] sm:$0xff] (!%p141_p2)  }
   0x9   : > { %2773 = vmatprep.subr.bf16.mxu0 (!%p141_p2), %v2983_v3  ;;  %v2992_v14 = vld [vmem:[%s3474_s1 + $0x70] sm:$0xff] (!%p141_p2)   ;;  %v2994_v16 = vld [vmem:[%s3474_s1 + $0x78] sm:$0xff] (!%p141_p2)   ;;  %v2997_v18 = vld [vmem:[%s3474_s1] sm:$0xff] (!%p141_p2)  }
   0xa   : > { %v2993_v15 = vld [vmem:[%s3474_s1 + $0x130] sm:$0xff] (!%p141_p2)   ;;  %v2995_v17 = vld [vmem:[%s3474_s1 + $0x138] sm:$0xff] (!%p141_p2)   ;;  %v2999_v19 = vld [vmem:[%s3474_s1 + $0x140] sm:$0xff] (!%p141_p2)  }
   0xb   : > { %2678 = vmatpush3.bf16.msra.mxu1 (!%p141_p2), %v2982_v2  ;;  %v3002_v22 = vld [vmem:[%s3474_s1 + $0x8] sm:$0xff] (!%p141_p2)   ;;  %v3004_v26 = vld [vmem:[%s3474_s1 + $0x10] sm:$0xff] (!%p141_p2)   ;;  %v3006_v28 = vld [vmem:[%s3474_s1 + $0x18] sm:$0xff] (!%p141_p2)  }
   0xc   : > { %2774 = vmatpush3.bf16.msra.mxu0 (!%p141_p2), %v2983_v3  ;;  %2679 = vmatprep.subr.bf16.mxu1 (!%p141_p2), %v2984_v4  ;;  %v3003_v23 = vld [vmem:[%s3474_s1 + $0x148] sm:$0xff] (!%p141_p2)   ;;  %v3005_v27 = vld [vmem:[%s3474_s1 + $0x150] sm:$0xff] (!%p141_p2)   ;;  %v3007_v31 = vld [vmem:[%s3474_s1 + $0x158] sm:$0xff] (!%p141_p2)  }
   0xd   : > { %s3480_s13 = smov (!%p168_p3, %s2208_s13), 1  ;;  %2775 = vmatprep.subr.bf16.mxu0 %v2985_v5  ;;  %v3008_v38 = vld [vmem:[%s3474_s1 + $0x20] sm:$0xff]   ;;  %v3010_v47 = vld [vmem:[%s3474_s1 + $0x28] sm:$0xff]   ;;  %vm3219_vm2 = vmor %vm523_vm0, %vm524_vm1 }
   0xe   : > { %s2971_s30 = smul.u32 288, %s3480_s13  ;;  %v3009_v43 = vld [vmem:[%s3474_s1 + $0x160] sm:$0xff]   ;;  %v3011_v50 = vld [vmem:[%s3474_s1 + $0x168] sm:$0xff]   ;;  %v3013_v2 = vld [vmem:[%s3474_s1 + $0x30] sm:$0xff]   ;;  %s2535_s16 = sshll.u32 %s3480_s13, 5 }
   0xf   : > { %2680 = vmatpush3.bf16.msra.mxu1 %v2984_v4  ;;  %s177_s19 = scalar_lea.vmem %s3475_s2, %s2535_s16  ;;  %s2216_s20 = sshll.u32 %s3480_s13, 3 }
  0x10   : > { %2776 = vmatpush3.bf16.msra.mxu0 %v2985_v5  ;;  %2681 = vmatprep.subr.bf16.mxu1 %v2986_v6  ;;  %s3148_s10 = scalar_lea.vmem %s3473_s0, %s2971_s30  ;;  %s181_s23 = scalar_lea.vmem %s3476_s3, %s2216_s20 }
  0x11   : > { %2777 = vmatprep.subr.bf16.mxu0 %v2987_v7  ;;  %v2996_v11 = vld [vmem:[%s3148_s10 + $0x48] ss:$8 sps:$4 sm:$0xff]   ;;  %v2998_v13 = vld [vmem:[%s3148_s10 + $0xd8] ss:$8 sps:$4 sm:$0xff]   ;;  %v2366_v34 = vld [vmem:[%s3148_s10 + $0x94] sm:$0x1] }
  0x12   : > { %2691 = vmatprep.mubr.bf16.mxu1 %v2996_v11  ;;  %2787 = vmatprep.mubr.bf16.mxu0 %v2998_v13  ;;  %v3000_v20 = vld [vmem:[%s3148_s10 + $0x58] ss:$8 sps:$4 sm:$0xff]   ;;  %v3001_v21 = vld [vmem:[%s3148_s10 + $0xe8] ss:$8 sps:$4 sm:$0xff]   ;;  %v2368_v39 = vld [vmem:[%s3148_s10 + $0x9c] sm:$0x1] }
  0x13   : > { %2682 = vmatpush3.bf16.msra.mxu1 %v2986_v6  ;;  %v3012_v24 = vld [vmem:[%s3148_s10 + $0x68] ss:$8 sps:$4 sm:$0xff]   ;;  %v3014_v25 = vld [vmem:[%s3148_s10 + $0xf8] ss:$8 sps:$4 sm:$0xff]   ;;  %v1160_v40 = vshll.u32 %v2366_v34, 16  ;;  %v1174_v46 = vshll.u32 %v2368_v39, 16 }
  0x14   : > { %2778 = vmatpush3.bf16.msra.mxu0 %v2987_v7  ;;  %2683 = vmatprep.subr.bf16.mxu1 %v2988_v8  ;;  %v3016_v29 = vld [vmem:[%s3148_s10 + $0x78] ss:$8 sps:$4 sm:$0xff]   ;;  %v3017_v30 = vld [vmem:[%s3148_s10 + $0x108] ss:$8 sps:$4 sm:$0xff]   ;;  %v2370_v57 = vld [vmem:[%s3148_s10 + $0xa4] sm:$0x1] }
  0x15   : > { %2779 = vmatprep.subr.bf16.mxu0 %v2989_v9  ;;  %v3020_v32 = vld [vmem:[%s3148_s10] ss:$8 sps:$4 sm:$0xff]   ;;  %v2365_v33 = vld [vmem:[%s3148_s10 + $0x90] sm:$0xf]  ;;  %v2367_v35 = vld [vmem:[%s3148_s10 + $0x98] sm:$0xf] }
  0x16   : > { %v1151_v36 = vshrl.u32 %v2365_v33, 16  ;;  %v1154_v37 = vshll.u32 %v2365_v33, 16  ;;  %v1165_v41 = vshrl.u32 %v2367_v35, 16  ;;  %v1168_v42 = vshll.u32 %v2367_v35, 16  ;;  %v2369_v56 = vld [vmem:[%s3148_s10 + $0xa0] sm:$0xf] }
  0x17   : > { %2684 = vmatpush3.bf16.msra.mxu1 %v2988_v8  ;;  %v1162_v52 = vrot.slane %v1160_v40, 5  ;;  %v1176_v55 = vrot.slane %v1174_v46, 5  ;;  %v2371_v59 = vld [vmem:[%s3148_s10 + $0xa8] sm:$0xf]  ;;  %v2372_v60 = vld [vmem:[%s3148_s10 + $0xac] sm:$0x1] }
  0x18   : > { %2780 = vmatpush3.bf16.msra.mxu0 %v2989_v9  ;;  %2685 = vmatprep.subr.bf16.mxu1 %v2990_v10  ;;  %v1153_v44 = vrot.slane %v1151_v36, 4  ;;  %v1156_v45 = vrot.slane %v1154_v37, 5  ;;  %v1167_v48 = vrot.slane %v1165_v41, 4  ;;  %v1170_v49 = vrot.slane %v1168_v42, 5  ;;  %v3015_v6 = vld [vmem:[%s3474_s1 + $0x170] sm:$0xff]  }
  0x19   : > { %2781 = vmatprep.subr.bf16.mxu0 %v2991_v12  ;;  %v1179_v61 = vshrl.u32 %v2369_v56, 16  ;;  %v1182_v63 = vshll.u32 %v2369_v56, 16  ;;  %v1188_v0 = vshll.u32 %v2370_v57, 16  ;;  %v1193_v1 = vshrl.u32 %v2371_v59, 16  ;;  %v3034_v37 = vld [vmem:[%s3148_s10 + $0x20] ss:$8 sps:$4 sm:$0xff]  }
  0x1a   : > { %v1157_v51 = vor.u32 %v1156_v45, %v1153_v44  ;;  %v1171_v54 = vor.u32 %v1170_v49, %v1167_v48  ;;  %v1196_v5 = vshll.u32 %v2371_v59, 16  ;;  %v3037_v48 = vld [vmem:[%s3148_s10 + $0x30] ss:$8 sps:$4 sm:$0xff]   ;;  %v2377_v49 = vld [vmem:[%s3148_s10 + $0xc0] sm:$0xf] }
  0x1b   : > { %2686 = vmatpush3.bf16.msra.mxu1 %v2990_v10  ;;  %v1181_v4 = vrot.slane %v1179_v61, 4  ;;  %v1184_v8 = vrot.slane %v1182_v63, 5  ;;  %v1195_v9 = vrot.slane %v1193_v1, 4  ;;  %v1202_v10 = vshll.u32 %v2372_v60, 16  ;;  %v3028_v59 = vld [vmem:[%s3474_s1 + $0x98] sm:$0xff]  }
  0x1c   : > { %2782 = vmatpush3.bf16.msra.mxu0 %v2991_v12  ;;  %2687 = vmatprep.subr.bf16.mxu1 %v2992_v14  ;;  %v1158_v58 = vrot.slane %v1157_v51, 4  ;;  %v1172_v62 = vrot.slane %v1171_v54, 4  ;;  %v1190_v12 = vrot.slane %v1188_v0, 5  ;;  %v1198_v13 = vrot.slane %v1196_v5, 5  ;;  %v2379_v51 = vld [vmem:[%s3148_s10 + $0xc8] sm:$0xf] }
  0x1d   : > { %2783 = vmatprep.subr.bf16.mxu0 %v2993_v15  ;;  %v1235_v56 = vshrl.u32 %v2377_v49, 16  ;;  %v1238_v57 = vshll.u32 %v2377_v49, 16  ;;  %v1249_v61 = vshrl.u32 %v2379_v51, 16 }
  0x1e   : > { %v1163_v3 = vsel %vm3219_vm2, %v1158_v58, %v1162_v52  ;;  %v1177_v7 = vsel %vm3219_vm2, %v1172_v62, %v1176_v55  ;;  %v3027_v52 = vld [vmem:[%s3474_s1 + $0x190] sm:$0xff]   ;;  %v2380_v55 = vld [vmem:[%s3148_s10 + $0xcc] sm:$0x1]  ;;  %v1252_v62 = vshll.u32 %v2379_v51, 16 }
  0x1f   : > { %2688 = vmatpush3.bf16.msra.mxu1 %v2992_v14  ;;  %v2397_v11 = vcombine.low %v1163_v3, %v1177_v7  ;;  %v3018_v14 = vld [vmem:[%s3474_s1 + $0x38] sm:$0xff]   ;;  %v1258_v63 = vshll.u32 %v2380_v55, 16  ;;  %v1237_v1 = vrot.slane %v1235_v56, 4 }
  0x20   : > { %2784 = vmatpush3.bf16.msra.mxu0 %v2993_v15  ;;  %2689 = vmatprep.subr.bf16.mxu1 %v2994_v16  ;;  %v1185_v15 = vor.u32 %v1184_v8, %v1181_v4  ;;  %v3029_v4 = vld [vmem:[%s3474_s1 + $0x198] sm:$0xff]   ;;  %v1254_v7 = vrot.slane %v1252_v62, 5 }
  0x21   : > { %2785 = vmatprep.subr.bf16.mxu0 %v2995_v17  ;;  %v1260_v8 = vrot.slane %v1258_v63, 5 }
  0x23   : > { %2690 = vmatpush3.bf16.msra.mxu1 %v2994_v16  ;;  %v1199_v16 = vor.u32 %v1198_v13, %v1195_v9  ;;  %v3030_v13 = vld [vmem:[%s3474_s1 + $0xa0] sm:$0xff]  }
  0x24   : > { %2786 = vmatpush3.bf16.msra.mxu0 %v2995_v17  ;;  %2699 = vmatprep.subr.bf16.mxu1 %v2997_v18  ;;  %v1186_v17 = vrot.slane %v1185_v15, 4 }
  0x25   : > { %2795 = vmatprep.subr.bf16.mxu0 %v2999_v19 }
  0x26   : > { %2692 = vmatmul.mubr.bf16.vlgmr.msra.gmra.mrb[0].mxu1 %v3000_v20  ;;  %v1200_v20 = vrot.slane %v1199_v16, 4  ;;  %v509_v16 = vld [vmem:[%s3148_s10 + $0x8] sm:$0xf] }
  0x27   : > { %2700 = vmatpush3.bf16.msra.mxu1 %v2997_v18  ;;  %2788 = vmatmul.mubr.bf16.vlgmr.msra.gmra.mrb[0].mxu0 %v3001_v21  ;;  %v1204_v18 = vrot.slane %v1202_v10, 5  ;;  %v3021_v21 = vld [vmem:[%s3474_s1 + $0x80] sm:$0xff]  }
  0x28   : > { %2796 = vmatpush3.bf16.msra.mxu0 %v2999_v19  ;;  %2701 = vmatprep.subr.bf16.mxu1 %v3002_v22  ;;  %v3019_v19 = vld [vmem:[%s3474_s1 + $0x178] sm:$0xff]  }
  0x29   : > { %2797 = vmatprep.subr.bf16.mxu0 %v3003_v23  ;;  %2695 = vmatprep.mubr.bf16.mxu1 %v3012_v24  ;;  %v3022_v24 = vld [vmem:[%s3474_s1 + $0x180] sm:$0xff]  }
  0x2a   : > { %2791 = vmatprep.mubr.bf16.mxu0 %v3014_v25  ;;  %v3023_v25 = vld [vmem:[%s3148_s10 + $0x10] ss:$8 sps:$4 sm:$0xff]  }
  0x2b   : > { %2702 = vmatpush3.bf16.msra.mxu1 %v3002_v22  ;;  %v1191_v22 = vsel %vm3219_vm2, %v1186_v17, %v1190_v12  ;;  %v508_v12 = vld [vmem:[%s3148_s10 + $0x4] sm:$0x1]  ;;  %v510_v17 = vld [vmem:[%s3148_s10 + $0xc] sm:$0x1] }
  0x2c   : > { %2798 = vmatpush3.bf16.msra.mxu0 %v3003_v23  ;;  %2703 = vmatprep.subr.bf16.mxu1 %v3004_v26  ;;  %v1205_v23 = vsel %vm3219_vm2, %v1200_v20, %v1204_v18 }
  0x2d   : > { %2799 = vmatprep.subr.bf16.mxu0 %v3005_v27 }
  0x2e   : > { %2696 = vmatmul.mubr.bf16.gmra.mrb[4].mxu1 %v3016_v29  ;;  %v3025_v29 = vld [vmem:[%s3474_s1 + $0x188] sm:$0xff]  }
  0x2f   : > { %2704 = vmatpush3.bf16.msra.mxu1 %v3004_v26  ;;  %2792 = vmatmul.mubr.bf16.gmra.mrb[4].mxu0 %v3017_v30  ;;  %v3024_v26 = vld [vmem:[%s3474_s1 + $0x88] sm:$0xff]   ;;  %v2374_v30 = vld [vmem:[%s3148_s10 + $0xb4] sm:$0x1] }
  0x30   : > { %2800 = vmatpush3.bf16.msra.mxu0 %v3005_v27  ;;  %2705 = vmatprep.subr.bf16.mxu1 %v3006_v28  ;;  %v2373_v27 = vld [vmem:[%s3148_s10 + $0xb0] sm:$0xf]  ;;  %v1216_v35 = vshll.u32 %v2374_v30, 16 }
  0x31   : > { %2801 = vmatprep.subr.bf16.mxu0 %v3007_v31  ;;  %2715 = vmatprep.mubr.bf16.mxu1 %v3020_v32  ;;  %v2376_v32 = vld [vmem:[%s3148_s10 + $0xbc] sm:$0x1]  ;;  %v1207_v33 = vshrl.u32 %v2373_v27, 16  ;;  %v1210_v34 = vshll.u32 %v2373_v27, 16  ;;  %v550_v27 = vshll.u32 %v510_v17, 16 }
  0x32   : > { %2811 = vmatprep.mubr.bf16.mxu0 %v2397_v11  ;;  %v1230_v39 = vshll.u32 %v2376_v32, 16  ;;  %v1218_v44 = vrot.slane %v1216_v35, 5  ;;  %v507_v11 = vld [vmem:[%s3148_s10] sm:$0xf]  ;;  %v3032_v32 = vld [vmem:[%s3474_s1 + $0xa8] sm:$0xff]  }
  0x33   : > { %2706 = vmatpush3.bf16.msra.mxu1 %v3006_v28  ;;  %v2398_v28 = vcombine.low %v1191_v22, %v1205_v23  ;;  %v1209_v40 = vrot.slane %v1207_v33, 4  ;;  %v1212_v41 = vrot.slane %v1210_v34, 5  ;;  %v527_v18 = vshrl.u32 %v507_v11, 16  ;;  %v518_v17 = vld [vmem:[%s3148_s10 + $0x2c] sm:$0x1] }
  0x34   : > { %2802 = vmatpush3.bf16.msra.mxu0 %v3007_v31  ;;  %2707 = vmatprep.subr.bf16.mxu1 %v3008_v38  ;;  %v2375_v31 = vld [vmem:[%s3148_s10 + $0xb8] sm:$0xf]  ;;  %v1232_v46 = vrot.slane %v1230_v39, 5  ;;  %v541_v22 = vshrl.u32 %v509_v16, 16  ;;  %v544_v23 = vshll.u32 %v509_v16, 16 }
  0x35   : > { %2803 = vmatprep.subr.bf16.mxu0 %v3009_v43  ;;  %v1221_v36 = vshrl.u32 %v2375_v31, 16  ;;  %v517_v16 = vld [vmem:[%s3148_s10 + $0x28] sm:$0xf] }
  0x36   : > { %v543_v30 = vrot.slane %v541_v22, 4  ;;  %v597_v22 = vshrl.u32 %v517_v16, 16 }
  0x37   : > { %2708 = vmatpush3.bf16.msra.mxu1 %v3008_v38  ;;  %v1224_v38 = vshll.u32 %v2375_v31, 16  ;;  %v1223_v42 = vrot.slane %v1221_v36, 4  ;;  %v546_v31 = vrot.slane %v544_v23, 5  ;;  %v552_v36 = vrot.slane %v550_v27, 5 }
  0x38   : > { %2804 = vmatpush3.bf16.msra.mxu0 %v3009_v43  ;;  %2709 = vmatprep.subr.bf16.mxu1 %v3010_v47  ;;  %v3026_v43 = vld [vmem:[%s3474_s1 + $0x90] sm:$0xff]   ;;  %v600_v23 = vshll.u32 %v517_v16, 16  ;;  %v2482_v16 = vld [vmem:[%s3148_s10 + $0xc] sm:$0x1] }
  0x39   : > { %2805 = vmatprep.subr.bf16.mxu0 %v3011_v50  ;;  %v1226_v45 = vrot.slane %v1224_v38, 5  ;;  %v3033_v38 = vld [vmem:[%s3474_s1 + $0x1a8] sm:$0xff]  }
  0x3b   : > { %2710 = vmatpush3.bf16.msra.mxu1 %v3010_v47  ;;  %v1213_v47 = vor.u32 %v1212_v41, %v1209_v40  ;;  %v1227_v54 = vor.u32 %v1226_v45, %v1223_v42  ;;  %v547_v40 = vor.u32 %v546_v31, %v543_v30  ;;  %v511_v41 = vld [vmem:[%s3148_s10 + $0x10] sm:$0xf]  ;;  %v602_v31 = vrot.slane %v600_v23, 5 }
  0x3c   : > { %2806 = vmatpush3.bf16.msra.mxu0 %v3011_v50  ;;  %2711 = vmatprep.subr.bf16.mxu1 %v3013_v2  ;;  %v2378_v50 = vld [vmem:[%s3148_s10 + $0xc4] sm:$0x1]  ;;  %v555_v45 = vshrl.u32 %v511_v41, 16  ;;  %v519_v30 = vld [vmem:[%s3148_s10 + $0x30] sm:$0xf] }
  0x3d   : > { %2807 = vmatprep.subr.bf16.mxu0 %v3015_v6  ;;  %v1244_v58 = vshll.u32 %v2378_v50, 16  ;;  %v1214_v60 = vrot.slane %v1213_v47, 4  ;;  %v1228_v0 = vrot.slane %v1227_v54, 4  ;;  %v514_v47 = vld [vmem:[%s3148_s10 + $0x1c] sm:$0x1] }
  0x3f   : > { %2712 = vmatpush3.bf16.msra.mxu1 %v3013_v2  ;;  %v1240_v2 = vrot.slane %v1238_v57, 5  ;;  %v1246_v3 = vrot.slane %v1244_v58, 5  ;;  %v1219_v5 = vsel %vm3219_vm2, %v1214_v60, %v1218_v44  ;;  %v1233_v9 = vsel %vm3219_vm2, %v1228_v0, %v1232_v46  ;;  %v513_v44 = vld [vmem:[%s3148_s10 + $0x18] sm:$0xf]  ;;  %v3036_v60 = vld [vmem:[%s3474_s1 + $0x1b0] sm:$0xff]  }
  0x40   : > { %2808 = vmatpush3.bf16.msra.mxu0 %v3015_v6  ;;  %2713 = vmatprep.subr.bf16.mxu1 %v3018_v14  ;;  %v1251_v6 = vrot.slane %v1249_v61, 4  ;;  %v548_v46 = vrot.slane %v547_v40, 4  ;;  %v569_v50 = vshrl.u32 %v513_v44, 16  ;;  %v572_v54 = vshll.u32 %v513_v44, 16 }
  0x41   : > { %2809 = vmatprep.subr.bf16.mxu0 %v3019_v19  ;;  %v1241_v10 = vor.u32 %v1240_v2, %v1237_v1  ;;  %v578_v58 = vshll.u32 %v514_v47, 16 }
  0x42   : > { %v1255_v15 = vor.u32 %v1254_v7, %v1251_v6  ;;  %v553_v55 = vsel %vm3219_vm2, %v548_v46, %v552_v36  ;;  %v571_v57 = vrot.slane %v569_v50, 4  ;;  %v574_v63 = vrot.slane %v572_v54, 5  ;;  %v3039_v6 = vld [vmem:[%s3474_s1 + $0x1b8] sm:$0xff]   ;;  %v3040_v7 = vld [vmem:[%s3474_s1 + $0xc0] sm:$0xff]  }
  0x43   : > { %2714 = vmatpush3.bf16.msra.mxu1 %v3018_v14  ;;  %v2399_v14 = vcombine.low %v1219_v5, %v1233_v9  ;;  %v1242_v20 = vrot.slane %v1241_v10, 4  ;;  %v3042_v10 = vld [vmem:[%s3474_s1 + $0x1c0] sm:$0xff]   ;;  %v3048_v50 = vld [vmem:[%s3474_s1 + $0xd8] sm:$0xff]  }
  0x44   : > { %2810 = vmatpush3.bf16.msra.mxu0 %v3019_v19  ;;  %2723 = vmatprep.subr.bf16.mxu1 %v3021_v21  ;;  %v530_v19 = vshll.u32 %v507_v11, 16  ;;  %v575_v1 = vor.u32 %v574_v63, %v571_v57  ;;  %v3043_v11 = vld [vmem:[%s3148_s10 + $0x18] ss:$8 sps:$4 sm:$0xff]  }
  0x45   : > { %2819 = vmatprep.subr.bf16.mxu0 %v3022_v24 }
  0x46   : > { %2716 = vmatmul.mubr.bf16.vlgmr.msra.gmra.mrb[0].mxu1 %v3023_v25  ;;  %v529_v25 = vrot.slane %v527_v18, 4  ;;  %v576_v5 = vrot.slane %v575_v1, 4  ;;  %v3045_v18 = vld [vmem:[%s3474_s1 + $0x1c8] sm:$0xff]   ;;  %v3050_v1 = vld [vmem:[%s3474_s1 + $0xe0] sm:$0xff]  }
  0x47   : > { %2724 = vmatpush3.bf16.msra.mxu1 %v3021_v21  ;;  %2812 = vmatmul.mubr.bf16.vlgmr.msra.gmra.mrb[0].mxu0 %v2398_v28  ;;  %v536_v21 = vshll.u32 %v508_v12, 16  ;;  %v3031_v28 = vld [vmem:[%s3474_s1 + $0x1a0] sm:$0xff]  }
  0x48   : > { %2820 = vmatpush3.bf16.msra.mxu0 %v3022_v24  ;;  %2725 = vmatprep.subr.bf16.mxu1 %v3024_v26  ;;  %v1256_v24 = vrot.slane %v1255_v15, 4  ;;  %v515_v12 = vld [vmem:[%s3148_s10 + $0x20] sm:$0xf]  ;;  %v516_v15 = vld [vmem:[%s3148_s10 + $0x24] sm:$0x1] }
  0x49   : > { %2821 = vmatprep.subr.bf16.mxu0 %v3025_v29  ;;  %2719 = vmatprep.mubr.bf16.mxu1 %v3034_v37  ;;  %v538_v35 = vrot.slane %v536_v21, 5  ;;  %v3041_v37 = vld [vmem:[%s3148_s10 + $0x8] ss:$8 sps:$4 sm:$0xff]   ;;  %v592_v21 = vshll.u32 %v516_v15, 16 }
  0x4a   : > { %2815 = vmatprep.mubr.bf16.mxu0 %v2399_v14  ;;  %v1261_v33 = vsel %vm3219_vm2, %v1256_v24, %v1260_v8  ;;  %v3044_v14 = vld [vmem:[%s3474_s1 + $0xc8] sm:$0xff]   ;;  %v606_v24 = vshll.u32 %v518_v17, 16  ;;  %v2483_v17 = vld [vmem:[%s3148_s10 + $0x10] sm:$0xf] }
  0x4b   : > { %2726 = vmatpush3.bf16.msra.mxu1 %v3024_v26  ;;  %v532_v26 = vrot.slane %v530_v19, 5  ;;  %v583_v19 = vshrl.u32 %v515_v12, 16  ;;  %v2481_v15 = vld [vmem:[%s3148_s10 + $0x8] sm:$0xf]  ;;  %v1792_v23 = vshll.u32 %v2483_v17, 16 }
  0x4c   : > { %2822 = vmatpush3.bf16.msra.mxu0 %v3025_v29  ;;  %2727 = vmatprep.subr.bf16.mxu1 %v3026_v43  ;;  %v1247_v29 = vsel %vm3219_vm2, %v1242_v20, %v1246_v3  ;;  %v580_v3 = vrot.slane %v578_v58, 5  ;;  %v586_v20 = vshll.u32 %v515_v12, 16  ;;  %v3056_v58 = vld [vmem:[%s3148_s10 + $0x38] ss:$8 sps:$4 sm:$0xff]  }
  0x4d   : > { %2823 = vmatprep.subr.bf16.mxu0 %v3027_v52  ;;  %v533_v34 = vor.u32 %v532_v26, %v529_v25  ;;  %v2400_v39 = vcombine.low %v1247_v29, %v1261_v33  ;;  %v3054_v25 = vld [vmem:[%s3148_s10 + $0x28] ss:$8 sps:$4 sm:$0xff]   ;;  %v585_v26 = vrot.slane %v583_v19, 4  ;;  %v599_v29 = vrot.slane %v597_v22, 4  ;;  %v520_v33 = vld [vmem:[%s3148_s10 + $0x34] sm:$0x1] }
  0x4e   : > { %2720 = vmatmul.mubr.bf16.gmra.mrb[4].mxu1 %v3037_v48  ;;  %v558_v48 = vshll.u32 %v511_v41, 16  ;;  %v581_v9 = vsel %vm3219_vm2, %v576_v5, %v580_v3  ;;  %v588_v27 = vrot.slane %v586_v20, 5  ;;  %v620_v40 = vshll.u32 %v520_v33, 16  ;;  %v3047_v41 = vld [vmem:[%s3474_s1 + $0x1d0] sm:$0xff]   ;;  %v3051_v5 = vld [vmem:[%s3474_s1 + $0x1e0] sm:$0xff]   ;;  %v3058_v12 = vld [vmem:[%s3474_s1 + $0xf8] sm:$0xff]  }
  0x4f   : > { %2728 = vmatpush3.bf16.msra.mxu1 %v3026_v43  ;;  %v534_v42 = vrot.slane %v533_v34, 4  ;;  %v512_v43 = vld [vmem:[%s3148_s10 + $0x14] sm:$0x1]  ;;  %2816 = vmatmul.mubr.bf16.gmra.mrb[4].mxu0 %v2400_v39  ;;  %v521_v34 = vld [vmem:[%s3148_s10 + $0x38] sm:$0xf]  ;;  %v614_v39 = vshll.u32 %v519_v30, 16 }
  0x50   : > { %2824 = vmatpush3.bf16.msra.mxu0 %v3027_v52  ;;  %2729 = vmatprep.subr.bf16.mxu1 %v3028_v59  ;;  %v564_v49 = vshll.u32 %v512_v43, 16  ;;  %v557_v52 = vrot.slane %v555_v45, 4  ;;  %v560_v56 = vrot.slane %v558_v48, 5  ;;  %v589_v36 = vor.u32 %v588_v27, %v585_v26  ;;  %v2492_v33 = vld [vmem:[%s3148_s10 + $0x34] sm:$0x1] }
  0x51   : > { %2825 = vmatprep.subr.bf16.mxu0 %v3029_v4  ;;  %v539_v51 = vsel %vm3219_vm2, %v534_v42, %v538_v35  ;;  %2835 = vmatprep.mubr.bf16.mxu0 %v3041_v37  ;;  %v3046_v35 = vld [vmem:[%s3474_s1 + $0xd0] sm:$0xff]   ;;  %v522_v37 = vld [vmem:[%s3148_s10 + $0x3c] sm:$0x1]  ;;  %v603_v42 = vor.u32 %v602_v31, %v599_v29  ;;  %v625_v43 = vshrl.u32 %v521_v34, 16  ;;  %v628_v44 = vshll.u32 %v521_v34, 16 }
  0x52   : > { %v2281_v61 = vcombine.low %v539_v51, %v553_v55  ;;  %v566_v62 = vrot.slane %v564_v49, 5  ;;  %v561_v0 = vor.u32 %v560_v56, %v557_v52  ;;  %v634_v45 = vshll.u32 %v522_v37, 16  ;;  %v2491_v29 = vld [vmem:[%s3148_s10 + $0x30] sm:$0xf]  ;;  %v3063_v34 = vld [vmem:[%s3148_s10 + $0x60] ss:$8 sps:$4 sm:$0xff]  }
  0x53   : > { %2730 = vmatpush3.bf16.msra.mxu1 %v3028_v59  ;;  %v3035_v59 = vld [vmem:[%s3474_s1 + $0xb0] sm:$0xff]   ;;  %v590_v46 = vrot.slane %v589_v36, 4  ;;  %v616_v48 = vrot.slane %v614_v39, 5  ;;  %v622_v49 = vrot.slane %v620_v40, 5  ;;  %v604_v51 = vrot.slane %v603_v42, 4  ;;  %v3065_v39 = vld [vmem:[%s3474_s1 + $0x208] sm:$0xff]  }
  0x54   : > { %2826 = vmatpush3.bf16.msra.mxu0 %v3029_v4  ;;  %2731 = vmatprep.subr.bf16.mxu1 %v3030_v13  ;;  %v562_v2 = vrot.slane %v561_v0, 4  ;;  %v3038_v4 = vld [vmem:[%s3474_s1 + $0xb8] sm:$0xff]   ;;  %v627_v52 = vrot.slane %v625_v43, 4  ;;  %v630_v54 = vrot.slane %v628_v44, 5  ;;  %v636_v55 = vrot.slane %v634_v45, 5 }
  0x55   : > { %2827 = vmatprep.subr.bf16.mxu0 %v3031_v28  ;;  %2739 = vmatprep.mubr.bf16.mxu1 %v2281_v61  ;;  %v3049_v61 = vld [vmem:[%s3474_s1 + $0x1d8] sm:$0xff]   ;;  %v1775_v19 = vshrl.u32 %v2481_v15, 16  ;;  %v1778_v20 = vshll.u32 %v2481_v15, 16  ;;  %v1789_v22 = vshrl.u32 %v2483_v17, 16  ;;  %v1848_v42 = vshll.u32 %v2491_v29, 16  ;;  %v3072_v15 = vld [vmem:[%s3474_s1 + $0x220] sm:$0xff]  }
  0x56   : > { %v567_v8 = vsel %vm3219_vm2, %v562_v2, %v566_v62  ;;  %v1854_v43 = vshll.u32 %v2492_v33, 16  ;;  %v3066_v44 = vld [vmem:[%s3148_s10 + $0xb0] ss:$8 sps:$4 sm:$0xff]  }
  0x57   : > { %2732 = vmatpush3.bf16.msra.mxu1 %v3030_v13  ;;  %v2282_v13 = vcombine.low %v567_v8, %v581_v9  ;;  %v3052_v8 = vld [vmem:[%s3474_s1 + $0xe8] sm:$0xff]   ;;  %v1777_v26 = vrot.slane %v1775_v19, 4  ;;  %v1780_v27 = vrot.slane %v1778_v20, 5  ;;  %v1791_v31 = vrot.slane %v1789_v22, 4 }
  0x58   : > { %2828 = vmatpush3.bf16.msra.mxu0 %v3031_v28  ;;  %2733 = vmatprep.subr.bf16.mxu1 %v3032_v32  ;;  %v594_v28 = vrot.slane %v592_v21, 5  ;;  %v3053_v9 = vld [vmem:[%s3474_s1 + $0x1e8] sm:$0xff]   ;;  %v1784_v21 = vshll.u32 %v2482_v16, 16 }
  0x59   : > { %2829 = vmatprep.subr.bf16.mxu0 %v3033_v38  ;;  %v3073_v20 = vld [vmem:[%s3474_s1 + $0x228] sm:$0xff]  }
  0x5a   : > { %v595_v56 = vsel %vm3219_vm2, %v590_v46, %v594_v28  ;;  %v2490_v28 = vld [vmem:[%s3148_s10 + $0x2c] sm:$0x1]  ;;  %v1786_v45 = vrot.slane %v1784_v21, 5  ;;  %v2494_v21 = vld [vmem:[%s3148_s10 + $0x3c] sm:$0x1] }
  0x5b   : > { %2734 = vmatpush3.bf16.msra.mxu1 %v3032_v32  ;;  %v608_v32 = vrot.slane %v606_v24, 5 }
  0x5c   : > { %2830 = vmatpush3.bf16.msra.mxu0 %v3033_v38  ;;  %2735 = vmatprep.subr.bf16.mxu1 %v3035_v59  ;;  %v611_v38 = vshrl.u32 %v519_v30, 16  ;;  %v3062_v30 = vld [vmem:[%s3148_s10 + $0xa0] ss:$8 sps:$4 sm:$0xff]  }
  0x5d   : > { %2831 = vmatprep.subr.bf16.mxu0 %v3036_v60 }
  0x5e   : > { %v613_v47 = vrot.slane %v611_v38, 4  ;;  %v1840_v38 = vshll.u32 %v2490_v28, 16 }
  0x5f   : > { %2736 = vmatpush3.bf16.msra.mxu1 %v3035_v59  ;;  %v609_v59 = vsel %vm3219_vm2, %v604_v51, %v608_v32  ;;  %v1794_v32 = vrot.slane %v1792_v23, 5 }
  0x60   : > { %2832 = vmatpush3.bf16.msra.mxu0 %v3036_v60  ;;  %2737 = vmatprep.subr.bf16.mxu1 %v3038_v4  ;;  %v617_v57 = vor.u32 %v616_v48, %v613_v47  ;;  %v631_v60 = vor.u32 %v630_v54, %v627_v52  ;;  %v2283_v62 = vcombine.low %v595_v56, %v609_v59  ;;  %v1850_v54 = vrot.slane %v1848_v42, 5 }
  0x61   : > { %2833 = vmatprep.subr.bf16.mxu0 %v3039_v6  ;;  %v1795_v40 = vor.u32 %v1794_v32, %v1791_v31  ;;  %v1842_v56 = vrot.slane %v1840_v38, 5  ;;  %v1856_v59 = vrot.slane %v1854_v43, 5  ;;  %v2486_v31 = vld [vmem:[%s3148_s10 + $0x1c] sm:$0x1]  ;;  %v2488_v32 = vld [vmem:[%s3148_s10 + $0x24] sm:$0x1] }
  0x62   : > { %v618_v63 = vrot.slane %v617_v57, 4  ;;  %v632_v0 = vrot.slane %v631_v60, 4  ;;  %v3070_v57 = vld [vmem:[%s3474_s1 + $0x210] sm:$0xff]  }
  0x63   : > { %2738 = vmatpush3.bf16.msra.mxu1 %v3038_v4  ;;  %v3061_v4 = vld [vmem:[%s3148_s10 + $0x50] ss:$8 sps:$4 sm:$0xff]   ;;  %v1796_v51 = vrot.slane %v1795_v40, 4 }
  0x64   : > { %2834 = vmatpush3.bf16.msra.mxu0 %v3039_v6  ;;  %2747 = vmatprep.subr.bf16.mxu1 %v3040_v7  ;;  %v623_v2 = vsel %vm3219_vm2, %v618_v63, %v622_v49  ;;  %v637_v3 = vsel %vm3219_vm2, %v632_v0, %v636_v55  ;;  %v3067_v49 = vld [vmem:[%s3148_s10 + $0x70] ss:$8 sps:$4 sm:$0xff]  }
  0x65   : > { %2843 = vmatprep.subr.bf16.mxu0 %v3042_v10  ;;  %v2284_v6 = vcombine.low %v623_v2, %v637_v3  ;;  %v3071_v3 = vld [vmem:[%s3474_s1 + $0x218] sm:$0xff]  }
  0x66   : > { %2740 = vmatmul.mubr.bf16.vlgmr.msra.gmra.mrb[0].mxu1 %v2282_v13  ;;  %v3059_v13 = vld [vmem:[%s3474_s1 + $0x1f8] sm:$0xff]  }
  0x67   : > { %2748 = vmatpush3.bf16.msra.mxu1 %v3040_v7  ;;  %2836 = vmatmul.mubr.bf16.vlgmr.msra.gmra.mrb[0].mxu0 %v3043_v11  ;;  %v3060_v7 = vld [vmem:[%s3148_s10 + $0x90] ss:$8 sps:$4 sm:$0xff]  }
  0x68   : > { %2844 = vmatpush3.bf16.msra.mxu0 %v3042_v10  ;;  %2749 = vmatprep.subr.bf16.mxu1 %v3044_v14  ;;  %v3055_v10 = vld [vmem:[%s3474_s1 + $0xf0] sm:$0xff]  }
  0x69   : > { %2845 = vmatprep.subr.bf16.mxu0 %v3045_v18  ;;  %2839 = vmatprep.mubr.bf16.mxu0 %v3054_v25  ;;  %v3057_v11 = vld [vmem:[%s3474_s1 + $0x1f0] sm:$0xff]   ;;  %v2489_v25 = vld [vmem:[%s3148_s10 + $0x28] sm:$0xf] }
  0x6a   : > { %2743 = vmatprep.mubr.bf16.mxu1 %v2283_v62  ;;  %v1831_v36 = vshrl.u32 %v2489_v25, 16  ;;  %v1834_v37 = vshll.u32 %v2489_v25, 16 }
  0x6b   : > { %2750 = vmatpush3.bf16.msra.mxu1 %v3044_v14  ;;  %v3064_v14 = vld [vmem:[%s3474_s1 + $0x200] sm:$0xff]  }
  0x6c   : > { %2846 = vmatpush3.bf16.msra.mxu0 %v3045_v18  ;;  %2751 = vmatprep.subr.bf16.mxu1 %v3046_v35  ;;  %v2484_v18 = vld [vmem:[%s3148_s10 + $0x14] sm:$0x1]  ;;  %v1833_v47 = vrot.slane %v1831_v36, 4  ;;  %v1836_v48 = vrot.slane %v1834_v37, 5 }
  0x6d   : > { %2847 = vmatprep.subr.bf16.mxu0 %v3047_v41  ;;  %v1798_v24 = vshll.u32 %v2484_v18, 16  ;;  %v3074_v37 = vld [vmem:[%s3474_s1 + $0x230] sm:$0xff]  }
  0x6e   : > { %2744 = vmatmul.mubr.bf16.gmra.mrb[4].mxu1 %v2284_v6  ;;  %v1837_v55 = vor.u32 %v1836_v48, %v1833_v47  ;;  %v2495_v6 = vld [vmem:[%s3148_s10 + $0x40] sm:$0xf] }
  0x6f   : > { %2752 = vmatpush3.bf16.msra.mxu1 %v3046_v35  ;;  %2840 = vmatmul.mubr.bf16.gmra.mrb[4].mxu0 %v3056_v58  ;;  %v1781_v35 = vor.u32 %v1780_v27, %v1777_v26  ;;  %v1800_v46 = vrot.slane %v1798_v24, 5 }
  0x70   : > { %2848 = vmatpush3.bf16.msra.mxu0 %v3047_v41  ;;  %2753 = vmatprep.subr.bf16.mxu1 %v3048_v50  ;;  %v1845_v41 = vshrl.u32 %v2491_v29, 16  ;;  %v1838_v60 = vrot.slane %v1837_v55, 4 }
  0x71   : > { %2849 = vmatprep.subr.bf16.mxu0 %v3049_v61  ;;  %2859 = vmatprep.mubr.bf16.mxu0 %v3061_v4  ;;  %v1801_v63 = vsel %vm3219_vm2, %v1796_v51, %v1800_v46  ;;  %v3075_v46 = vld [vmem:[%s3474_s1 + $0x238] sm:$0xff]  }
  0x72   : > { %2763 = vmatprep.mubr.bf16.mxu1 %v3060_v7  ;;  %v1847_v52 = vrot.slane %v1845_v41, 4  ;;  %v1843_v2 = vsel %vm3219_vm2, %v1838_v60, %v1842_v56  ;;  %v1826_v41 = vshll.u32 %v2488_v32, 16 }
  0x73   : > { %2754 = vmatpush3.bf16.msra.mxu1 %v3048_v50  ;;  %v1782_v50 = vrot.slane %v1781_v35, 4 }
  0x74   : > { %2850 = vmatpush3.bf16.msra.mxu0 %v3049_v61  ;;  %2755 = vmatprep.subr.bf16.mxu1 %v3050_v1  ;;  %v1851_v58 = vor.u32 %v1850_v54, %v1847_v52  ;;  %v3068_v61 = vld [vmem:[%s3148_s10 + $0xc0] ss:$8 sps:$4 sm:$0xff]  }
  0x75   : > { %2851 = vmatprep.subr.bf16.mxu0 %v3051_v5  ;;  %v1787_v62 = vsel %vm3219_vm2, %v1782_v50, %v1786_v45  ;;  %v1828_v50 = vrot.slane %v1826_v41, 5 }
  0x76   : > { %v1852_v0 = vrot.slane %v1851_v58, 4  ;;  %v2513_v7 = vcombine.low %v1787_v62, %v1801_v63 }
  0x77   : > { %2756 = vmatpush3.bf16.msra.mxu1 %v3050_v1  ;;  %v3069_v1 = vld [vmem:[%s3148_s10 + $0x80] ss:$8 sps:$4 sm:$0xff]  }
  0x78   : > { %2852 = vmatpush3.bf16.msra.mxu0 %v3051_v5  ;;  %2757 = vmatprep.subr.bf16.mxu1 %v3052_v8  ;;  %v1857_v4 = vsel %vm3219_vm2, %v1852_v0, %v1856_v59  ;;  %v2493_v5 = vld [vmem:[%s3148_s10 + $0x38] sm:$0xf] }
  0x79   : > { %2853 = vmatprep.subr.bf16.mxu0 %v3053_v9 }
  0x7b   : > { %2758 = vmatpush3.bf16.msra.mxu1 %v3052_v8  ;;  %v2485_v8 = vld [vmem:[%s3148_s10 + $0x18] sm:$0xf] }
  0x7c   : > { %2854 = vmatpush3.bf16.msra.mxu0 %v3053_v9  ;;  %2759 = vmatprep.subr.bf16.mxu1 %v3055_v10  ;;  %v2487_v9 = vld [vmem:[%s3148_s10 + $0x20] sm:$0xf]  ;;  %v1803_v16 = vshrl.u32 %v2485_v8, 16  ;;  %v1806_v17 = vshll.u32 %v2485_v8, 16 }
  0x7d   : > { %2855 = vmatprep.subr.bf16.mxu0 %v3057_v11  ;;  %v1817_v18 = vshrl.u32 %v2487_v9, 16  ;;  %v1820_v19 = vshll.u32 %v2487_v9, 16 }
  0x7e   : > { %v1805_v26 = vrot.slane %v1803_v16, 4  ;;  %v1808_v27 = vrot.slane %v1806_v17, 5 }
  0x7f   : > { %2760 = vmatpush3.bf16.msra.mxu1 %v3055_v10  ;;  %v2515_v10 = vcombine.low %v1843_v2, %v1857_v4  ;;  %v1819_v28 = vrot.slane %v1817_v18, 4  ;;  %v1822_v29 = vrot.slane %v1820_v19, 5 }
  0x80   : > { %2856 = vmatpush3.bf16.msra.mxu0 %v3057_v11  ;;  %2761 = vmatprep.subr.bf16.mxu1 %v3058_v12  ;;  %v1859_v11 = vshrl.u32 %v2493_v5, 16  ;;  %v1809_v38 = vor.u32 %v1808_v27, %v1805_v26 }
  0x81   : > { %2857 = vmatprep.subr.bf16.mxu0 %v3059_v13  ;;  %v1823_v40 = vor.u32 %v1822_v29, %v1819_v28 }
  0x82   : > { %v1861_v22 = vrot.slane %v1859_v11, 4  ;;  %v1810_v47 = vrot.slane %v1809_v38, 4 }
  0x83   : > { %2762 = vmatpush3.bf16.msra.mxu1 %v3058_v12  ;;  %v1862_v12 = vshll.u32 %v2493_v5, 16 }
  0x84   : > { %2858 = vmatpush3.bf16.msra.mxu0 %v3059_v13  ;;  %2891 = vmatprep.subr.bf16.mxu1 %v3064_v14  ;;  %v1873_v13 = vshrl.u32 %v2495_v6, 16 }
  0x85   : > { %2867 = vmatprep.subr.bf16.mxu0 %v3064_v14  ;;  %v1864_v23 = vrot.slane %v1862_v12, 5 }
  0x86   : > { %2764 = vmatmul.mubr.bf16.vlgmr.msra.gmra.mrb[0].mxu1 %v3062_v30  ;;  %v1875_v24 = vrot.slane %v1873_v13, 4  ;;  %v2496_v30 = vld [vmem:[%s3148_s10 + $0x44] sm:$0x1] }
  0x87   : > { %2860 = vmatmul.mubr.bf16.vlgmr.msra.gmra.mrb[0].mxu0 %v3063_v34  ;;  %2899 = vmatpush3.bf16.msra.mxu1 %v3064_v14  ;;  %v1865_v33 = vor.u32 %v1864_v23, %v1861_v22  ;;  %v1868_v34 = vshll.u32 %v2494_v21, 16  ;;  %v1882_v36 = vshll.u32 %v2496_v30, 16 }
  0x88   : > { %2868 = vmatpush3.bf16.msra.mxu0 %v3064_v14  ;;  %2892 = vmatprep.subr.bf16.mxu1 %v3065_v39  ;;  %v1876_v14 = vshll.u32 %v2495_v6, 16 }
  0x89   : > { %2869 = vmatprep.subr.bf16.mxu0 %v3065_v39  ;;  %2767 = vmatprep.mubr.bf16.mxu1 %v3066_v44  ;;  %v1866_v42 = vrot.slane %v1865_v33, 4  ;;  %v1870_v43 = vrot.slane %v1868_v34, 5  ;;  %v1884_v45 = vrot.slane %v1882_v36, 5 }
  0x8a   : > { %2863 = vmatprep.mubr.bf16.mxu0 %v3067_v49  ;;  %v1878_v25 = vrot.slane %v1876_v14, 5  ;;  %v1824_v49 = vrot.slane %v1823_v40, 4 }
  0x8b   : > { %2900 = vmatpush3.bf16.msra.mxu1 %v3065_v39  ;;  %v1871_v51 = vsel %vm3219_vm2, %v1866_v42, %v1870_v43 }
  0x8c   : > { %2870 = vmatpush3.bf16.msra.mxu0 %v3065_v39  ;;  %2893 = vmatprep.subr.bf16.mxu1 %v3070_v57  ;;  %v1879_v35 = vor.u32 %v1878_v25, %v1875_v24  ;;  %v1812_v39 = vshll.u32 %v2486_v31, 16  ;;  %v1829_v55 = vsel %vm3219_vm2, %v1824_v49, %v1828_v50 }
  0x8d   : > { %2871 = vmatprep.subr.bf16.mxu0 %v3070_v57 }
  0x8e   : > { %2768 = vmatmul.mubr.bf16.gmra.mrb[4].mxu1 %v3068_v61  ;;  %v1880_v44 = vrot.slane %v1879_v35, 4  ;;  %v1814_v48 = vrot.slane %v1812_v39, 5 }
  0x8f   : > { %2864 = vmatmul.mubr.bf16.gmra.mrb[4].mxu0 %v3069_v1  ;;  %2901 = vmatpush3.bf16.msra.mxu1 %v3070_v57 }
  0x90   : > { %2872 = vmatpush3.bf16.msra.mxu0 %v3070_v57  ;;  %2894 = vmatprep.subr.bf16.mxu1 %v3071_v3  ;;  %v1885_v52 = vsel %vm3219_vm2, %v1880_v44, %v1884_v45  ;;  %v1815_v54 = vsel %vm3219_vm2, %v1810_v47, %v1814_v48 }
  0x91   : > { %2873 = vmatprep.subr.bf16.mxu0 %v3071_v3  ;;  %2883 = vmatprep.mubr.bf16.mxu0 %v2513_v7  ;;  %v2516_v56 = vcombine.low %v1871_v51, %v1885_v52  ;;  %v2514_v57 = vcombine.low %v1815_v54, %v1829_v55  ;;  %v2114_v55 = vlaneseq }
  0x92   : > { %2887 = vmatprep.mubr.bf16.mxu1 %v2515_v10 }
  0x93   : > { %2902 = vmatpush3.bf16.msra.mxu1 %v3071_v3 }
  0x94   : > { %2874 = vmatpush3.bf16.msra.mxu0 %v3071_v3  ;;  %2895 = vmatprep.subr.bf16.mxu1 %v3072_v15 }
  0x95   : > { %2875 = vmatprep.subr.bf16.mxu0 %v3072_v15 }
  0x97   : > { %2903 = vmatpush3.bf16.msra.mxu1 %v3072_v15 }
  0x98   : > { %2876 = vmatpush3.bf16.msra.mxu0 %v3072_v15  ;;  %2896 = vmatprep.subr.bf16.mxu1 %v3073_v20 }
  0x99   : > { %2877 = vmatprep.subr.bf16.mxu0 %v3073_v20 }
  0x9b   : > { %2904 = vmatpush3.bf16.msra.mxu1 %v3073_v20 }
  0x9c   : > { %2878 = vmatpush3.bf16.msra.mxu0 %v3073_v20  ;;  %2897 = vmatprep.subr.bf16.mxu1 %v3074_v37 }
  0x9d   : > { %2879 = vmatprep.subr.bf16.mxu0 %v3074_v37 }
  0x9f   : > { %2905 = vmatpush3.bf16.msra.mxu1 %v3074_v37 }
  0xa0   : > { %2880 = vmatpush3.bf16.msra.mxu0 %v3074_v37  ;;  %2898 = vmatprep.subr.bf16.mxu1 %v3075_v46 }
  0xa1   : > { %2881 = vmatprep.subr.bf16.mxu0 %v3075_v46 }
  0xa3   : > { %2906 = vmatpush3.bf16.msra.mxu1 %v3075_v46 }
  0xa4   : > { %2882 = vmatpush3.bf16.msra.mxu0 %v3075_v46 }
  0xa6   : > { %2888 = vmatmul.mubr.bf16.vlgmr.msra.gmra.mrb[8].mxu1 %v2516_v56 }
  0xa7   : > { %2884 = vmatmul.mubr.bf16.vlgmr.msra.gmra.mrb[0].mxu0 %v2514_v57 }
 0x159   : > { %v2765_v58 = vpop.f32.mrb[0].mxu1 }
 0x15a   : > { %v924_v59 = vpop.f32.mrb[1].mxu1 }
 0x15b   : > { %v2766_v60 = vpop.f32.mrb[2].mxu1 }
 0x15c   : > { %v927_v61 = vpop.f32.mrb[3].mxu1 }
 0x161   : > { %v2769_v62 = vpop.f32.mrb[4].mxu1 }
 0x162   : > { %v2865_v63 = vpop.f32.mrb[4].mxu0  ;;  %v940_v0 = vpop.f32.mrb[5].mxu1 }
 0x163   : > { %v2911_v1 = vadd.f32 %v2865_v63, %v2769_v62  ;;  %v1735_v2 = vpop.f32.mrb[5].mxu0  ;;  %v2770_v3 = vpop.f32.mrb[6].mxu1 }
 0x164   : > { %v2913_v53 = vadd.f32 %v1735_v2, %v940_v0  ;;  %v2866_v4 = vpop.f32.mrb[6].mxu0  ;;  %v943_v5 = vpop.f32.mrb[7].mxu1 }
 0x165   : > { %v2915_v6 = vadd.f32 %v2866_v4, %v2770_v3  ;;  %v1738_v7 = vpop.f32.mrb[7].mxu0 }
 0x166   : > { %v2917_v8 = vadd.f32 %v1738_v7, %v943_v5 }
 0x179   : > { %v2889_v9 = vpop.f32.mrb[8].mxu1 }
 0x17a   : > { %v2885_v10 = vpop.f32.mrb[0].mxu0  ;;  %v2912_v11 = vadd.f32 %v2911_v1, %v2889_v9  ;;  %v2017_v12 = vpop.f32.mrb[9].mxu1 }
 0x17b   : > { %v2907_v13 = vadd.f32 %v2885_v10, %v2765_v58  ;;  %v2001_v14 = vpop.f32.mrb[1].mxu0  ;;  %v2914_v15 = vadd.f32 %v2913_v53, %v2017_v12  ;;  %v2890_v16 = vpop.f32.mrb[10].mxu1 }
 0x17c   : > { %v2908_v17 = vadd.f32 %v2001_v14, %v924_v59  ;;  %v2886_v18 = vpop.f32.mrb[2].mxu0  ;;  %v2916_v19 = vadd.f32 %v2915_v6, %v2890_v16  ;;  %v2020_v20 = vpop.f32.mrb[11].mxu1  ;;  %v2099_v44 = vmul.f32 %v2912_v11, %v2912_v11 }
 0x17d   : > { %v2909_v21 = vadd.f32 %v2886_v18, %v2766_v60  ;;  %v2004_v22 = vpop.f32.mrb[3].mxu0  ;;  %v2918_v23 = vadd.f32 %v2917_v8, %v2020_v20  ;;  %v2095_v32 = vmul.f32 %v2907_v13, %v2907_v13  ;;  %v2097_v38 = vmul.f32 %v2914_v15, %v2914_v15 }
 0x17e   : > { %v2562_v24 = vpack.c.bf16 %v2916_v19, %v2912_v11  ;;  %v2910_v25 = vadd.f32 %v2004_v22, %v927_v61  ;;  %v2093_v28 = vmul.f32 %v2908_v17, %v2908_v17  ;;  %v2100_v47 = vmul.f32 %v2916_v19, %v2916_v19 }
 0x17f   : > { %v2552_v26 = vpack.c.bf16 %v2909_v21, %v2907_v13  ;;  %v2557_v27 = vpack.c.bf16 %v2918_v23, %v2914_v15  ;;  %v2096_v35 = vmul.f32 %v2909_v21, %v2909_v21  ;;  %v2098_v42 = vmul.f32 %v2918_v23, %v2918_v23 }
 0x180   : > { %2566 = vst [vmem:[%s177_s19 + $0x18] sm:$0xff] %v2562_v24   ;;  %v2547_v29 = vpack.c.bf16 %v2910_v25, %v2908_v17  ;;  %v2080_v30 = vadd.f32 %v2910_v25, %v2908_v17  ;;  %v2094_v31 = vmul.f32 %v2910_v25, %v2910_v25  ;;  %v2115_v60 = vshrl.u32 %v2114_v55, 7 }
 0x181   : > { %2564 = vst [vmem:[%s177_s19 + $0x8] sm:$0xff] %v2552_v26   ;;  %2565 = vst [vmem:[%s177_s19 + $0x10] sm:$0xff] %v2557_v27  }
 0x182   : > { %2548 = vst [vmem:[%s177_s19] sm:$0xff] %v2547_v29   ;;  %v2081_v33 = vadd.f32 %v2907_v13, %v2080_v30  ;;  %v2101_v34 = vadd.f32 %v2094_v31, %v2093_v28  ;;  %vm2116_vm3 = vcmp.eq.s32.totalorder %v2115_v60, 0  ;;  %vm2118_vm4 = vcmp.eq.s32.totalorder %v2115_v60, 1 }
 0x184   : > { %v2102_v36 = vadd.f32 %v2101_v34, %v2095_v32  ;;  %v2082_v37 = vadd.f32 %v2909_v21, %v2081_v33 }
 0x186   : > { %v2083_v39 = vadd.f32 %v2914_v15, %v2082_v37  ;;  %v2103_v40 = vadd.f32 %v2102_v36, %v2096_v35 }
 0x188   : > { %v2084_v41 = vadd.f32 %v2918_v23, %v2083_v39  ;;  %v2104_v43 = vadd.f32 %v2103_v40, %v2097_v38 }
 0x18a   : > { %v2085_v45 = vadd.f32 %v2912_v11, %v2084_v41  ;;  %v2105_v46 = vadd.f32 %v2104_v43, %v2098_v42 }
 0x18c   : > { %v2086_v48 = vadd.f32 %v2916_v19, %v2085_v45  ;;  %v2106_v49 = vadd.f32 %v2105_v46, %v2099_v44 }
 0x18e   : > { %v2087_v50 = vrot.slane %v2086_v48, 4  ;;  %v2107_v51 = vadd.f32 %v2106_v49, %v2100_v47 }
 0x190   : > { %v2088_v52 = vadd.f32 %v2087_v50, %v2086_v48  ;;  %v2108_v54 = vrot.slane %v2107_v51, 4 }
 0x192   : > { %v2089_v56 = vrot.slane %v2088_v52, 2  ;;  %v2109_v57 = vadd.f32 %v2108_v54, %v2107_v51 }
 0x194   : > { %v2090_v58 = vadd.f32 %v2089_v56, %v2088_v52  ;;  %v2110_v59 = vrot.slane %v2109_v57, 2 }
 0x196   : > { %v2091_v61 = vrot.slane %v2090_v58, 1  ;;  %v2111_v62 = vadd.f32 %v2110_v59, %v2109_v57 }
 0x198   : > { %v2092_v63 = vadd.f32 %v2091_v61, %v2090_v58  ;;  %v2112_v0 = vrot.slane %v2111_v62, 1 }
 0x19a   : > { %v2113_v1 = vadd.f32 %v2112_v0, %v2111_v62  ;;  %v2117_v2 = vsel %vm2116_vm3, %v2092_v63, 0.0 }
 0x19c   : > { %v2119_v3 = vsel %vm2118_vm4, %v2113_v1, 0.0 }
 0x19d   : > { %v2120_v53 = vadd.f32 %v2119_v3, %v2117_v2 }
 0x19f   : > { %2121 = vst [vmem:[%s181_s23] sm:$0xff] %v2120_v53 }
 0x1a0 PF: > { %s14_s12 = sadd.s32 1, %s3082_s12  }
 0x1a1   : > { %p11_p4 = scmp.ge.s32.totalorder %s14_s12, 4  }
 0x1a3   :  { %13 = sbr.rel (!%p11_p4) target bundleno = 1 (0x1), region = 83 }

</bundles_post_ra>
